<compile_context>
chip_gen: v6e
topology: v6e:2x2x1
jax: 0.10.0
libtpu: 0.0.40
codegen_flags: <defaults>
</compile_context>

<pallas_src>
import functools

import jax
import jax.numpy as jnp
from jax.experimental import pallas as pl
from jax.experimental.pallas import tpu as pltpu

# ------------------------- static configuration -----------------------------
CFG = dict(
    n_cls=4,         # number of class prompts (acts as batch)
    n_ctx=2,         # MaPLe context tokens
    prompt_depth=2,  # => 1 compound (deep) text prompt
    ctx_dim=32,      # text transformer width (real CLIP: 512)
    embed_dim=32,    # joint embedding dim    (real CLIP: 512)
    seq=8,           # 1 (SOS) + n_ctx + name/EOT/pad
    layers=2,        # text transformer depth (real CLIP: 12)
    heads=4,         # attention heads
)

_PER_LAYER_REFS = 12  # ln1(g,b) qkv(w,b) out(w,b) ln2(g,b) fc(w,b) proj(w,b)


def _full_block(shape):
    nd = len(shape)
    return pl.BlockSpec(shape, lambda i, _nd=nd: (0,) * _nd)


# ------------------------------ fused kernel --------------------------------
def _text_encoder_kernel(*refs, n_layers, n_heads, n_ctx, n_deep):
    """Entire TextEncoder forward; activations stay in VMEM / vregs.

    refs layout (inputs, then the single output):
      [0] prompts (N,S,D) f32   [1] pos_emb (S,D) f32   [2] tokens (N,S) i32
      [3 .. 3+n_deep)                 deep prompts padded to (S,D) f32
      [base .. base+12*n_layers)      per-layer params (_PER_LAYER_REFS order)
      then: lnf_g (1,D), lnf_b (1,D), text_proj (D,E) bf16
      [-1] out (N,E) f32
    """
    out_ref = refs[-1]
    prompts_ref, pos_ref, tok_ref = refs[0], refs[1], refs[2]
    deep_refs = refs[3:3 + n_deep]
    base = 3 + n_deep
    lnf_g = refs[base + n_layers * _PER_LAYER_REFS][...]
    lnf_b = refs[base + n_layers * _PER_LAYER_REFS + 1][...]
    w_tproj = refs[base + n_layers * _PER_LAYER_REFS + 2][...]

    x = prompts_ref[...] + pos_ref[...][None]          # (N, S, D) f32 residual stream
    N, S, D = x.shape
    Dh = D // n_heads
    scale = float(Dh) ** -0.5

    # Masks (built once, reused every layer).
    row = jax.lax.broadcasted_iota(jnp.int32, (S, S), 0)
    col = jax.lax.broadcasted_iota(jnp.int32, (S, S), 1)
    causal = (row >= col)[None]                        # (1, S, S)
    spos = jax.lax.broadcasted_iota(jnp.int32, (S, 1), 0)
    inject = ((spos >= 1) & (spos < 1 + n_ctx))[None]  # (1, S, 1)

    def ln(z, g, b, eps=1e-5):                         # f32 VPU math (v5e-safe)
        mu = jnp.mean(z, axis=-1, keepdims=True)
        var = jnp.mean((z - mu) ** 2, axis=-1, keepdims=True)
        return (z - mu) * jax.lax.rsqrt(var + eps) * g + b

    def mm(a, w_bf16):                                 # bf16 MXU inputs, f32 accumulate
        return jnp.dot(a.astype(jnp.bfloat16), w_bf16,
                       preferred_element_type=jnp.float32)

    for li in range(n_layers):
        lr = refs[base + li * _PER_LAYER_REFS: base + (li + 1) * _PER_LAYER_REFS]
        ln1_g, ln1_b = lr[0][...], lr[1][...]
        w_qkv, b_qkv = lr[2][...], lr[3][...]
        w_out, b_out = lr[4][...], lr[5][...]
        ln2_g, ln2_b = lr[6][...], lr[7][...]
        w_fc, b_fc = lr[8][...], lr[9][...]
        w_pj, b_pj = lr[10][...], lr[11][...]

        # MaPLe deep-prompt injection: replace tokens [1, 1+n_ctx) before the block.
        if li > 0 and (li - 1) < n_deep:
            x = jnp.where(inject, deep_refs[li - 1][...][None], x)

        # --- attention: x + out_proj(attn(ln1(x))) ----------------------------
        h = ln(x.reshape(N * S, D), ln1_g, ln1_b)
        qkv = mm(h, w_qkv) + b_qkv                     # (N*S, 3D)
        q = qkv[:, 0 * D:1 * D].reshape(N, S, D)
        k = qkv[:, 1 * D:2 * D].reshape(N, S, D)
        v = qkv[:, 2 * D:3 * D].reshape(N, S, D)

        # Per-head slices inside the kernel (no XLA transposes); the output
        # projection is folded into the head loop:
        #   concat_h(o_h) @ W_out == sum_h o_h @ W_out[h*Dh:(h+1)*Dh, :]
        acc = jnp.zeros((N * S, D), jnp.float32)
        for hh in range(n_heads):
            lo = hh * Dh
            qh = q[:, :, lo:lo + Dh].astype(jnp.bfloat16)
            kh = k[:, :, lo:lo + Dh].astype(jnp.bfloat16)
            vh = v[:, :, lo:lo + Dh].astype(jnp.bfloat16)
            s = jnp.einsum("nqd,nkd->nqk", qh, kh,
                           preferred_element_type=jnp.float32) * scale
            s = jnp.where(causal, s, -1e30)            # causal mask (f32 scores)
            s = s - jnp.max(s, axis=-1, keepdims=True)
            p = jnp.exp(s)                                                   # EUP
            p = p * pl.reciprocal(jnp.sum(p, axis=-1, keepdims=True), approx=True)
            o_h = jnp.einsum("nqk,nkd->nqd", p.astype(jnp.bfloat16), vh,
                             preferred_element_type=jnp.float32)
            acc = acc + mm(o_h.reshape(N * S, Dh), w_out[lo:lo + Dh, :])
        x = x + (acc + b_out).reshape(N, S, D)         # fused residual add

        # --- MLP: x + proj(QuickGELU(fc(ln2(x)))) ------------------------------
        h = ln(x.reshape(N * S, D), ln2_g, ln2_b)
        h = mm(h, w_fc) + b_fc
        h = h * jax.nn.sigmoid(1.702 * h)              # QuickGELU, f32
        x = x + (mm(h, w_pj) + b_pj).reshape(N, S, D)  # fused residual add

    # ln_final, EOT gather, text projection -------------------------------------
    xf = ln(x.reshape(N * S, D), lnf_g, lnf_b).reshape(N, S, D)
    tok = tok_ref[...]
    # EOT token id is the per-row maximum and occurs exactly once (CLIP
    # tokenizer), so argmax == position of the row max: one-hot select.
    eot_onehot = (tok == jnp.max(tok, axis=-1, keepdims=True)).astype(jnp.float32)
    x_eot = jnp.sum(eot_onehot[:, :, None] * xf, axis=1)    # (N, D)
    out_ref[...] = mm(x_eot, w_tproj)                        # text_projection (no bias)


# ------------------------------- wrapper -------------------------------------
def text_encoder_forward(prompts, tokenized_prompts, compound_prompts_deeper_text,
                         params):
    """MaPLe TextEncoder.forward as one fused Pallas call.

    The PyTorch LND permute(1, 0, 2) round-trips are no-ops in this batch-major
    layout (semantically equivalent).
    """
    N, S, D = prompts.shape
    E = params["text_proj"].shape[1]
    n_layers = len(params["layers"])
    n_deep = len(compound_prompts_deeper_text)
    n_ctx = CFG["n_ctx"]

    # Glue: pad each deep prompt into an (S, D) slab at rows [1, 1+n_ctx); the
    # kernel injects it with a mask (lane-dense, no in-kernel concatenation).
    deep_padded = [
        jnp.zeros((S, D), jnp.float32).at[1:1 + n_ctx, :].set(cp.astype(jnp.float32))
        for cp in compound_prompts_deeper_text
    ]

    inputs = [prompts.astype(jnp.float32), params["pos_emb"],
              tokenized_prompts.astype(jnp.int32)]
    inputs += deep_padded
    for lp in params["layers"]:
        inputs += [lp["ln1_g"], lp["ln1_b"], lp["in_w"], lp["in_b"],
                   lp["out_w"], lp["out_b"], lp["ln2_g"], lp["ln2_b"],
                   lp["fc_w"], lp["fc_b"], lp["proj_w"], lp["proj_b"]]
    inputs += [params["lnf_g"], params["lnf_b"], params["text_proj"]]

    kernel = functools.partial(
        _text_encoder_kernel,
        n_layers=n_layers, n_heads=CFG["heads"], n_ctx=n_ctx, n_deep=n_deep)

    return pl.pallas_call(
        kernel,
        grid=(1,),
        in_specs=[_full_block(a.shape) for a in inputs],
        out_specs=_full_block((N, E)),
        out_shape=jax.ShapeDtypeStruct((N, E), jnp.float32),
        compiler_params=pltpu.CompilerParams(
            dimension_semantics=("arbitrary",)),
    )(*inputs)


# ----------------------------- parameter init --------------------------------
def init_params(key):
    D, E, S = CFG["ctx_dim"], CFG["embed_dim"], CFG["seq"]
    ks = iter(jax.random.split(key, 64))

    def nrm(shape, std=0.02, dtype=jnp.float32):
        return (std * jax.random.normal(next(ks), shape, jnp.float32)).astype(dtype)

    def block(width):
        return dict(
            ln1_g=jnp.ones((1, width), jnp.float32),
            ln1_b=jnp.zeros((1, width), jnp.float32),
            in_w=nrm((width, 3 * width), dtype=jnp.bfloat16),
            in_b=nrm((1, 3 * width)),
            out_w=nrm((width, width), dtype=jnp.bfloat16),
            out_b=nrm((1, width)),
            ln2_g=jnp.ones((1, width), jnp.float32),
            ln2_b=jnp.zeros((1, width), jnp.float32),
            fc_w=nrm((width, 4 * width), dtype=jnp.bfloat16),
            fc_b=nrm((1, 4 * width)),
            proj_w=nrm((4 * width, width), dtype=jnp.bfloat16),
            proj_b=nrm((1, width)),
        )

    return dict(
        pos_emb=nrm((S, D)),
        layers=[block(D) for _ in range(CFG["layers"])],
        lnf_g=jnp.ones((1, D), jnp.float32),
        lnf_b=jnp.zeros((1, D), jnp.float32),
        text_proj=nrm((D, E), dtype=jnp.bfloat16),
    )


# ------------------------------------ main ------------------------------------
if __name__ == "__main__":
    key = jax.random.PRNGKey(0)
    k_param, k_prompt, k_deep = jax.random.split(key, 3)

    N, S, D = CFG["n_cls"], CFG["seq"], CFG["ctx_dim"]
    params = init_params(k_param)

    # Example inputs matching TextEncoder.forward(prompts, tokenized_prompts,
    # compound_prompts_deeper_text).
    prompts = 0.02 * jax.random.normal(k_prompt, (N, S, D), jnp.float32)
    compound_prompts = [
        0.02 * jax.random.normal(k_deep, (CFG["n_ctx"], D), jnp.float32)
        for _ in range(CFG["prompt_depth"] - 1)
    ]
    # Tokenized prompts: SOS=49406, EOT=49407 (EOT is the max id -> argmax pos).
    eot_pos = jnp.array([4, 5, 6, 7], jnp.int32)[:N]
    toks = jnp.full((N, S), 320, jnp.int32)
    toks = toks.at[:, 0].set(49406)
    toks = toks.at[jnp.arange(N), eot_pos].set(49407)
    toks = jnp.where(jnp.arange(S)[None, :] > eot_pos[:, None], 0, toks)

    fwd = jax.jit(text_encoder_forward)
    text_features = fwd(prompts, toks, compound_prompts, params)
    text_features = jax.block_until_ready(text_features)

    assert text_features.shape == (N, CFG["embed_dim"])
    assert bool(jnp.all(jnp.isfinite(text_features)))
    print("KERNEL_OK")
</pallas_src>

<mosaic_0001>
module attributes {stable_mosaic.version = 11 : i64} {
  func.func @_text_encoder_kernel(%arg0: i32, %arg1: memref<4x8x32xf32, #tpu.memory_space<vmem>>, %arg2: memref<8x32xf32, #tpu.memory_space<vmem>>, %arg3: memref<4x8xi32, #tpu.memory_space<vmem>>, %arg4: memref<8x32xf32, #tpu.memory_space<vmem>>, %arg5: memref<1x32xf32, #tpu.memory_space<vmem>>, %arg6: memref<1x32xf32, #tpu.memory_space<vmem>>, %arg7: memref<32x96xbf16, #tpu.memory_space<vmem>>, %arg8: memref<1x96xf32, #tpu.memory_space<vmem>>, %arg9: memref<32x32xbf16, #tpu.memory_space<vmem>>, %arg10: memref<1x32xf32, #tpu.memory_space<vmem>>, %arg11: memref<1x32xf32, #tpu.memory_space<vmem>>, %arg12: memref<1x32xf32, #tpu.memory_space<vmem>>, %arg13: memref<32x128xbf16, #tpu.memory_space<vmem>>, %arg14: memref<1x128xf32, #tpu.memory_space<vmem>>, %arg15: memref<128x32xbf16, #tpu.memory_space<vmem>>, %arg16: memref<1x32xf32, #tpu.memory_space<vmem>>, %arg17: memref<1x32xf32, #tpu.memory_space<vmem>>, %arg18: memref<1x32xf32, #tpu.memory_space<vmem>>, %arg19: memref<32x96xbf16, #tpu.memory_space<vmem>>, %arg20: memref<1x96xf32, #tpu.memory_space<vmem>>, %arg21: memref<32x32xbf16, #tpu.memory_space<vmem>>, %arg22: memref<1x32xf32, #tpu.memory_space<vmem>>, %arg23: memref<1x32xf32, #tpu.memory_space<vmem>>, %arg24: memref<1x32xf32, #tpu.memory_space<vmem>>, %arg25: memref<32x128xbf16, #tpu.memory_space<vmem>>, %arg26: memref<1x128xf32, #tpu.memory_space<vmem>>, %arg27: memref<128x32xbf16, #tpu.memory_space<vmem>>, %arg28: memref<1x32xf32, #tpu.memory_space<vmem>>, %arg29: memref<1x32xf32, #tpu.memory_space<vmem>>, %arg30: memref<1x32xf32, #tpu.memory_space<vmem>>, %arg31: memref<32x32xbf16, #tpu.memory_space<vmem>>, %arg32: memref<4x32xf32, #tpu.memory_space<vmem>>) attributes {dimension_semantics = [#tpu.dimension_semantics<arbitrary>], iteration_bounds = array<i64: 1>, scalar_prefetch = 0 : i64, scratch_operands = 0 : i64, tpu.core_type = #tpu.core_type<tc>, window_params = [{pipeline_mode = #tpu.pipeline_mode<synchronous>, transform_indices = @transform_0, window_bounds = array<i64: 4, 8, 32>}, {pipeline_mode = #tpu.pipeline_mode<synchronous>, transform_indices = @transform_1, window_bounds = array<i64: 8, 32>}, {pipeline_mode = #tpu.pipeline_mode<synchronous>, transform_indices = @transform_2, window_bounds = array<i64: 4, 8>}, {pipeline_mode = #tpu.pipeline_mode<synchronous>, transform_indices = @transform_3, window_bounds = array<i64: 8, 32>}, {pipeline_mode = #tpu.pipeline_mode<synchronous>, transform_indices = @transform_4, window_bounds = array<i64: 1, 32>}, {pipeline_mode = #tpu.pipeline_mode<synchronous>, transform_indices = @transform_5, window_bounds = array<i64: 1, 32>}, {pipeline_mode = #tpu.pipeline_mode<synchronous>, transform_indices = @transform_6, window_bounds = array<i64: 32, 96>}, {pipeline_mode = #tpu.pipeline_mode<synchronous>, transform_indices = @transform_7, window_bounds = array<i64: 1, 96>}, {pipeline_mode = #tpu.pipeline_mode<synchronous>, transform_indices = @transform_8, window_bounds = array<i64: 32, 32>}, {pipeline_mode = #tpu.pipeline_mode<synchronous>, transform_indices = @transform_9, window_bounds = array<i64: 1, 32>}, {pipeline_mode = #tpu.pipeline_mode<synchronous>, transform_indices = @transform_10, window_bounds = array<i64: 1, 32>}, {pipeline_mode = #tpu.pipeline_mode<synchronous>, transform_indices = @transform_11, window_bounds = array<i64: 1, 32>}, {pipeline_mode = #tpu.pipeline_mode<synchronous>, transform_indices = @transform_12, window_bounds = array<i64: 32, 128>}, {pipeline_mode = #tpu.pipeline_mode<synchronous>, transform_indices = @transform_13, window_bounds = array<i64: 1, 128>}, {pipeline_mode = #tpu.pipeline_mode<synchronous>, transform_indices = @transform_14, window_bounds = array<i64: 128, 32>}, {pipeline_mode = #tpu.pipeline_mode<synchronous>, transform_indices = @transform_15, window_bounds = array<i64: 1, 32>}, {pipeline_mode = #tpu.pipeline_mode<synchronous>, transform_indices = @transform_16, window_bounds = array<i64: 1, 32>}, {pipeline_mode = #tpu.pipeline_mode<synchronous>, transform_indices = @transform_17, window_bounds = array<i64: 1, 32>}, {pipeline_mode = #tpu.pipeline_mode<synchronous>, transform_indices = @transform_18, window_bounds = array<i64: 32, 96>}, {pipeline_mode = #tpu.pipeline_mode<synchronous>, transform_indices = @transform_19, window_bounds = array<i64: 1, 96>}, {pipeline_mode = #tpu.pipeline_mode<synchronous>, transform_indices = @transform_20, window_bounds = array<i64: 32, 32>}, {pipeline_mode = #tpu.pipeline_mode<synchronous>, transform_indices = @transform_21, window_bounds = array<i64: 1, 32>}, {pipeline_mode = #tpu.pipeline_mode<synchronous>, transform_indices = @transform_22, window_bounds = array<i64: 1, 32>}, {pipeline_mode = #tpu.pipeline_mode<synchronous>, transform_indices = @transform_23, window_bounds = array<i64: 1, 32>}, {pipeline_mode = #tpu.pipeline_mode<synchronous>, transform_indices = @transform_24, window_bounds = array<i64: 32, 128>}, {pipeline_mode = #tpu.pipeline_mode<synchronous>, transform_indices = @transform_25, window_bounds = array<i64: 1, 128>}, {pipeline_mode = #tpu.pipeline_mode<synchronous>, transform_indices = @transform_26, window_bounds = array<i64: 128, 32>}, {pipeline_mode = #tpu.pipeline_mode<synchronous>, transform_indices = @transform_27, window_bounds = array<i64: 1, 32>}, {pipeline_mode = #tpu.pipeline_mode<synchronous>, transform_indices = @transform_28, window_bounds = array<i64: 1, 32>}, {pipeline_mode = #tpu.pipeline_mode<synchronous>, transform_indices = @transform_29, window_bounds = array<i64: 1, 32>}, {pipeline_mode = #tpu.pipeline_mode<synchronous>, transform_indices = @transform_30, window_bounds = array<i64: 32, 32>}, {pipeline_mode = #tpu.pipeline_mode<synchronous>, transform_indices = @transform_31, window_bounds = array<i64: 4, 32>}]} {
    %c0 = arith.constant 0 : index
    %c0_0 = arith.constant 0 : index
    %0 = vector.load %arg29[%c0, %c0_0] : memref<1x32xf32, #tpu.memory_space<vmem>>, vector<1x32xf32>
    %c0_1 = arith.constant 0 : index
    %c0_2 = arith.constant 0 : index
    %1 = vector.load %arg30[%c0_1, %c0_2] : memref<1x32xf32, #tpu.memory_space<vmem>>, vector<1x32xf32>
    %c0_3 = arith.constant 0 : index
    %c0_4 = arith.constant 0 : index
    %2 = vector.load %arg31[%c0_3, %c0_4] : memref<32x32xbf16, #tpu.memory_space<vmem>>, vector<32x32xbf16>
    %c0_5 = arith.constant 0 : index
    %c0_6 = arith.constant 0 : index
    %c0_7 = arith.constant 0 : index
    %3 = vector.load %arg1[%c0_5, %c0_6, %c0_7] : memref<4x8x32xf32, #tpu.memory_space<vmem>>, vector<4x8x32xf32>
    %c0_8 = arith.constant 0 : index
    %c0_9 = arith.constant 0 : index
    %4 = vector.load %arg2[%c0_8, %c0_9] : memref<8x32xf32, #tpu.memory_space<vmem>>, vector<8x32xf32>
    %5 = vector.shape_cast %4 : vector<8x32xf32> to vector<1x8x32xf32>
    %6 = vector.broadcast %5 : vector<1x8x32xf32> to vector<4x8x32xf32>
    %7 = arith.addf %3, %6 : vector<4x8x32xf32>
    %8 = tpu.iota {dimensions = array<i32: 0>} : vector<8x8xi32>
    %9 = tpu.iota {dimensions = array<i32: 1>} : vector<8x8xi32>
    %10 = arith.cmpi sge, %8, %9 : vector<8x8xi32>
    %11 = vector.shape_cast %10 : vector<8x8xi1> to vector<1x8x8xi1>
    %12 = tpu.iota {dimensions = array<i32: 0>} : vector<8x1xi32>
    %c1_i32 = arith.constant 1 : i32
    %13 = vector.broadcast %c1_i32 : i32 to vector<8x1xi32>
    %14 = arith.cmpi sge, %12, %13 : vector<8x1xi32>
    %c3_i32 = arith.constant 3 : i32
    %15 = vector.broadcast %c3_i32 : i32 to vector<8x1xi32>
    %16 = arith.cmpi slt, %12, %15 : vector<8x1xi32>
    %17 = arith.andi %14, %16 : vector<8x1xi1>
    %18 = vector.shape_cast %17 : vector<8x1xi1> to vector<1x8x1xi1>
    %c0_10 = arith.constant 0 : index
    %c0_11 = arith.constant 0 : index
    %19 = vector.load %arg5[%c0_10, %c0_11] : memref<1x32xf32, #tpu.memory_space<vmem>>, vector<1x32xf32>
    %c0_12 = arith.constant 0 : index
    %c0_13 = arith.constant 0 : index
    %20 = vector.load %arg6[%c0_12, %c0_13] : memref<1x32xf32, #tpu.memory_space<vmem>>, vector<1x32xf32>
    %c0_14 = arith.constant 0 : index
    %c0_15 = arith.constant 0 : index
    %21 = vector.load %arg7[%c0_14, %c0_15] : memref<32x96xbf16, #tpu.memory_space<vmem>>, vector<32x96xbf16>
    %c0_16 = arith.constant 0 : index
    %c0_17 = arith.constant 0 : index
    %22 = vector.load %arg8[%c0_16, %c0_17] : memref<1x96xf32, #tpu.memory_space<vmem>>, vector<1x96xf32>
    %c0_18 = arith.constant 0 : index
    %c0_19 = arith.constant 0 : index
    %23 = vector.load %arg9[%c0_18, %c0_19] : memref<32x32xbf16, #tpu.memory_space<vmem>>, vector<32x32xbf16>
    %c0_20 = arith.constant 0 : index
    %c0_21 = arith.constant 0 : index
    %24 = vector.load %arg10[%c0_20, %c0_21] : memref<1x32xf32, #tpu.memory_space<vmem>>, vector<1x32xf32>
    %c0_22 = arith.constant 0 : index
    %c0_23 = arith.constant 0 : index
    %25 = vector.load %arg11[%c0_22, %c0_23] : memref<1x32xf32, #tpu.memory_space<vmem>>, vector<1x32xf32>
    %c0_24 = arith.constant 0 : index
    %c0_25 = arith.constant 0 : index
    %26 = vector.load %arg12[%c0_24, %c0_25] : memref<1x32xf32, #tpu.memory_space<vmem>>, vector<1x32xf32>
    %c0_26 = arith.constant 0 : index
    %c0_27 = arith.constant 0 : index
    %27 = vector.load %arg13[%c0_26, %c0_27] : memref<32x128xbf16, #tpu.memory_space<vmem>>, vector<32x128xbf16>
    %c0_28 = arith.constant 0 : index
    %c0_29 = arith.constant 0 : index
    %28 = vector.load %arg14[%c0_28, %c0_29] : memref<1x128xf32, #tpu.memory_space<vmem>>, vector<1x128xf32>
    %c0_30 = arith.constant 0 : index
    %c0_31 = arith.constant 0 : index
    %29 = vector.load %arg15[%c0_30, %c0_31] : memref<128x32xbf16, #tpu.memory_space<vmem>>, vector<128x32xbf16>
    %c0_32 = arith.constant 0 : index
    %c0_33 = arith.constant 0 : index
    %30 = vector.load %arg16[%c0_32, %c0_33] : memref<1x32xf32, #tpu.memory_space<vmem>>, vector<1x32xf32>
    %31 = vector.shape_cast %7 : vector<4x8x32xf32> to vector<32x32xf32>
    %cst = arith.constant dense<0.000000e+00> : vector<32xf32>
    %32 = vector.multi_reduction <add>, %31, %cst [1] : vector<32x32xf32> to vector<32xf32>
    %33 = vector.shape_cast %32 : vector<32xf32> to vector<32x1xf32>
    %cst_34 = arith.constant 3.200000e+01 : f32
    %34 = vector.broadcast %cst_34 : f32 to vector<32x1xf32>
    %35 = arith.divf %33, %34 : vector<32x1xf32>
    %36 = vector.broadcast %35 : vector<32x1xf32> to vector<32x32xf32>
    %37 = arith.subf %31, %36 : vector<32x32xf32>
    %38 = arith.mulf %37, %37 : vector<32x32xf32>
    %cst_35 = arith.constant dense<0.000000e+00> : vector<32xf32>
    %39 = vector.multi_reduction <add>, %38, %cst_35 [1] : vector<32x32xf32> to vector<32xf32>
    %40 = vector.shape_cast %39 : vector<32xf32> to vector<32x1xf32>
    %cst_36 = arith.constant 3.200000e+01 : f32
    %41 = vector.broadcast %cst_36 : f32 to vector<32x1xf32>
    %42 = arith.divf %40, %41 : vector<32x1xf32>
    %43 = vector.broadcast %35 : vector<32x1xf32> to vector<32x32xf32>
    %44 = arith.subf %31, %43 : vector<32x32xf32>
    %cst_37 = arith.constant 9.99999974E-6 : f32
    %45 = vector.broadcast %cst_37 : f32 to vector<32x1xf32>
    %46 = arith.addf %42, %45 : vector<32x1xf32>
    %47 = math.rsqrt %46 : vector<32x1xf32>
    %48 = vector.broadcast %47 : vector<32x1xf32> to vector<32x32xf32>
    %49 = arith.mulf %44, %48 : vector<32x32xf32>
    %50 = vector.broadcast %19 : vector<1x32xf32> to vector<32x32xf32>
    %51 = arith.mulf %49, %50 : vector<32x32xf32>
    %52 = vector.broadcast %20 : vector<1x32xf32> to vector<32x32xf32>
    %53 = arith.addf %51, %52 : vector<32x32xf32>
    %54 = arith.truncf %53 : vector<32x32xf32> to vector<32x32xbf16>
    %cst_38 = arith.constant dense<0.000000e+00> : vector<32x96xf32>
    %55 = tpu.matmul %54, %21, %cst_38 {dimension_numbers = #tpu.dot_dimension_numbers<[1], [0], [0], [1], [0, 0, 1, 1], [], []>} : vector<32x32xbf16>, vector<32x96xbf16>, vector<32x96xf32> -> vector<32x96xf32>
    %56 = vector.broadcast %22 : vector<1x96xf32> to vector<32x96xf32>
    %57 = arith.addf %55, %56 : vector<32x96xf32>
    %58 = vector.extract_strided_slice %57 {offsets = [0, 0], sizes = [32, 32], strides = [1, 1]} : vector<32x96xf32> to vector<32x32xf32>
    %59 = vector.shape_cast %58 : vector<32x32xf32> to vector<4x8x32xf32>
    %60 = vector.extract_strided_slice %57 {offsets = [0, 32], sizes = [32, 32], strides = [1, 1]} : vector<32x96xf32> to vector<32x32xf32>
    %61 = vector.shape_cast %60 : vector<32x32xf32> to vector<4x8x32xf32>
    %62 = vector.extract_strided_slice %57 {offsets = [0, 64], sizes = [32, 32], strides = [1, 1]} : vector<32x96xf32> to vector<32x32xf32>
    %63 = vector.shape_cast %62 : vector<32x32xf32> to vector<4x8x32xf32>
    %cst_39 = arith.constant 0.000000e+00 : f32
    %64 = vector.broadcast %cst_39 : f32 to vector<32x32xf32>
    %65 = vector.extract_strided_slice %59 {offsets = [0, 0, 0], sizes = [4, 8, 8], strides = [1, 1, 1]} : vector<4x8x32xf32> to vector<4x8x8xf32>
    %66 = arith.truncf %65 : vector<4x8x8xf32> to vector<4x8x8xbf16>
    %67 = vector.extract_strided_slice %61 {offsets = [0, 0, 0], sizes = [4, 8, 8], strides = [1, 1, 1]} : vector<4x8x32xf32> to vector<4x8x8xf32>
    %68 = arith.truncf %67 : vector<4x8x8xf32> to vector<4x8x8xbf16>
    %69 = vector.extract_strided_slice %63 {offsets = [0, 0, 0], sizes = [4, 8, 8], strides = [1, 1, 1]} : vector<4x8x32xf32> to vector<4x8x8xf32>
    %70 = arith.truncf %69 : vector<4x8x8xf32> to vector<4x8x8xbf16>
    "tpu.trace_start"() <{level = 10 : i32, message = "nqd,nkd->nqk"}> : () -> ()
    %cst_40 = arith.constant dense<0.000000e+00> : vector<4x8x8xf32>
    %71 = tpu.matmul %66, %68, %cst_40 {dimension_numbers = #tpu.dot_dimension_numbers<[2], [2], [1], [1], [0, 0, 0, 1, 1, 1], [0], [0]>} : vector<4x8x8xbf16>, vector<4x8x8xbf16>, vector<4x8x8xf32> -> vector<4x8x8xf32>
    "tpu.trace_stop"() : () -> ()
    %cst_41 = arith.constant 0.353553385 : f32
    %72 = vector.broadcast %cst_41 : f32 to vector<4x8x8xf32>
    %73 = arith.mulf %71, %72 : vector<4x8x8xf32>
    %cst_42 = arith.constant -1.000000e+30 : f32
    %74 = vector.shape_cast %11 : vector<1x8x8xi1> to vector<1x8x8xi1>
    %75 = vector.broadcast %74 : vector<1x8x8xi1> to vector<4x8x8xi1>
    %76 = vector.broadcast %cst_42 : f32 to vector<4x8x8xf32>
    %77 = arith.select %75, %73, %76 : vector<4x8x8xi1>, vector<4x8x8xf32>
    %cst_43 = arith.constant dense<0xFF800000> : vector<4x8xf32>
    %78 = vector.multi_reduction <maximumf>, %77, %cst_43 [2] : vector<4x8x8xf32> to vector<4x8xf32>
    %79 = vector.shape_cast %78 : vector<4x8xf32> to vector<4x8x1xf32>
    %80 = vector.broadcast %79 : vector<4x8x1xf32> to vector<4x8x8xf32>
    %81 = arith.subf %77, %80 : vector<4x8x8xf32>
    %82 = math.exp %81 : vector<4x8x8xf32>
    %cst_44 = arith.constant dense<0.000000e+00> : vector<4x8xf32>
    %83 = vector.multi_reduction <add>, %82, %cst_44 [2] : vector<4x8x8xf32> to vector<4x8xf32>
    %84 = vector.shape_cast %83 : vector<4x8xf32> to vector<4x8x1xf32>
    %85 = tpu.reciprocal %84 {approx = true} : vector<4x8x1xf32> -> vector<4x8x1xf32>
    %86 = vector.broadcast %85 : vector<4x8x1xf32> to vector<4x8x8xf32>
    %87 = arith.mulf %82, %86 : vector<4x8x8xf32>
    %88 = arith.truncf %87 : vector<4x8x8xf32> to vector<4x8x8xbf16>
    "tpu.trace_start"() <{level = 10 : i32, message = "nqk,nkd->nqd"}> : () -> ()
    %cst_45 = arith.constant dense<0.000000e+00> : vector<4x8x8xf32>
    %89 = tpu.matmul %88, %70, %cst_45 {dimension_numbers = #tpu.dot_dimension_numbers<[2], [1], [1], [2], [0, 0, 0, 1, 1, 2], [0], [0]>} : vector<4x8x8xbf16>, vector<4x8x8xbf16>, vector<4x8x8xf32> -> vector<4x8x8xf32>
    "tpu.trace_stop"() : () -> ()
    %90 = vector.shape_cast %89 : vector<4x8x8xf32> to vector<32x8xf32>
    %91 = vector.extract_strided_slice %23 {offsets = [0, 0], sizes = [8, 32], strides = [1, 1]} : vector<32x32xbf16> to vector<8x32xbf16>
    %92 = arith.truncf %90 : vector<32x8xf32> to vector<32x8xbf16>
    %cst_46 = arith.constant dense<0.000000e+00> : vector<32x32xf32>
    %93 = tpu.matmul %92, %91, %cst_46 {dimension_numbers = #tpu.dot_dimension_numbers<[1], [0], [0], [1], [0, 0, 1, 1], [], []>} : vector<32x8xbf16>, vector<8x32xbf16>, vector<32x32xf32> -> vector<32x32xf32>
    %94 = arith.addf %64, %93 : vector<32x32xf32>
    %95 = vector.extract_strided_slice %59 {offsets = [0, 0, 8], sizes = [4, 8, 8], strides = [1, 1, 1]} : vector<4x8x32xf32> to vector<4x8x8xf32>
    %96 = arith.truncf %95 : vector<4x8x8xf32> to vector<4x8x8xbf16>
    %97 = vector.extract_strided_slice %61 {offsets = [0, 0, 8], sizes = [4, 8, 8], strides = [1, 1, 1]} : vector<4x8x32xf32> to vector<4x8x8xf32>
    %98 = arith.truncf %97 : vector<4x8x8xf32> to vector<4x8x8xbf16>
    %99 = vector.extract_strided_slice %63 {offsets = [0, 0, 8], sizes = [4, 8, 8], strides = [1, 1, 1]} : vector<4x8x32xf32> to vector<4x8x8xf32>
    %100 = arith.truncf %99 : vector<4x8x8xf32> to vector<4x8x8xbf16>
    "tpu.trace_start"() <{level = 10 : i32, message = "nqd,nkd->nqk"}> : () -> ()
    %cst_47 = arith.constant dense<0.000000e+00> : vector<4x8x8xf32>
    %101 = tpu.matmul %96, %98, %cst_47 {dimension_numbers = #tpu.dot_dimension_numbers<[2], [2], [1], [1], [0, 0, 0, 1, 1, 1], [0], [0]>} : vector<4x8x8xbf16>, vector<4x8x8xbf16>, vector<4x8x8xf32> -> vector<4x8x8xf32>
    "tpu.trace_stop"() : () -> ()
    %cst_48 = arith.constant 0.353553385 : f32
    %102 = vector.broadcast %cst_48 : f32 to vector<4x8x8xf32>
    %103 = arith.mulf %101, %102 : vector<4x8x8xf32>
    %cst_49 = arith.constant -1.000000e+30 : f32
    %104 = vector.shape_cast %11 : vector<1x8x8xi1> to vector<1x8x8xi1>
    %105 = vector.broadcast %104 : vector<1x8x8xi1> to vector<4x8x8xi1>
    %106 = vector.broadcast %cst_49 : f32 to vector<4x8x8xf32>
    %107 = arith.select %105, %103, %106 : vector<4x8x8xi1>, vector<4x8x8xf32>
    %cst_50 = arith.constant dense<0xFF800000> : vector<4x8xf32>
    %108 = vector.multi_reduction <maximumf>, %107, %cst_50 [2] : vector<4x8x8xf32> to vector<4x8xf32>
    %109 = vector.shape_cast %108 : vector<4x8xf32> to vector<4x8x1xf32>
    %110 = vector.broadcast %109 : vector<4x8x1xf32> to vector<4x8x8xf32>
    %111 = arith.subf %107, %110 : vector<4x8x8xf32>
    %112 = math.exp %111 : vector<4x8x8xf32>
    %cst_51 = arith.constant dense<0.000000e+00> : vector<4x8xf32>
    %113 = vector.multi_reduction <add>, %112, %cst_51 [2] : vector<4x8x8xf32> to vector<4x8xf32>
    %114 = vector.shape_cast %113 : vector<4x8xf32> to vector<4x8x1xf32>
    %115 = tpu.reciprocal %114 {approx = true} : vector<4x8x1xf32> -> vector<4x8x1xf32>
    %116 = vector.broadcast %115 : vector<4x8x1xf32> to vector<4x8x8xf32>
    %117 = arith.mulf %112, %116 : vector<4x8x8xf32>
    %118 = arith.truncf %117 : vector<4x8x8xf32> to vector<4x8x8xbf16>
    "tpu.trace_start"() <{level = 10 : i32, message = "nqk,nkd->nqd"}> : () -> ()
    %cst_52 = arith.constant dense<0.000000e+00> : vector<4x8x8xf32>
    %119 = tpu.matmul %118, %100, %cst_52 {dimension_numbers = #tpu.dot_dimension_numbers<[2], [1], [1], [2], [0, 0, 0, 1, 1, 2], [0], [0]>} : vector<4x8x8xbf16>, vector<4x8x8xbf16>, vector<4x8x8xf32> -> vector<4x8x8xf32>
    "tpu.trace_stop"() : () -> ()
    %120 = vector.shape_cast %119 : vector<4x8x8xf32> to vector<32x8xf32>
    %121 = vector.extract_strided_slice %23 {offsets = [8, 0], sizes = [8, 32], strides = [1, 1]} : vector<32x32xbf16> to vector<8x32xbf16>
    %122 = arith.truncf %120 : vector<32x8xf32> to vector<32x8xbf16>
    %cst_53 = arith.constant dense<0.000000e+00> : vector<32x32xf32>
    %123 = tpu.matmul %122, %121, %cst_53 {dimension_numbers = #tpu.dot_dimension_numbers<[1], [0], [0], [1], [0, 0, 1, 1], [], []>} : vector<32x8xbf16>, vector<8x32xbf16>, vector<32x32xf32> -> vector<32x32xf32>
    %124 = arith.addf %94, %123 : vector<32x32xf32>
    %125 = vector.extract_strided_slice %59 {offsets = [0, 0, 16], sizes = [4, 8, 8], strides = [1, 1, 1]} : vector<4x8x32xf32> to vector<4x8x8xf32>
    %126 = arith.truncf %125 : vector<4x8x8xf32> to vector<4x8x8xbf16>
    %127 = vector.extract_strided_slice %61 {offsets = [0, 0, 16], sizes = [4, 8, 8], strides = [1, 1, 1]} : vector<4x8x32xf32> to vector<4x8x8xf32>
    %128 = arith.truncf %127 : vector<4x8x8xf32> to vector<4x8x8xbf16>
    %129 = vector.extract_strided_slice %63 {offsets = [0, 0, 16], sizes = [4, 8, 8], strides = [1, 1, 1]} : vector<4x8x32xf32> to vector<4x8x8xf32>
    %130 = arith.truncf %129 : vector<4x8x8xf32> to vector<4x8x8xbf16>
    "tpu.trace_start"() <{level = 10 : i32, message = "nqd,nkd->nqk"}> : () -> ()
    %cst_54 = arith.constant dense<0.000000e+00> : vector<4x8x8xf32>
    %131 = tpu.matmul %126, %128, %cst_54 {dimension_numbers = #tpu.dot_dimension_numbers<[2], [2], [1], [1], [0, 0, 0, 1, 1, 1], [0], [0]>} : vector<4x8x8xbf16>, vector<4x8x8xbf16>, vector<4x8x8xf32> -> vector<4x8x8xf32>
    "tpu.trace_stop"() : () -> ()
    %cst_55 = arith.constant 0.353553385 : f32
    %132 = vector.broadcast %cst_55 : f32 to vector<4x8x8xf32>
    %133 = arith.mulf %131, %132 : vector<4x8x8xf32>
    %cst_56 = arith.constant -1.000000e+30 : f32
    %134 = vector.shape_cast %11 : vector<1x8x8xi1> to vector<1x8x8xi1>
    %135 = vector.broadcast %134 : vector<1x8x8xi1> to vector<4x8x8xi1>
    %136 = vector.broadcast %cst_56 : f32 to vector<4x8x8xf32>
    %137 = arith.select %135, %133, %136 : vector<4x8x8xi1>, vector<4x8x8xf32>
    %cst_57 = arith.constant dense<0xFF800000> : vector<4x8xf32>
    %138 = vector.multi_reduction <maximumf>, %137, %cst_57 [2] : vector<4x8x8xf32> to vector<4x8xf32>
    %139 = vector.shape_cast %138 : vector<4x8xf32> to vector<4x8x1xf32>
    %140 = vector.broadcast %139 : vector<4x8x1xf32> to vector<4x8x8xf32>
    %141 = arith.subf %137, %140 : vector<4x8x8xf32>
    %142 = math.exp %141 : vector<4x8x8xf32>
    %cst_58 = arith.constant dense<0.000000e+00> : vector<4x8xf32>
    %143 = vector.multi_reduction <add>, %142, %cst_58 [2] : vector<4x8x8xf32> to vector<4x8xf32>
    %144 = vector.shape_cast %143 : vector<4x8xf32> to vector<4x8x1xf32>
    %145 = tpu.reciprocal %144 {approx = true} : vector<4x8x1xf32> -> vector<4x8x1xf32>
    %146 = vector.broadcast %145 : vector<4x8x1xf32> to vector<4x8x8xf32>
    %147 = arith.mulf %142, %146 : vector<4x8x8xf32>
    %148 = arith.truncf %147 : vector<4x8x8xf32> to vector<4x8x8xbf16>
    "tpu.trace_start"() <{level = 10 : i32, message = "nqk,nkd->nqd"}> : () -> ()
    %cst_59 = arith.constant dense<0.000000e+00> : vector<4x8x8xf32>
    %149 = tpu.matmul %148, %130, %cst_59 {dimension_numbers = #tpu.dot_dimension_numbers<[2], [1], [1], [2], [0, 0, 0, 1, 1, 2], [0], [0]>} : vector<4x8x8xbf16>, vector<4x8x8xbf16>, vector<4x8x8xf32> -> vector<4x8x8xf32>
    "tpu.trace_stop"() : () -> ()
    %150 = vector.shape_cast %149 : vector<4x8x8xf32> to vector<32x8xf32>
    %151 = vector.extract_strided_slice %23 {offsets = [16, 0], sizes = [8, 32], strides = [1, 1]} : vector<32x32xbf16> to vector<8x32xbf16>
    %152 = arith.truncf %150 : vector<32x8xf32> to vector<32x8xbf16>
    %cst_60 = arith.constant dense<0.000000e+00> : vector<32x32xf32>
    %153 = tpu.matmul %152, %151, %cst_60 {dimension_numbers = #tpu.dot_dimension_numbers<[1], [0], [0], [1], [0, 0, 1, 1], [], []>} : vector<32x8xbf16>, vector<8x32xbf16>, vector<32x32xf32> -> vector<32x32xf32>
    %154 = arith.addf %124, %153 : vector<32x32xf32>
    %155 = vector.extract_strided_slice %59 {offsets = [0, 0, 24], sizes = [4, 8, 8], strides = [1, 1, 1]} : vector<4x8x32xf32> to vector<4x8x8xf32>
    %156 = arith.truncf %155 : vector<4x8x8xf32> to vector<4x8x8xbf16>
    %157 = vector.extract_strided_slice %61 {offsets = [0, 0, 24], sizes = [4, 8, 8], strides = [1, 1, 1]} : vector<4x8x32xf32> to vector<4x8x8xf32>
    %158 = arith.truncf %157 : vector<4x8x8xf32> to vector<4x8x8xbf16>
    %159 = vector.extract_strided_slice %63 {offsets = [0, 0, 24], sizes = [4, 8, 8], strides = [1, 1, 1]} : vector<4x8x32xf32> to vector<4x8x8xf32>
    %160 = arith.truncf %159 : vector<4x8x8xf32> to vector<4x8x8xbf16>
    "tpu.trace_start"() <{level = 10 : i32, message = "nqd,nkd->nqk"}> : () -> ()
    %cst_61 = arith.constant dense<0.000000e+00> : vector<4x8x8xf32>
    %161 = tpu.matmul %156, %158, %cst_61 {dimension_numbers = #tpu.dot_dimension_numbers<[2], [2], [1], [1], [0, 0, 0, 1, 1, 1], [0], [0]>} : vector<4x8x8xbf16>, vector<4x8x8xbf16>, vector<4x8x8xf32> -> vector<4x8x8xf32>
    "tpu.trace_stop"() : () -> ()
    %cst_62 = arith.constant 0.353553385 : f32
    %162 = vector.broadcast %cst_62 : f32 to vector<4x8x8xf32>
    %163 = arith.mulf %161, %162 : vector<4x8x8xf32>
    %cst_63 = arith.constant -1.000000e+30 : f32
    %164 = vector.shape_cast %11 : vector<1x8x8xi1> to vector<1x8x8xi1>
    %165 = vector.broadcast %164 : vector<1x8x8xi1> to vector<4x8x8xi1>
    %166 = vector.broadcast %cst_63 : f32 to vector<4x8x8xf32>
    %167 = arith.select %165, %163, %166 : vector<4x8x8xi1>, vector<4x8x8xf32>
    %cst_64 = arith.constant dense<0xFF800000> : vector<4x8xf32>
    %168 = vector.multi_reduction <maximumf>, %167, %cst_64 [2] : vector<4x8x8xf32> to vector<4x8xf32>
    %169 = vector.shape_cast %168 : vector<4x8xf32> to vector<4x8x1xf32>
    %170 = vector.broadcast %169 : vector<4x8x1xf32> to vector<4x8x8xf32>
    %171 = arith.subf %167, %170 : vector<4x8x8xf32>
    %172 = math.exp %171 : vector<4x8x8xf32>
    %cst_65 = arith.constant dense<0.000000e+00> : vector<4x8xf32>
    %173 = vector.multi_reduction <add>, %172, %cst_65 [2] : vector<4x8x8xf32> to vector<4x8xf32>
    %174 = vector.shape_cast %173 : vector<4x8xf32> to vector<4x8x1xf32>
    %175 = tpu.reciprocal %174 {approx = true} : vector<4x8x1xf32> -> vector<4x8x1xf32>
    %176 = vector.broadcast %175 : vector<4x8x1xf32> to vector<4x8x8xf32>
    %177 = arith.mulf %172, %176 : vector<4x8x8xf32>
    %178 = arith.truncf %177 : vector<4x8x8xf32> to vector<4x8x8xbf16>
    "tpu.trace_start"() <{level = 10 : i32, message = "nqk,nkd->nqd"}> : () -> ()
    %cst_66 = arith.constant dense<0.000000e+00> : vector<4x8x8xf32>
    %179 = tpu.matmul %178, %160, %cst_66 {dimension_numbers = #tpu.dot_dimension_numbers<[2], [1], [1], [2], [0, 0, 0, 1, 1, 2], [0], [0]>} : vector<4x8x8xbf16>, vector<4x8x8xbf16>, vector<4x8x8xf32> -> vector<4x8x8xf32>
    "tpu.trace_stop"() : () -> ()
    %180 = vector.shape_cast %179 : vector<4x8x8xf32> to vector<32x8xf32>
    %181 = vector.extract_strided_slice %23 {offsets = [24, 0], sizes = [8, 32], strides = [1, 1]} : vector<32x32xbf16> to vector<8x32xbf16>
    %182 = arith.truncf %180 : vector<32x8xf32> to vector<32x8xbf16>
    %cst_67 = arith.constant dense<0.000000e+00> : vector<32x32xf32>
    %183 = tpu.matmul %182, %181, %cst_67 {dimension_numbers = #tpu.dot_dimension_numbers<[1], [0], [0], [1], [0, 0, 1, 1], [], []>} : vector<32x8xbf16>, vector<8x32xbf16>, vector<32x32xf32> -> vector<32x32xf32>
    %184 = arith.addf %154, %183 : vector<32x32xf32>
    %185 = vector.broadcast %24 : vector<1x32xf32> to vector<32x32xf32>
    %186 = arith.addf %184, %185 : vector<32x32xf32>
    %187 = vector.shape_cast %186 : vector<32x32xf32> to vector<4x8x32xf32>
    %188 = arith.addf %7, %187 : vector<4x8x32xf32>
    %189 = vector.shape_cast %188 : vector<4x8x32xf32> to vector<32x32xf32>
    %cst_68 = arith.constant dense<0.000000e+00> : vector<32xf32>
    %190 = vector.multi_reduction <add>, %189, %cst_68 [1] : vector<32x32xf32> to vector<32xf32>
    %191 = vector.shape_cast %190 : vector<32xf32> to vector<32x1xf32>
    %cst_69 = arith.constant 3.200000e+01 : f32
    %192 = vector.broadcast %cst_69 : f32 to vector<32x1xf32>
    %193 = arith.divf %191, %192 : vector<32x1xf32>
    %194 = vector.broadcast %193 : vector<32x1xf32> to vector<32x32xf32>
    %195 = arith.subf %189, %194 : vector<32x32xf32>
    %196 = arith.mulf %195, %195 : vector<32x32xf32>
    %cst_70 = arith.constant dense<0.000000e+00> : vector<32xf32>
    %197 = vector.multi_reduction <add>, %196, %cst_70 [1] : vector<32x32xf32> to vector<32xf32>
    %198 = vector.shape_cast %197 : vector<32xf32> to vector<32x1xf32>
    %cst_71 = arith.constant 3.200000e+01 : f32
    %199 = vector.broadcast %cst_71 : f32 to vector<32x1xf32>
    %200 = arith.divf %198, %199 : vector<32x1xf32>
    %201 = vector.broadcast %193 : vector<32x1xf32> to vector<32x32xf32>
    %202 = arith.subf %189, %201 : vector<32x32xf32>
    %cst_72 = arith.constant 9.99999974E-6 : f32
    %203 = vector.broadcast %cst_72 : f32 to vector<32x1xf32>
    %204 = arith.addf %200, %203 : vector<32x1xf32>
    %205 = math.rsqrt %204 : vector<32x1xf32>
    %206 = vector.broadcast %205 : vector<32x1xf32> to vector<32x32xf32>
    %207 = arith.mulf %202, %206 : vector<32x32xf32>
    %208 = vector.broadcast %25 : vector<1x32xf32> to vector<32x32xf32>
    %209 = arith.mulf %207, %208 : vector<32x32xf32>
    %210 = vector.broadcast %26 : vector<1x32xf32> to vector<32x32xf32>
    %211 = arith.addf %209, %210 : vector<32x32xf32>
    %212 = arith.truncf %211 : vector<32x32xf32> to vector<32x32xbf16>
    %cst_73 = arith.constant dense<0.000000e+00> : vector<32x128xf32>
    %213 = tpu.matmul %212, %27, %cst_73 {dimension_numbers = #tpu.dot_dimension_numbers<[1], [0], [0], [1], [0, 0, 1, 1], [], []>} : vector<32x32xbf16>, vector<32x128xbf16>, vector<32x128xf32> -> vector<32x128xf32>
    %214 = vector.broadcast %28 : vector<1x128xf32> to vector<32x128xf32>
    %215 = arith.addf %213, %214 : vector<32x128xf32>
    %cst_74 = arith.constant 1.702000e+00 : f32
    %216 = vector.broadcast %cst_74 : f32 to vector<32x128xf32>
    %217 = arith.mulf %216, %215 : vector<32x128xf32>
    %218 = arith.negf %217 : vector<32x128xf32>
    %219 = math.exp %218 : vector<32x128xf32>
    %cst_75 = arith.constant 1.000000e+00 : f32
    %220 = vector.broadcast %cst_75 : f32 to vector<32x128xf32>
    %221 = arith.addf %220, %219 : vector<32x128xf32>
    %222 = arith.divf %220, %221 : vector<32x128xf32>
    %223 = arith.mulf %215, %222 : vector<32x128xf32>
    %224 = arith.truncf %223 : vector<32x128xf32> to vector<32x128xbf16>
    %cst_76 = arith.constant dense<0.000000e+00> : vector<32x32xf32>
    %225 = tpu.matmul %224, %29, %cst_76 {dimension_numbers = #tpu.dot_dimension_numbers<[1], [0], [0], [1], [0, 0, 1, 1], [], []>} : vector<32x128xbf16>, vector<128x32xbf16>, vector<32x32xf32> -> vector<32x32xf32>
    %226 = vector.broadcast %30 : vector<1x32xf32> to vector<32x32xf32>
    %227 = arith.addf %225, %226 : vector<32x32xf32>
    %228 = vector.shape_cast %227 : vector<32x32xf32> to vector<4x8x32xf32>
    %229 = arith.addf %188, %228 : vector<4x8x32xf32>
    %c0_77 = arith.constant 0 : index
    %c0_78 = arith.constant 0 : index
    %230 = vector.load %arg17[%c0_77, %c0_78] : memref<1x32xf32, #tpu.memory_space<vmem>>, vector<1x32xf32>
    %c0_79 = arith.constant 0 : index
    %c0_80 = arith.constant 0 : index
    %231 = vector.load %arg18[%c0_79, %c0_80] : memref<1x32xf32, #tpu.memory_space<vmem>>, vector<1x32xf32>
    %c0_81 = arith.constant 0 : index
    %c0_82 = arith.constant 0 : index
    %232 = vector.load %arg19[%c0_81, %c0_82] : memref<32x96xbf16, #tpu.memory_space<vmem>>, vector<32x96xbf16>
    %c0_83 = arith.constant 0 : index
    %c0_84 = arith.constant 0 : index
    %233 = vector.load %arg20[%c0_83, %c0_84] : memref<1x96xf32, #tpu.memory_space<vmem>>, vector<1x96xf32>
    %c0_85 = arith.constant 0 : index
    %c0_86 = arith.constant 0 : index
    %234 = vector.load %arg21[%c0_85, %c0_86] : memref<32x32xbf16, #tpu.memory_space<vmem>>, vector<32x32xbf16>
    %c0_87 = arith.constant 0 : index
    %c0_88 = arith.constant 0 : index
    %235 = vector.load %arg22[%c0_87, %c0_88] : memref<1x32xf32, #tpu.memory_space<vmem>>, vector<1x32xf32>
    %c0_89 = arith.constant 0 : index
    %c0_90 = arith.constant 0 : index
    %236 = vector.load %arg23[%c0_89, %c0_90] : memref<1x32xf32, #tpu.memory_space<vmem>>, vector<1x32xf32>
    %c0_91 = arith.constant 0 : index
    %c0_92 = arith.constant 0 : index
    %237 = vector.load %arg24[%c0_91, %c0_92] : memref<1x32xf32, #tpu.memory_space<vmem>>, vector<1x32xf32>
    %c0_93 = arith.constant 0 : index
    %c0_94 = arith.constant 0 : index
    %238 = vector.load %arg25[%c0_93, %c0_94] : memref<32x128xbf16, #tpu.memory_space<vmem>>, vector<32x128xbf16>
    %c0_95 = arith.constant 0 : index
    %c0_96 = arith.constant 0 : index
    %239 = vector.load %arg26[%c0_95, %c0_96] : memref<1x128xf32, #tpu.memory_space<vmem>>, vector<1x128xf32>
    %c0_97 = arith.constant 0 : index
    %c0_98 = arith.constant 0 : index
    %240 = vector.load %arg27[%c0_97, %c0_98] : memref<128x32xbf16, #tpu.memory_space<vmem>>, vector<128x32xbf16>
    %c0_99 = arith.constant 0 : index
    %c0_100 = arith.constant 0 : index
    %241 = vector.load %arg28[%c0_99, %c0_100] : memref<1x32xf32, #tpu.memory_space<vmem>>, vector<1x32xf32>
    %c0_101 = arith.constant 0 : index
    %c0_102 = arith.constant 0 : index
    %242 = vector.load %arg4[%c0_101, %c0_102] : memref<8x32xf32, #tpu.memory_space<vmem>>, vector<8x32xf32>
    %243 = vector.shape_cast %242 : vector<8x32xf32> to vector<1x8x32xf32>
    %244 = vector.shape_cast %18 : vector<1x8x1xi1> to vector<1x8x1xi1>
    %245 = vector.broadcast %244 : vector<1x8x1xi1> to vector<4x8x32xi1>
    %246 = vector.shape_cast %243 : vector<1x8x32xf32> to vector<1x8x32xf32>
    %247 = vector.broadcast %246 : vector<1x8x32xf32> to vector<4x8x32xf32>
    %248 = arith.select %245, %247, %229 : vector<4x8x32xi1>, vector<4x8x32xf32>
    %249 = vector.shape_cast %248 : vector<4x8x32xf32> to vector<32x32xf32>
    %cst_103 = arith.constant dense<0.000000e+00> : vector<32xf32>
    %250 = vector.multi_reduction <add>, %249, %cst_103 [1] : vector<32x32xf32> to vector<32xf32>
    %251 = vector.shape_cast %250 : vector<32xf32> to vector<32x1xf32>
    %cst_104 = arith.constant 3.200000e+01 : f32
    %252 = vector.broadcast %cst_104 : f32 to vector<32x1xf32>
    %253 = arith.divf %251, %252 : vector<32x1xf32>
    %254 = vector.broadcast %253 : vector<32x1xf32> to vector<32x32xf32>
    %255 = arith.subf %249, %254 : vector<32x32xf32>
    %256 = arith.mulf %255, %255 : vector<32x32xf32>
    %cst_105 = arith.constant dense<0.000000e+00> : vector<32xf32>
    %257 = vector.multi_reduction <add>, %256, %cst_105 [1] : vector<32x32xf32> to vector<32xf32>
    %258 = vector.shape_cast %257 : vector<32xf32> to vector<32x1xf32>
    %cst_106 = arith.constant 3.200000e+01 : f32
    %259 = vector.broadcast %cst_106 : f32 to vector<32x1xf32>
    %260 = arith.divf %258, %259 : vector<32x1xf32>
    %261 = vector.broadcast %253 : vector<32x1xf32> to vector<32x32xf32>
    %262 = arith.subf %249, %261 : vector<32x32xf32>
    %cst_107 = arith.constant 9.99999974E-6 : f32
    %263 = vector.broadcast %cst_107 : f32 to vector<32x1xf32>
    %264 = arith.addf %260, %263 : vector<32x1xf32>
    %265 = math.rsqrt %264 : vector<32x1xf32>
    %266 = vector.broadcast %265 : vector<32x1xf32> to vector<32x32xf32>
    %267 = arith.mulf %262, %266 : vector<32x32xf32>
    %268 = vector.broadcast %230 : vector<1x32xf32> to vector<32x32xf32>
    %269 = arith.mulf %267, %268 : vector<32x32xf32>
    %270 = vector.broadcast %231 : vector<1x32xf32> to vector<32x32xf32>
    %271 = arith.addf %269, %270 : vector<32x32xf32>
    %272 = arith.truncf %271 : vector<32x32xf32> to vector<32x32xbf16>
    %cst_108 = arith.constant dense<0.000000e+00> : vector<32x96xf32>
    %273 = tpu.matmul %272, %232, %cst_108 {dimension_numbers = #tpu.dot_dimension_numbers<[1], [0], [0], [1], [0, 0, 1, 1], [], []>} : vector<32x32xbf16>, vector<32x96xbf16>, vector<32x96xf32> -> vector<32x96xf32>
    %274 = vector.broadcast %233 : vector<1x96xf32> to vector<32x96xf32>
    %275 = arith.addf %273, %274 : vector<32x96xf32>
    %276 = vector.extract_strided_slice %275 {offsets = [0, 0], sizes = [32, 32], strides = [1, 1]} : vector<32x96xf32> to vector<32x32xf32>
    %277 = vector.shape_cast %276 : vector<32x32xf32> to vector<4x8x32xf32>
    %278 = vector.extract_strided_slice %275 {offsets = [0, 32], sizes = [32, 32], strides = [1, 1]} : vector<32x96xf32> to vector<32x32xf32>
    %279 = vector.shape_cast %278 : vector<32x32xf32> to vector<4x8x32xf32>
    %280 = vector.extract_strided_slice %275 {offsets = [0, 64], sizes = [32, 32], strides = [1, 1]} : vector<32x96xf32> to vector<32x32xf32>
    %281 = vector.shape_cast %280 : vector<32x32xf32> to vector<4x8x32xf32>
    %cst_109 = arith.constant 0.000000e+00 : f32
    %282 = vector.broadcast %cst_109 : f32 to vector<32x32xf32>
    %283 = vector.extract_strided_slice %277 {offsets = [0, 0, 0], sizes = [4, 8, 8], strides = [1, 1, 1]} : vector<4x8x32xf32> to vector<4x8x8xf32>
    %284 = arith.truncf %283 : vector<4x8x8xf32> to vector<4x8x8xbf16>
    %285 = vector.extract_strided_slice %279 {offsets = [0, 0, 0], sizes = [4, 8, 8], strides = [1, 1, 1]} : vector<4x8x32xf32> to vector<4x8x8xf32>
    %286 = arith.truncf %285 : vector<4x8x8xf32> to vector<4x8x8xbf16>
    %287 = vector.extract_strided_slice %281 {offsets = [0, 0, 0], sizes = [4, 8, 8], strides = [1, 1, 1]} : vector<4x8x32xf32> to vector<4x8x8xf32>
    %288 = arith.truncf %287 : vector<4x8x8xf32> to vector<4x8x8xbf16>
    "tpu.trace_start"() <{level = 10 : i32, message = "nqd,nkd->nqk"}> : () -> ()
    %cst_110 = arith.constant dense<0.000000e+00> : vector<4x8x8xf32>
    %289 = tpu.matmul %284, %286, %cst_110 {dimension_numbers = #tpu.dot_dimension_numbers<[2], [2], [1], [1], [0, 0, 0, 1, 1, 1], [0], [0]>} : vector<4x8x8xbf16>, vector<4x8x8xbf16>, vector<4x8x8xf32> -> vector<4x8x8xf32>
    "tpu.trace_stop"() : () -> ()
    %cst_111 = arith.constant 0.353553385 : f32
    %290 = vector.broadcast %cst_111 : f32 to vector<4x8x8xf32>
    %291 = arith.mulf %289, %290 : vector<4x8x8xf32>
    %cst_112 = arith.constant -1.000000e+30 : f32
    %292 = vector.shape_cast %11 : vector<1x8x8xi1> to vector<1x8x8xi1>
    %293 = vector.broadcast %292 : vector<1x8x8xi1> to vector<4x8x8xi1>
    %294 = vector.broadcast %cst_112 : f32 to vector<4x8x8xf32>
    %295 = arith.select %293, %291, %294 : vector<4x8x8xi1>, vector<4x8x8xf32>
    %cst_113 = arith.constant dense<0xFF800000> : vector<4x8xf32>
    %296 = vector.multi_reduction <maximumf>, %295, %cst_113 [2] : vector<4x8x8xf32> to vector<4x8xf32>
    %297 = vector.shape_cast %296 : vector<4x8xf32> to vector<4x8x1xf32>
    %298 = vector.broadcast %297 : vector<4x8x1xf32> to vector<4x8x8xf32>
    %299 = arith.subf %295, %298 : vector<4x8x8xf32>
    %300 = math.exp %299 : vector<4x8x8xf32>
    %cst_114 = arith.constant dense<0.000000e+00> : vector<4x8xf32>
    %301 = vector.multi_reduction <add>, %300, %cst_114 [2] : vector<4x8x8xf32> to vector<4x8xf32>
    %302 = vector.shape_cast %301 : vector<4x8xf32> to vector<4x8x1xf32>
    %303 = tpu.reciprocal %302 {approx = true} : vector<4x8x1xf32> -> vector<4x8x1xf32>
    %304 = vector.broadcast %303 : vector<4x8x1xf32> to vector<4x8x8xf32>
    %305 = arith.mulf %300, %304 : vector<4x8x8xf32>
    %306 = arith.truncf %305 : vector<4x8x8xf32> to vector<4x8x8xbf16>
    "tpu.trace_start"() <{level = 10 : i32, message = "nqk,nkd->nqd"}> : () -> ()
    %cst_115 = arith.constant dense<0.000000e+00> : vector<4x8x8xf32>
    %307 = tpu.matmul %306, %288, %cst_115 {dimension_numbers = #tpu.dot_dimension_numbers<[2], [1], [1], [2], [0, 0, 0, 1, 1, 2], [0], [0]>} : vector<4x8x8xbf16>, vector<4x8x8xbf16>, vector<4x8x8xf32> -> vector<4x8x8xf32>
    "tpu.trace_stop"() : () -> ()
    %308 = vector.shape_cast %307 : vector<4x8x8xf32> to vector<32x8xf32>
    %309 = vector.extract_strided_slice %234 {offsets = [0, 0], sizes = [8, 32], strides = [1, 1]} : vector<32x32xbf16> to vector<8x32xbf16>
    %310 = arith.truncf %308 : vector<32x8xf32> to vector<32x8xbf16>
    %cst_116 = arith.constant dense<0.000000e+00> : vector<32x32xf32>
    %311 = tpu.matmul %310, %309, %cst_116 {dimension_numbers = #tpu.dot_dimension_numbers<[1], [0], [0], [1], [0, 0, 1, 1], [], []>} : vector<32x8xbf16>, vector<8x32xbf16>, vector<32x32xf32> -> vector<32x32xf32>
    %312 = arith.addf %282, %311 : vector<32x32xf32>
    %313 = vector.extract_strided_slice %277 {offsets = [0, 0, 8], sizes = [4, 8, 8], strides = [1, 1, 1]} : vector<4x8x32xf32> to vector<4x8x8xf32>
    %314 = arith.truncf %313 : vector<4x8x8xf32> to vector<4x8x8xbf16>
    %315 = vector.extract_strided_slice %279 {offsets = [0, 0, 8], sizes = [4, 8, 8], strides = [1, 1, 1]} : vector<4x8x32xf32> to vector<4x8x8xf32>
    %316 = arith.truncf %315 : vector<4x8x8xf32> to vector<4x8x8xbf16>
    %317 = vector.extract_strided_slice %281 {offsets = [0, 0, 8], sizes = [4, 8, 8], strides = [1, 1, 1]} : vector<4x8x32xf32> to vector<4x8x8xf32>
    %318 = arith.truncf %317 : vector<4x8x8xf32> to vector<4x8x8xbf16>
    "tpu.trace_start"() <{level = 10 : i32, message = "nqd,nkd->nqk"}> : () -> ()
    %cst_117 = arith.constant dense<0.000000e+00> : vector<4x8x8xf32>
    %319 = tpu.matmul %314, %316, %cst_117 {dimension_numbers = #tpu.dot_dimension_numbers<[2], [2], [1], [1], [0, 0, 0, 1, 1, 1], [0], [0]>} : vector<4x8x8xbf16>, vector<4x8x8xbf16>, vector<4x8x8xf32> -> vector<4x8x8xf32>
    "tpu.trace_stop"() : () -> ()
    %cst_118 = arith.constant 0.353553385 : f32
    %320 = vector.broadcast %cst_118 : f32 to vector<4x8x8xf32>
    %321 = arith.mulf %319, %320 : vector<4x8x8xf32>
    %cst_119 = arith.constant -1.000000e+30 : f32
    %322 = vector.shape_cast %11 : vector<1x8x8xi1> to vector<1x8x8xi1>
    %323 = vector.broadcast %322 : vector<1x8x8xi1> to vector<4x8x8xi1>
    %324 = vector.broadcast %cst_119 : f32 to vector<4x8x8xf32>
    %325 = arith.select %323, %321, %324 : vector<4x8x8xi1>, vector<4x8x8xf32>
    %cst_120 = arith.constant dense<0xFF800000> : vector<4x8xf32>
    %326 = vector.multi_reduction <maximumf>, %325, %cst_120 [2] : vector<4x8x8xf32> to vector<4x8xf32>
    %327 = vector.shape_cast %326 : vector<4x8xf32> to vector<4x8x1xf32>
    %328 = vector.broadcast %327 : vector<4x8x1xf32> to vector<4x8x8xf32>
    %329 = arith.subf %325, %328 : vector<4x8x8xf32>
    %330 = math.exp %329 : vector<4x8x8xf32>
    %cst_121 = arith.constant dense<0.000000e+00> : vector<4x8xf32>
    %331 = vector.multi_reduction <add>, %330, %cst_121 [2] : vector<4x8x8xf32> to vector<4x8xf32>
    %332 = vector.shape_cast %331 : vector<4x8xf32> to vector<4x8x1xf32>
    %333 = tpu.reciprocal %332 {approx = true} : vector<4x8x1xf32> -> vector<4x8x1xf32>
    %334 = vector.broadcast %333 : vector<4x8x1xf32> to vector<4x8x8xf32>
    %335 = arith.mulf %330, %334 : vector<4x8x8xf32>
    %336 = arith.truncf %335 : vector<4x8x8xf32> to vector<4x8x8xbf16>
    "tpu.trace_start"() <{level = 10 : i32, message = "nqk,nkd->nqd"}> : () -> ()
    %cst_122 = arith.constant dense<0.000000e+00> : vector<4x8x8xf32>
    %337 = tpu.matmul %336, %318, %cst_122 {dimension_numbers = #tpu.dot_dimension_numbers<[2], [1], [1], [2], [0, 0, 0, 1, 1, 2], [0], [0]>} : vector<4x8x8xbf16>, vector<4x8x8xbf16>, vector<4x8x8xf32> -> vector<4x8x8xf32>
    "tpu.trace_stop"() : () -> ()
    %338 = vector.shape_cast %337 : vector<4x8x8xf32> to vector<32x8xf32>
    %339 = vector.extract_strided_slice %234 {offsets = [8, 0], sizes = [8, 32], strides = [1, 1]} : vector<32x32xbf16> to vector<8x32xbf16>
    %340 = arith.truncf %338 : vector<32x8xf32> to vector<32x8xbf16>
    %cst_123 = arith.constant dense<0.000000e+00> : vector<32x32xf32>
    %341 = tpu.matmul %340, %339, %cst_123 {dimension_numbers = #tpu.dot_dimension_numbers<[1], [0], [0], [1], [0, 0, 1, 1], [], []>} : vector<32x8xbf16>, vector<8x32xbf16>, vector<32x32xf32> -> vector<32x32xf32>
    %342 = arith.addf %312, %341 : vector<32x32xf32>
    %343 = vector.extract_strided_slice %277 {offsets = [0, 0, 16], sizes = [4, 8, 8], strides = [1, 1, 1]} : vector<4x8x32xf32> to vector<4x8x8xf32>
    %344 = arith.truncf %343 : vector<4x8x8xf32> to vector<4x8x8xbf16>
    %345 = vector.extract_strided_slice %279 {offsets = [0, 0, 16], sizes = [4, 8, 8], strides = [1, 1, 1]} : vector<4x8x32xf32> to vector<4x8x8xf32>
    %346 = arith.truncf %345 : vector<4x8x8xf32> to vector<4x8x8xbf16>
    %347 = vector.extract_strided_slice %281 {offsets = [0, 0, 16], sizes = [4, 8, 8], strides = [1, 1, 1]} : vector<4x8x32xf32> to vector<4x8x8xf32>
    %348 = arith.truncf %347 : vector<4x8x8xf32> to vector<4x8x8xbf16>
    "tpu.trace_start"() <{level = 10 : i32, message = "nqd,nkd->nqk"}> : () -> ()
    %cst_124 = arith.constant dense<0.000000e+00> : vector<4x8x8xf32>
    %349 = tpu.matmul %344, %346, %cst_124 {dimension_numbers = #tpu.dot_dimension_numbers<[2], [2], [1], [1], [0, 0, 0, 1, 1, 1], [0], [0]>} : vector<4x8x8xbf16>, vector<4x8x8xbf16>, vector<4x8x8xf32> -> vector<4x8x8xf32>
    "tpu.trace_stop"() : () -> ()
    %cst_125 = arith.constant 0.353553385 : f32
    %350 = vector.broadcast %cst_125 : f32 to vector<4x8x8xf32>
    %351 = arith.mulf %349, %350 : vector<4x8x8xf32>
    %cst_126 = arith.constant -1.000000e+30 : f32
    %352 = vector.shape_cast %11 : vector<1x8x8xi1> to vector<1x8x8xi1>
    %353 = vector.broadcast %352 : vector<1x8x8xi1> to vector<4x8x8xi1>
    %354 = vector.broadcast %cst_126 : f32 to vector<4x8x8xf32>
    %355 = arith.select %353, %351, %354 : vector<4x8x8xi1>, vector<4x8x8xf32>
    %cst_127 = arith.constant dense<0xFF800000> : vector<4x8xf32>
    %356 = vector.multi_reduction <maximumf>, %355, %cst_127 [2] : vector<4x8x8xf32> to vector<4x8xf32>
    %357 = vector.shape_cast %356 : vector<4x8xf32> to vector<4x8x1xf32>
    %358 = vector.broadcast %357 : vector<4x8x1xf32> to vector<4x8x8xf32>
    %359 = arith.subf %355, %358 : vector<4x8x8xf32>
    %360 = math.exp %359 : vector<4x8x8xf32>
    %cst_128 = arith.constant dense<0.000000e+00> : vector<4x8xf32>
    %361 = vector.multi_reduction <add>, %360, %cst_128 [2] : vector<4x8x8xf32> to vector<4x8xf32>
    %362 = vector.shape_cast %361 : vector<4x8xf32> to vector<4x8x1xf32>
    %363 = tpu.reciprocal %362 {approx = true} : vector<4x8x1xf32> -> vector<4x8x1xf32>
    %364 = vector.broadcast %363 : vector<4x8x1xf32> to vector<4x8x8xf32>
    %365 = arith.mulf %360, %364 : vector<4x8x8xf32>
    %366 = arith.truncf %365 : vector<4x8x8xf32> to vector<4x8x8xbf16>
    "tpu.trace_start"() <{level = 10 : i32, message = "nqk,nkd->nqd"}> : () -> ()
    %cst_129 = arith.constant dense<0.000000e+00> : vector<4x8x8xf32>
    %367 = tpu.matmul %366, %348, %cst_129 {dimension_numbers = #tpu.dot_dimension_numbers<[2], [1], [1], [2], [0, 0, 0, 1, 1, 2], [0], [0]>} : vector<4x8x8xbf16>, vector<4x8x8xbf16>, vector<4x8x8xf32> -> vector<4x8x8xf32>
    "tpu.trace_stop"() : () -> ()
    %368 = vector.shape_cast %367 : vector<4x8x8xf32> to vector<32x8xf32>
    %369 = vector.extract_strided_slice %234 {offsets = [16, 0], sizes = [8, 32], strides = [1, 1]} : vector<32x32xbf16> to vector<8x32xbf16>
    %370 = arith.truncf %368 : vector<32x8xf32> to vector<32x8xbf16>
    %cst_130 = arith.constant dense<0.000000e+00> : vector<32x32xf32>
    %371 = tpu.matmul %370, %369, %cst_130 {dimension_numbers = #tpu.dot_dimension_numbers<[1], [0], [0], [1], [0, 0, 1, 1], [], []>} : vector<32x8xbf16>, vector<8x32xbf16>, vector<32x32xf32> -> vector<32x32xf32>
    %372 = arith.addf %342, %371 : vector<32x32xf32>
    %373 = vector.extract_strided_slice %277 {offsets = [0, 0, 24], sizes = [4, 8, 8], strides = [1, 1, 1]} : vector<4x8x32xf32> to vector<4x8x8xf32>
    %374 = arith.truncf %373 : vector<4x8x8xf32> to vector<4x8x8xbf16>
    %375 = vector.extract_strided_slice %279 {offsets = [0, 0, 24], sizes = [4, 8, 8], strides = [1, 1, 1]} : vector<4x8x32xf32> to vector<4x8x8xf32>
    %376 = arith.truncf %375 : vector<4x8x8xf32> to vector<4x8x8xbf16>
    %377 = vector.extract_strided_slice %281 {offsets = [0, 0, 24], sizes = [4, 8, 8], strides = [1, 1, 1]} : vector<4x8x32xf32> to vector<4x8x8xf32>
    %378 = arith.truncf %377 : vector<4x8x8xf32> to vector<4x8x8xbf16>
    "tpu.trace_start"() <{level = 10 : i32, message = "nqd,nkd->nqk"}> : () -> ()
    %cst_131 = arith.constant dense<0.000000e+00> : vector<4x8x8xf32>
    %379 = tpu.matmul %374, %376, %cst_131 {dimension_numbers = #tpu.dot_dimension_numbers<[2], [2], [1], [1], [0, 0, 0, 1, 1, 1], [0], [0]>} : vector<4x8x8xbf16>, vector<4x8x8xbf16>, vector<4x8x8xf32> -> vector<4x8x8xf32>
    "tpu.trace_stop"() : () -> ()
    %cst_132 = arith.constant 0.353553385 : f32
    %380 = vector.broadcast %cst_132 : f32 to vector<4x8x8xf32>
    %381 = arith.mulf %379, %380 : vector<4x8x8xf32>
    %cst_133 = arith.constant -1.000000e+30 : f32
    %382 = vector.shape_cast %11 : vector<1x8x8xi1> to vector<1x8x8xi1>
    %383 = vector.broadcast %382 : vector<1x8x8xi1> to vector<4x8x8xi1>
    %384 = vector.broadcast %cst_133 : f32 to vector<4x8x8xf32>
    %385 = arith.select %383, %381, %384 : vector<4x8x8xi1>, vector<4x8x8xf32>
    %cst_134 = arith.constant dense<0xFF800000> : vector<4x8xf32>
    %386 = vector.multi_reduction <maximumf>, %385, %cst_134 [2] : vector<4x8x8xf32> to vector<4x8xf32>
    %387 = vector.shape_cast %386 : vector<4x8xf32> to vector<4x8x1xf32>
    %388 = vector.broadcast %387 : vector<4x8x1xf32> to vector<4x8x8xf32>
    %389 = arith.subf %385, %388 : vector<4x8x8xf32>
    %390 = math.exp %389 : vector<4x8x8xf32>
    %cst_135 = arith.constant dense<0.000000e+00> : vector<4x8xf32>
    %391 = vector.multi_reduction <add>, %390, %cst_135 [2] : vector<4x8x8xf32> to vector<4x8xf32>
    %392 = vector.shape_cast %391 : vector<4x8xf32> to vector<4x8x1xf32>
    %393 = tpu.reciprocal %392 {approx = true} : vector<4x8x1xf32> -> vector<4x8x1xf32>
    %394 = vector.broadcast %393 : vector<4x8x1xf32> to vector<4x8x8xf32>
    %395 = arith.mulf %390, %394 : vector<4x8x8xf32>
    %396 = arith.truncf %395 : vector<4x8x8xf32> to vector<4x8x8xbf16>
    "tpu.trace_start"() <{level = 10 : i32, message = "nqk,nkd->nqd"}> : () -> ()
    %cst_136 = arith.constant dense<0.000000e+00> : vector<4x8x8xf32>
    %397 = tpu.matmul %396, %378, %cst_136 {dimension_numbers = #tpu.dot_dimension_numbers<[2], [1], [1], [2], [0, 0, 0, 1, 1, 2], [0], [0]>} : vector<4x8x8xbf16>, vector<4x8x8xbf16>, vector<4x8x8xf32> -> vector<4x8x8xf32>
    "tpu.trace_stop"() : () -> ()
    %398 = vector.shape_cast %397 : vector<4x8x8xf32> to vector<32x8xf32>
    %399 = vector.extract_strided_slice %234 {offsets = [24, 0], sizes = [8, 32], strides = [1, 1]} : vector<32x32xbf16> to vector<8x32xbf16>
    %400 = arith.truncf %398 : vector<32x8xf32> to vector<32x8xbf16>
    %cst_137 = arith.constant dense<0.000000e+00> : vector<32x32xf32>
    %401 = tpu.matmul %400, %399, %cst_137 {dimension_numbers = #tpu.dot_dimension_numbers<[1], [0], [0], [1], [0, 0, 1, 1], [], []>} : vector<32x8xbf16>, vector<8x32xbf16>, vector<32x32xf32> -> vector<32x32xf32>
    %402 = arith.addf %372, %401 : vector<32x32xf32>
    %403 = vector.broadcast %235 : vector<1x32xf32> to vector<32x32xf32>
    %404 = arith.addf %402, %403 : vector<32x32xf32>
    %405 = vector.shape_cast %404 : vector<32x32xf32> to vector<4x8x32xf32>
    %406 = arith.addf %248, %405 : vector<4x8x32xf32>
    %407 = vector.shape_cast %406 : vector<4x8x32xf32> to vector<32x32xf32>
    %cst_138 = arith.constant dense<0.000000e+00> : vector<32xf32>
    %408 = vector.multi_reduction <add>, %407, %cst_138 [1] : vector<32x32xf32> to vector<32xf32>
    %409 = vector.shape_cast %408 : vector<32xf32> to vector<32x1xf32>
    %cst_139 = arith.constant 3.200000e+01 : f32
    %410 = vector.broadcast %cst_139 : f32 to vector<32x1xf32>
    %411 = arith.divf %409, %410 : vector<32x1xf32>
    %412 = vector.broadcast %411 : vector<32x1xf32> to vector<32x32xf32>
    %413 = arith.subf %407, %412 : vector<32x32xf32>
    %414 = arith.mulf %413, %413 : vector<32x32xf32>
    %cst_140 = arith.constant dense<0.000000e+00> : vector<32xf32>
    %415 = vector.multi_reduction <add>, %414, %cst_140 [1] : vector<32x32xf32> to vector<32xf32>
    %416 = vector.shape_cast %415 : vector<32xf32> to vector<32x1xf32>
    %cst_141 = arith.constant 3.200000e+01 : f32
    %417 = vector.broadcast %cst_141 : f32 to vector<32x1xf32>
    %418 = arith.divf %416, %417 : vector<32x1xf32>
    %419 = vector.broadcast %411 : vector<32x1xf32> to vector<32x32xf32>
    %420 = arith.subf %407, %419 : vector<32x32xf32>
    %cst_142 = arith.constant 9.99999974E-6 : f32
    %421 = vector.broadcast %cst_142 : f32 to vector<32x1xf32>
    %422 = arith.addf %418, %421 : vector<32x1xf32>
    %423 = math.rsqrt %422 : vector<32x1xf32>
    %424 = vector.broadcast %423 : vector<32x1xf32> to vector<32x32xf32>
    %425 = arith.mulf %420, %424 : vector<32x32xf32>
    %426 = vector.broadcast %236 : vector<1x32xf32> to vector<32x32xf32>
    %427 = arith.mulf %425, %426 : vector<32x32xf32>
    %428 = vector.broadcast %237 : vector<1x32xf32> to vector<32x32xf32>
    %429 = arith.addf %427, %428 : vector<32x32xf32>
    %430 = arith.truncf %429 : vector<32x32xf32> to vector<32x32xbf16>
    %cst_143 = arith.constant dense<0.000000e+00> : vector<32x128xf32>
    %431 = tpu.matmul %430, %238, %cst_143 {dimension_numbers = #tpu.dot_dimension_numbers<[1], [0], [0], [1], [0, 0, 1, 1], [], []>} : vector<32x32xbf16>, vector<32x128xbf16>, vector<32x128xf32> -> vector<32x128xf32>
    %432 = vector.broadcast %239 : vector<1x128xf32> to vector<32x128xf32>
    %433 = arith.addf %431, %432 : vector<32x128xf32>
    %cst_144 = arith.constant 1.702000e+00 : f32
    %434 = vector.broadcast %cst_144 : f32 to vector<32x128xf32>
    %435 = arith.mulf %434, %433 : vector<32x128xf32>
    %436 = arith.negf %435 : vector<32x128xf32>
    %437 = math.exp %436 : vector<32x128xf32>
    %cst_145 = arith.constant 1.000000e+00 : f32
    %438 = vector.broadcast %cst_145 : f32 to vector<32x128xf32>
    %439 = arith.addf %438, %437 : vector<32x128xf32>
    %440 = arith.divf %438, %439 : vector<32x128xf32>
    %441 = arith.mulf %433, %440 : vector<32x128xf32>
    %442 = arith.truncf %441 : vector<32x128xf32> to vector<32x128xbf16>
    %cst_146 = arith.constant dense<0.000000e+00> : vector<32x32xf32>
    %443 = tpu.matmul %442, %240, %cst_146 {dimension_numbers = #tpu.dot_dimension_numbers<[1], [0], [0], [1], [0, 0, 1, 1], [], []>} : vector<32x128xbf16>, vector<128x32xbf16>, vector<32x32xf32> -> vector<32x32xf32>
    %444 = vector.broadcast %241 : vector<1x32xf32> to vector<32x32xf32>
    %445 = arith.addf %443, %444 : vector<32x32xf32>
    %446 = vector.shape_cast %445 : vector<32x32xf32> to vector<4x8x32xf32>
    %447 = arith.addf %406, %446 : vector<4x8x32xf32>
    %448 = vector.shape_cast %447 : vector<4x8x32xf32> to vector<32x32xf32>
    %cst_147 = arith.constant dense<0.000000e+00> : vector<32xf32>
    %449 = vector.multi_reduction <add>, %448, %cst_147 [1] : vector<32x32xf32> to vector<32xf32>
    %450 = vector.shape_cast %449 : vector<32xf32> to vector<32x1xf32>
    %cst_148 = arith.constant 3.200000e+01 : f32
    %451 = vector.broadcast %cst_148 : f32 to vector<32x1xf32>
    %452 = arith.divf %450, %451 : vector<32x1xf32>
    %453 = vector.broadcast %452 : vector<32x1xf32> to vector<32x32xf32>
    %454 = arith.subf %448, %453 : vector<32x32xf32>
    %455 = arith.mulf %454, %454 : vector<32x32xf32>
    %cst_149 = arith.constant dense<0.000000e+00> : vector<32xf32>
    %456 = vector.multi_reduction <add>, %455, %cst_149 [1] : vector<32x32xf32> to vector<32xf32>
    %457 = vector.shape_cast %456 : vector<32xf32> to vector<32x1xf32>
    %cst_150 = arith.constant 3.200000e+01 : f32
    %458 = vector.broadcast %cst_150 : f32 to vector<32x1xf32>
    %459 = arith.divf %457, %458 : vector<32x1xf32>
    %460 = vector.broadcast %452 : vector<32x1xf32> to vector<32x32xf32>
    %461 = arith.subf %448, %460 : vector<32x32xf32>
    %cst_151 = arith.constant 9.99999974E-6 : f32
    %462 = vector.broadcast %cst_151 : f32 to vector<32x1xf32>
    %463 = arith.addf %459, %462 : vector<32x1xf32>
    %464 = math.rsqrt %463 : vector<32x1xf32>
    %465 = vector.broadcast %464 : vector<32x1xf32> to vector<32x32xf32>
    %466 = arith.mulf %461, %465 : vector<32x32xf32>
    %467 = vector.broadcast %0 : vector<1x32xf32> to vector<32x32xf32>
    %468 = arith.mulf %466, %467 : vector<32x32xf32>
    %469 = vector.broadcast %1 : vector<1x32xf32> to vector<32x32xf32>
    %470 = arith.addf %468, %469 : vector<32x32xf32>
    %471 = vector.shape_cast %470 : vector<32x32xf32> to vector<4x8x32xf32>
    %c0_152 = arith.constant 0 : index
    %c0_153 = arith.constant 0 : index
    %472 = vector.load %arg3[%c0_152, %c0_153] : memref<4x8xi32, #tpu.memory_space<vmem>>, vector<4x8xi32>
    %cst_154 = arith.constant dense<-2147483648> : vector<4xi32>
    %473 = vector.multi_reduction <maxsi>, %472, %cst_154 [1] : vector<4x8xi32> to vector<4xi32>
    %474 = vector.shape_cast %473 : vector<4xi32> to vector<4x1xi32>
    %475 = vector.broadcast %474 : vector<4x1xi32> to vector<4x8xi32>
    %476 = arith.cmpi eq, %472, %475 : vector<4x8xi32>
    %477 = arith.extui %476 : vector<4x8xi1> to vector<4x8xi32>
    %478 = arith.sitofp %477 : vector<4x8xi32> to vector<4x8xf32>
    %479 = vector.shape_cast %478 : vector<4x8xf32> to vector<4x8x1xf32>
    %480 = vector.broadcast %479 : vector<4x8x1xf32> to vector<4x8x32xf32>
    %481 = arith.mulf %480, %471 : vector<4x8x32xf32>
    %cst_155 = arith.constant dense<0.000000e+00> : vector<4x32xf32>
    %482 = vector.multi_reduction <add>, %481, %cst_155 [1] : vector<4x8x32xf32> to vector<4x32xf32>
    %483 = arith.truncf %482 : vector<4x32xf32> to vector<4x32xbf16>
    %cst_156 = arith.constant dense<0.000000e+00> : vector<4x32xf32>
    %484 = tpu.matmul %483, %2, %cst_156 {dimension_numbers = #tpu.dot_dimension_numbers<[1], [0], [0], [1], [0, 0, 1, 1], [], []>} : vector<4x32xbf16>, vector<32x32xbf16>, vector<4x32xf32> -> vector<4x32xf32>
    %c0_157 = arith.constant 0 : index
    %c0_158 = arith.constant 0 : index
    %485 = vector.load %arg32[%c0_157, %c0_158] : memref<4x32xf32, #tpu.memory_space<vmem>>, vector<4x32xf32>
    tpu.vector_store %arg32[%c0_157, %c0_158], %484 {strides = array<i32>} : memref<4x32xf32, #tpu.memory_space<vmem>>, vector<4x32xf32>,
    return
  }
  func.func @transform_0(%arg0: i32) -> (i32, i32, i32) {
    %c0_i32 = arith.constant 0 : i32
    %c0_i32_0 = arith.constant 0 : i32
    %c0_i32_1 = arith.constant 0 : i32
    %c0_i32_2 = arith.constant 0 : i32
    return %c0_i32, %c0_i32_0, %c0_i32_1 : i32, i32, i32
  }
  func.func @transform_1(%arg0: i32) -> (i32, i32) {
    %c0_i32 = arith.constant 0 : i32
    %c0_i32_0 = arith.constant 0 : i32
    %c0_i32_1 = arith.constant 0 : i32
    return %c0_i32, %c0_i32_0 : i32, i32
  }
  func.func @transform_2(%arg0: i32) -> (i32, i32) {
    %c0_i32 = arith.constant 0 : i32
    %c0_i32_0 = arith.constant 0 : i32
    %c0_i32_1 = arith.constant 0 : i32
    return %c0_i32, %c0_i32_0 : i32, i32
  }
  func.func @transform_3(%arg0: i32) -> (i32, i32) {
    %c0_i32 = arith.constant 0 : i32
    %c0_i32_0 = arith.constant 0 : i32
    %c0_i32_1 = arith.constant 0 : i32
    return %c0_i32, %c0_i32_0 : i32, i32
  }
  func.func @transform_4(%arg0: i32) -> (i32, i32) {
    %c0_i32 = arith.constant 0 : i32
    %c0_i32_0 = arith.constant 0 : i32
    %c0_i32_1 = arith.constant 0 : i32
    return %c0_i32, %c0_i32_0 : i32, i32
  }
  func.func @transform_5(%arg0: i32) -> (i32, i32) {
    %c0_i32 = arith.constant 0 : i32
    %c0_i32_0 = arith.constant 0 : i32
    %c0_i32_1 = arith.constant 0 : i32
    return %c0_i32, %c0_i32_0 : i32, i32
  }
  func.func @transform_6(%arg0: i32) -> (i32, i32) {
    %c0_i32 = arith.constant 0 : i32
    %c0_i32_0 = arith.constant 0 : i32
    %c0_i32_1 = arith.constant 0 : i32
    return %c0_i32, %c0_i32_0 : i32, i32
  }
  func.func @transform_7(%arg0: i32) -> (i32, i32) {
    %c0_i32 = arith.constant 0 : i32
    %c0_i32_0 = arith.constant 0 : i32
    %c0_i32_1 = arith.constant 0 : i32
    return %c0_i32, %c0_i32_0 : i32, i32
  }
  func.func @transform_8(%arg0: i32) -> (i32, i32) {
    %c0_i32 = arith.constant 0 : i32
    %c0_i32_0 = arith.constant 0 : i32
    %c0_i32_1 = arith.constant 0 : i32
    return %c0_i32, %c0_i32_0 : i32, i32
  }
  func.func @transform_9(%arg0: i32) -> (i32, i32) {
    %c0_i32 = arith.constant 0 : i32
    %c0_i32_0 = arith.constant 0 : i32
    %c0_i32_1 = arith.constant 0 : i32
    return %c0_i32, %c0_i32_0 : i32, i32
  }
  func.func @transform_10(%arg0: i32) -> (i32, i32) {
    %c0_i32 = arith.constant 0 : i32
    %c0_i32_0 = arith.constant 0 : i32
    %c0_i32_1 = arith.constant 0 : i32
    return %c0_i32, %c0_i32_0 : i32, i32
  }
  func.func @transform_11(%arg0: i32) -> (i32, i32) {
    %c0_i32 = arith.constant 0 : i32
    %c0_i32_0 = arith.constant 0 : i32
    %c0_i32_1 = arith.constant 0 : i32
    return %c0_i32, %c0_i32_0 : i32, i32
  }
  func.func @transform_12(%arg0: i32) -> (i32, i32) {
    %c0_i32 = arith.constant 0 : i32
    %c0_i32_0 = arith.constant 0 : i32
    %c0_i32_1 = arith.constant 0 : i32
    return %c0_i32, %c0_i32_0 : i32, i32
  }
  func.func @transform_13(%arg0: i32) -> (i32, i32) {
    %c0_i32 = arith.constant 0 : i32
    %c0_i32_0 = arith.constant 0 : i32
    %c0_i32_1 = arith.constant 0 : i32
    return %c0_i32, %c0_i32_0 : i32, i32
  }
  func.func @transform_14(%arg0: i32) -> (i32, i32) {
    %c0_i32 = arith.constant 0 : i32
    %c0_i32_0 = arith.constant 0 : i32
    %c0_i32_1 = arith.constant 0 : i32
    return %c0_i32, %c0_i32_0 : i32, i32
  }
  func.func @transform_15(%arg0: i32) -> (i32, i32) {
    %c0_i32 = arith.constant 0 : i32
    %c0_i32_0 = arith.constant 0 : i32
    %c0_i32_1 = arith.constant 0 : i32
    return %c0_i32, %c0_i32_0 : i32, i32
  }
  func.func @transform_16(%arg0: i32) -> (i32, i32) {
    %c0_i32 = arith.constant 0 : i32
    %c0_i32_0 = arith.constant 0 : i32
    %c0_i32_1 = arith.constant 0 : i32
    return %c0_i32, %c0_i32_0 : i32, i32
  }
  func.func @transform_17(%arg0: i32) -> (i32, i32) {
    %c0_i32 = arith.constant 0 : i32
    %c0_i32_0 = arith.constant 0 : i32
    %c0_i32_1 = arith.constant 0 : i32
    return %c0_i32, %c0_i32_0 : i32, i32
  }
  func.func @transform_18(%arg0: i32) -> (i32, i32) {
    %c0_i32 = arith.constant 0 : i32
    %c0_i32_0 = arith.constant 0 : i32
    %c0_i32_1 = arith.constant 0 : i32
    return %c0_i32, %c0_i32_0 : i32, i32
  }
  func.func @transform_19(%arg0: i32) -> (i32, i32) {
    %c0_i32 = arith.constant 0 : i32
    %c0_i32_0 = arith.constant 0 : i32
    %c0_i32_1 = arith.constant 0 : i32
    return %c0_i32, %c0_i32_0 : i32, i32
  }
  func.func @transform_20(%arg0: i32) -> (i32, i32) {
    %c0_i32 = arith.constant 0 : i32
    %c0_i32_0 = arith.constant 0 : i32
    %c0_i32_1 = arith.constant 0 : i32
    return %c0_i32, %c0_i32_0 : i32, i32
  }
  func.func @transform_21(%arg0: i32) -> (i32, i32) {
    %c0_i32 = arith.constant 0 : i32
    %c0_i32_0 = arith.constant 0 : i32
    %c0_i32_1 = arith.constant 0 : i32
    return %c0_i32, %c0_i32_0 : i32, i32
  }
  func.func @transform_22(%arg0: i32) -> (i32, i32) {
    %c0_i32 = arith.constant 0 : i32
    %c0_i32_0 = arith.constant 0 : i32
    %c0_i32_1 = arith.constant 0 : i32
    return %c0_i32, %c0_i32_0 : i32, i32
  }
  func.func @transform_23(%arg0: i32) -> (i32, i32) {
    %c0_i32 = arith.constant 0 : i32
    %c0_i32_0 = arith.constant 0 : i32
    %c0_i32_1 = arith.constant 0 : i32
    return %c0_i32, %c0_i32_0 : i32, i32
  }
  func.func @transform_24(%arg0: i32) -> (i32, i32) {
    %c0_i32 = arith.constant 0 : i32
    %c0_i32_0 = arith.constant 0 : i32
    %c0_i32_1 = arith.constant 0 : i32
    return %c0_i32, %c0_i32_0 : i32, i32
  }
  func.func @transform_25(%arg0: i32) -> (i32, i32) {
    %c0_i32 = arith.constant 0 : i32
    %c0_i32_0 = arith.constant 0 : i32
    %c0_i32_1 = arith.constant 0 : i32
    return %c0_i32, %c0_i32_0 : i32, i32
  }
  func.func @transform_26(%arg0: i32) -> (i32, i32) {
    %c0_i32 = arith.constant 0 : i32
    %c0_i32_0 = arith.constant 0 : i32
    %c0_i32_1 = arith.constant 0 : i32
    return %c0_i32, %c0_i32_0 : i32, i32
  }
  func.func @transform_27(%arg0: i32) -> (i32, i32) {
    %c0_i32 = arith.constant 0 : i32
    %c0_i32_0 = arith.constant 0 : i32
    %c0_i32_1 = arith.constant 0 : i32
    return %c0_i32, %c0_i32_0 : i32, i32
  }
  func.func @transform_28(%arg0: i32) -> (i32, i32) {
    %c0_i32 = arith.constant 0 : i32
    %c0_i32_0 = arith.constant 0 : i32
    %c0_i32_1 = arith.constant 0 : i32
    return %c0_i32, %c0_i32_0 : i32, i32
  }
  func.func @transform_29(%arg0: i32) -> (i32, i32) {
    %c0_i32 = arith.constant 0 : i32
    %c0_i32_0 = arith.constant 0 : i32
    %c0_i32_1 = arith.constant 0 : i32
    return %c0_i32, %c0_i32_0 : i32, i32
  }
  func.func @transform_30(%arg0: i32) -> (i32, i32) {
    %c0_i32 = arith.constant 0 : i32
    %c0_i32_0 = arith.constant 0 : i32
    %c0_i32_1 = arith.constant 0 : i32
    return %c0_i32, %c0_i32_0 : i32, i32
  }
  func.func @transform_31(%arg0: i32) -> (i32, i32) {
    %c0_i32 = arith.constant 0 : i32
    %c0_i32_0 = arith.constant 0 : i32
    %c0_i32_1 = arith.constant 0 : i32
    return %c0_i32, %c0_i32_0 : i32, i32
  }
}

</mosaic_0001>

<bundles_post_ra>
// kernel: text_encoder_forward.1
= control target key start
LH: loop header
LB: loop body
LE: loop exit
PB: predicated region body
PF: predicated region fallthrough
CT: control target
= control target key end

     0   :  { %s6877_s6 = smov 1   ;;  %s6878_s10 = smov 2   ;;  %s8113_s0 = inlined_call_operand.smem [shape: u32[32], index: -1, kind: input, shape index: {}] }
   0x1   :  { %s6937_s5 = sld [smem:[%s8113_s0]]   ;;  %s6879_s14 = smov 3  }
   0x2   :  { %s6942_s9 = sld [smem:[%s8113_s0 + %s6877_s6]]   ;;  %s6880_s18 = smov 4  }
   0x3   :  { %s6947_s13 = sld [smem:[%s8113_s0 + %s6878_s10]]   ;;  %s6881_s22 = smov 5  }
   0x4   :  { %s6952_s17 = sld [smem:[%s8113_s0 + %s6879_s14]]   ;;  %s6882_s26 = smov 6  }
   0x5   :  { %s6957_s21 = sld [smem:[%s8113_s0 + %s6880_s18]]   ;;  %s6883_s30 = smov 7  }
   0x6   :  { %s6962_s25 = sld [smem:[%s8113_s0 + %s6881_s22]]   ;;  %s6884_s4 = smov 8  }
   0x7   :  { %s6967_s29 = sld [smem:[%s8113_s0 + %s6882_s26]]   ;;  %s6885_s10 = smov 9  }
   0x8   :  { %s6972_s3 = sld [smem:[%s8113_s0 + %s6883_s30]]   ;;  %s6886_s15 = smov 10  }
   0x9   :  { %8118 = sst [smem:[#allocation20_spill]] %s6947_s13  ;;  %s6887_s20 = smov 11  }
   0xa   :  { %8119 = sst [smem:[#allocation21_spill]] %s6952_s17  ;;  %s6888_s26 = smov 12  }
   0xb   :  { %s6977_s8 = sld [smem:[%s8113_s0 + %s6884_s4]]   ;;  %s6889_s1 = smov 13  }
   0xc   :  { %s6982_s14 = sld [smem:[%s8113_s0 + %s6885_s10]]   ;;  %s6890_s7 = smov 14  }
   0xd   :  { %s6987_s19 = sld [smem:[%s8113_s0 + %s6886_s15]]   ;;  %s6891_s15 = smov 15  }
   0xe   :  { %s6992_s24 = sld [smem:[%s8113_s0 + %s6887_s20]]   ;;  %s6892_s22 = smov 16  }
   0xf   :  { %s6997_s30 = sld [smem:[%s8113_s0 + %s6888_s26]]   ;;  %s6893_s28 = smov 17  }
  0x10   :  { %s7002_s6 = sld [smem:[%s8113_s0 + %s6889_s1]]  }
  0x11   :  { %s7007_s12 = sld [smem:[%s8113_s0 + %s6890_s7]]   ;;  %s6894_s7 = smov 18  }
  0x12   :  { %s7012_s20 = sld [smem:[%s8113_s0 + %s6891_s15]]   ;;  %s6895_s15 = smov 19  }
  0x13   :  { %s7017_s27 = sld [smem:[%s8113_s0 + %s6892_s22]]   ;;  %s6896_s22 = smov 20  }
  0x14   :  { %s7022_s4 = sld [smem:[%s8113_s0 + %s6893_s28]]   ;;  %s6897_s28 = smov 21  }
  0x15   :  { %s7027_s13 = sld [smem:[%s8113_s0 + %s6894_s7]]   ;;  %s6898_s7 = smov 22  }
  0x16   :  { %s7032_s17 = sld [smem:[%s8113_s0 + %s6895_s15]]   ;;  %s6899_s15 = smov 23  }
  0x18   :  { %8120 = sst [smem:[#allocation22_spill]] %s7012_s20 }
  0x19   :  { %8121 = sst [smem:[#allocation23_spill]] %s7017_s27 }
  0x1a   :  { %8122 = sst [smem:[#allocation24_spill]] %s7022_s4 }
  0x1b   :  { %8123 = sst [smem:[#allocation25_spill]] %s7027_s13 }
  0x1c   :  { %8124 = sst [smem:[#allocation26_spill]] %s7032_s17 }
  0x1d   :  { %s7037_s27 = sld [smem:[%s8113_s0 + %s6896_s22]]   ;;  %s6900_s22 = smov 24  }
  0x1e   :  { %s7042_s4 = sld [smem:[%s8113_s0 + %s6897_s28]]   ;;  %s6901_s28 = smov 25  }
  0x1f   :  { %s7047_s13 = sld [smem:[%s8113_s0 + %s6898_s7]]   ;;  %s6902_s7 = smov 26  }
  0x20   :  { %s7052_s17 = sld [smem:[%s8113_s0 + %s6899_s15]]   ;;  %s6903_s15 = smov 27  }
  0x23   :  { %8125 = sst [smem:[#allocation27_spill]] %s7037_s27 }
  0x24   :  { %8126 = sst [smem:[#allocation28_spill]] %s7042_s4 }
  0x25   :  { %8127 = sst [smem:[#allocation29_spill]] %s7047_s13 }
  0x26   :  { %8128 = sst [smem:[#allocation30_spill]] %s7052_s17 }
  0x27   :  { %s7057_s27 = sld [smem:[%s8113_s0 + %s6900_s22]]   ;;  %s6904_s22 = smov 28  }
  0x28   :  { %s7062_s4 = sld [smem:[%s8113_s0 + %s6901_s28]]   ;;  %s6905_s28 = smov 29  }
  0x29   :  { %s7067_s13 = sld [smem:[%s8113_s0 + %s6902_s7]]   ;;  %s6906_s7 = smov 30  }
  0x2a   :  { %s7072_s17 = sld [smem:[%s8113_s0 + %s6903_s15]]   ;;  %s6907_s15 = smov 31  }
  0x2b   :  { %s7082_s20 = sld [smem:[%s8113_s0 + %s6905_s28]]  }
  0x2d   :  { %8129 = sst [smem:[#allocation31_spill]] %s7057_s27 }
  0x2e   :  { %s7077_s27 = sld [smem:[%s8113_s0 + %s6904_s22]]  }
  0x2f   :  { %8130 = sst [smem:[#allocation32_spill]] %s7067_s13 }
  0x30   :  { %8131 = sst [smem:[#allocation33_spill]] %s7072_s17 }
  0x31   :  { %s7087_s13 = sld [smem:[%s8113_s0 + %s6906_s7]]  }
  0x32   :  { %s7092_s17 = sld [smem:[%s8113_s0 + %s6907_s15]]  }
  0x33   :  { %68 = vsyncpa [#allocation3], 0 }
  0x34   :  { %69 = vsyncpa [#allocation6], 0 }
  0x35   :  { %70 = vsyncpa [#allocation9], 0 }
  0x36   :  { %71 = vsyncpa [#allocation12], 0 }
  0x37   :  { %72 = vsyncpa [#allocation4], 0  ;;  %s6908_s22 = smov [#allocation5]   ;;  %s6909_s26 = smov [#allocation8]  }
  0x38   :  { %s101_s23 = sshll.u32 %s6908_s22, 4  ;;  %s123_s28 = sshll.u32 %s6909_s26, 4  ;;  %s102_s23 = int_to_ptr.vmem [resolvable:$true] %s101_s23  ;;  %s124_s28 = int_to_ptr.vmem [resolvable:$true] %s123_s28 }
  0x39   :  { %s6715_s1 = scalar_lea.vmem %s102_s23, 16  ;;  %s6719_s2 = scalar_lea.vmem %s102_s23, 32 }
  0x3a   :  { %p6716_p0 = scmp.ne.s32.totalorder %s102_s23, %s6715_s1  ;;  %p6720_p1 = scmp.lt.s32.totalorder %s102_s23, %s102_s23 }
  0x3b   :  { %p6721_p2 = scmp.lt.s32.totalorder %s6719_s2, %s6715_s1 }
  0x3d   :  { %p6722_p3 = por %p6721_p2, %p6720_p1 }
  0x3f   :  { %p6723_p4 = pnand %p6722_p3, %p6716_p0 }
  0x41   :  { %6726 = shalt.err (!%p6723_p4)
}
  0x42   :  { %104 = dma.hbm_to_vmem [thread:$0]  %s6972_s3, 16, %s102_s23, [#allocation6]  }
  0x43   :  { %s6735_s0 = scalar_lea.vmem %s124_s28, 16  ;;  %s6739_s7 = scalar_lea.vmem %s124_s28, 32 }
  0x44   :  { %p6736_p5 = scmp.ne.s32.totalorder %s124_s28, %s6735_s0  ;;  %p6740_p6 = scmp.lt.s32.totalorder %s124_s28, %s124_s28 }
  0x45   :  { %p6741_p7 = scmp.lt.s32.totalorder %s6739_s7, %s6735_s0 }
  0x47   :  { %p6742_p8 = por %p6741_p7, %p6740_p6 }
  0x49   :  { %p6743_p9 = pnand %p6742_p8, %p6736_p5 }
  0x4b   :  { %6746 = shalt.err (!%p6743_p9)
}
  0x4c   :  { %126 = dma.hbm_to_vmem [thread:$0]  %s6987_s19, 16, %s124_s28, [#allocation9]  }
  0x4d   :  { %s6910_s10 = smov [#allocation11]   ;;  %s6911_s15 = smov [#allocation2]  }
  0x4e   :  { %s145_s11 = sshll.u32 %s6910_s10, 4  ;;  %s89_s16 = sshll.u32 %s6911_s15, 4  ;;  %s146_s11 = int_to_ptr.vmem [resolvable:$true] %s145_s11  ;;  %s90_s16 = int_to_ptr.vmem [resolvable:$true] %s89_s16 }
  0x4f   :  { %s6755_s18 = scalar_lea.vmem %s146_s11, 16  ;;  %s6759_s22 = scalar_lea.vmem %s146_s11, 32 }
  0x50   :  { %p6756_p10 = scmp.ne.s32.totalorder %s146_s11, %s6755_s18  ;;  %p6760_p11 = scmp.lt.s32.totalorder %s146_s11, %s146_s11 }
  0x51   :  { %p6761_p12 = scmp.lt.s32.totalorder %s6759_s22, %s6755_s18 }
  0x53   :  { %p6762_p13 = por %p6761_p12, %p6760_p11 }
  0x55   :  { %p6763_p0 = pnand %p6762_p13, %p6756_p10 }
  0x57   :  { %6766 = shalt.err (!%p6763_p0)
}
  0x58   :  { %148 = dma.hbm_to_vmem [thread:$0]  %s7002_s6, 16, %s146_s11, [#allocation12]  }
  0x59   :  { %s6775_s3 = scalar_lea.vmem %s90_s16, 16  ;;  %s6779_s23 = scalar_lea.vmem %s90_s16, 32 }
  0x5a   :  { %p6776_p1 = scmp.ne.s32.totalorder %s90_s16, %s6775_s3  ;;  %p6780_p2 = scmp.lt.s32.totalorder %s90_s16, %s90_s16 }
  0x5b   :  { %p6781_p3 = scmp.lt.s32.totalorder %s6779_s23, %s6775_s3 }
  0x5d   :  { %p6782_p4 = por %p6781_p3, %p6780_p2 }
  0x5f   :  { %p6783_p5 = pnand %p6782_p4, %p6776_p1 }
  0x61   :  { %6786 = shalt.err (!%p6783_p5)
}
  0x62   :  { %92 = dma.hbm_to_vmem [thread:$0]  %s6962_s25, 16, %s90_s16, [#allocation3]  }
  0x63   :  { %s6912_s19 = smov [#allocation7]   ;;  %s6913_s28 = smov [#allocation10]  }
  0x64   :  { %s113_s26 = sshll.u32 %s6912_s19, 4  ;;  %s133_s1 = sshll.u32 %s6913_s28, 4  ;;  %s114_s26 = int_to_ptr.vmem [resolvable:$true] %s113_s26  ;;  %s134_s1 = int_to_ptr.vmem [resolvable:$true] %s133_s1 }
  0x65   :  { %s6795_s2 = scalar_lea.vmem %s114_s26, 16  ;;  %s6799_s0 = scalar_lea.vmem %s114_s26, 32 }
  0x66   :  { %p6796_p6 = scmp.ne.s32.totalorder %s114_s26, %s6795_s2  ;;  %p6800_p7 = scmp.lt.s32.totalorder %s114_s26, %s114_s26 }
  0x67   :  { %p6801_p8 = scmp.lt.s32.totalorder %s6799_s0, %s6795_s2 }
  0x69   :  { %p6802_p9 = por %p6801_p8, %p6800_p7 }
  0x6b   :  { %p6803_p10 = pnand %p6802_p9, %p6796_p6 }
  0x6d   :  { %6806 = shalt.err (!%p6803_p10)
}
  0x6e   :  { %116 = dma.hbm_to_vmem [thread:$0]  %s6982_s14, 16, %s114_s26, [#allocation6]  }
  0x6f   :  { %s6815_s6 = scalar_lea.vmem %s134_s1, 16  ;;  %s6819_s7 = scalar_lea.vmem %s134_s1, 32 }
  0x70   :  { %p6816_p11 = scmp.ne.s32.totalorder %s134_s1, %s6815_s6  ;;  %p6820_p12 = scmp.lt.s32.totalorder %s134_s1, %s134_s1 }
  0x71   :  { %p6821_p13 = scmp.lt.s32.totalorder %s6819_s7, %s6815_s6 }
  0x73   :  { %p6822_p0 = por %p6821_p13, %p6820_p12 }
  0x75   :  { %p6823_p1 = pnand %p6822_p0, %p6816_p11 }
  0x77   :  { %6826 = shalt.err (!%p6823_p1)
}
  0x78   :  { %136 = dma.hbm_to_vmem [thread:$0]  %s6992_s24, 16, %s134_s1, [#allocation9]  }
  0x79   :  { %s6914_s25 = smov [#allocation13]  }
  0x7a   :  { %s177_s10 = sshll.u32 %s6914_s25, 4  ;;  %s178_s10 = int_to_ptr.vmem [resolvable:$true] %s177_s10 }
  0x7b   :  { %s6835_s11 = scalar_lea.vmem %s178_s10, 16  ;;  %s6839_s15 = scalar_lea.vmem %s178_s10, 32 }
  0x7c   :  { %p6836_p2 = scmp.ne.s32.totalorder %s178_s10, %s6835_s11  ;;  %p6840_p3 = scmp.lt.s32.totalorder %s178_s10, %s178_s10 }
  0x7d   :  { %p6841_p4 = scmp.lt.s32.totalorder %s6839_s15, %s6835_s11 }
  0x7f   :  { %p6842_p5 = por %p6841_p4, %p6840_p3 }
  0x81   :  { %p6843_p6 = pnand %p6842_p5, %p6836_p2 }
  0x83   :  { %6846 = shalt.err (!%p6843_p6)
}
  0x84   :  { %180 = dma.hbm_to_vmem [thread:$0]  %s7062_s4, 16, %s178_s10, [#allocation12]  }
  0x85   :  { %6867 = dma.done.wait [#allocation3], 16  }
  0x86   :  { %6868 = vsyncadd [#allocation3], 4294967280 }
  0x87   :  { %6869 = dma.done.wait [#allocation6], 32  }
  0x88   :  { %6870 = vsyncadd [#allocation6], 4294967264 }
  0x89   :  { %6871 = dma.done.wait [#allocation9], 32  }
  0x8a   :  { %6872 = vsyncadd [#allocation9], 4294967264 }
  0x8b   :  { %6873 = dma.done.wait [#allocation12], 32  }
  0x8c   :  { %6874 = vsyncadd [#allocation12], 4294967264  ;;  %v219_v0 = vld [vmem:[%s6937_s5] sm:$0xff]  ;;  %vm272_vm0 = vcmask 261120   ;;  %v221_v2 = vld [vmem:[%s6937_s5 + $0x10] sm:$0xff]  ;;  %vm6916_vm1 = vmmov 0  }
  0x8d   :  { %v223_v1 = vld [vmem:[%s6942_s9] sm:$0xff]  ;;  %v220_v5 = vld [vmem:[%s6937_s5 + $0x8] sm:$0xff]  ;;  %v222_v6 = vld [vmem:[%s6937_s5 + $0x18] sm:$0xff]  ;;  %s6917_s5 = smov 96   ;;  %vm428_vm2 = vcmask 64512   ;;  %s6918_s9 = smov 64  }
  0x8e   :  { %v7104_v3 = vadd.f32 %v223_v1, %v219_v0  ;;  %v7106_v4 = vadd.f32 %v223_v1, %v221_v2  ;;  %v7110_v7 = vadd.f32 %v223_v1, %v220_v5  ;;  %v7112_v8 = vadd.f32 %v223_v1, %v222_v6  ;;  %v6481_v33 = vld [vmem:[%s6967_s29 + $0x8] sm:$0xff]   ;;  %v6482_v34 = vld [vmem:[%s6967_s29] sm:$0xff]   ;;  %s6920_s29 = smov 120   ;;  %s6921_s14 = smov 56  }
  0x8f   :  { %5909 = vmatprep.subr.bf16.mxu1 %v6481_v33  ;;  %v5576_v49 = vld [vmem:[%s6957_s21] ss:$0 sm:$0xff]  ;;  %v6915_v5 = vmov 0.0   ;;  %vm685_vm4 = vcmask 1043456   ;;  %s6919_s21 = smov 88   ;;  %s6922_s24 = smov 80  }
  0x90   :  { %v273_v9 = vsel %vm272_vm0, %v7104_v3, 0.0  ;;  %v279_v10 = vsel %vm272_vm0, %v7106_v4, 0.0  ;;  %v276_v11 = vsel %vm272_vm0, %v7110_v7, 0.0  ;;  %v282_v12 = vsel %vm272_vm0, %v7112_v8, 0.0  ;;  %5910 = vmatpush3.bf16.msra.mxu1 %v6481_v33  ;;  %v5577_v54 = vld [vmem:[#allocation2] ss:$0 sm:$0xff]  ;;  %5923 = vmatprep.subr.bf16.mxu0 %v6915_v5 }
  0x91   :  { %274 = vadd.xlane.f32.xlu0 %v273_v9  ;;  %280 = vadd.xlane.f32.xlu1 %v279_v10  ;;  %v5578_v9 = vld [vmem:[#allocation5] ss:$0 sm:$0xff]  ;;  %s6923_s4 = smov 112   ;;  %s6924_s16 = smov 48   ;;  %vm5372_vm8 = vcmask 60416   ;;  %vm5463_vm11 = vcmask 1041409  }
  0x92   :  { %5911 = vmatprep.subr.bf16.mxu1 %v6482_v34  ;;  %5925 = vmatprep.mubr.msk.bf16.mxu0 %vm6916_vm1, %v6915_v5  ;;  %s6925_s18 = smov 72   ;;  %s6926_s22 = smov 104   ;;  %vm5465_vm12 = vcmask 1042434   ;;  %vm5467_vm13 = vcmask 1043459   ;;  %vm5525_vm14 = vcmask 257024  }
  0x93   :  { %s6927_s3 = smov 40   ;;  %s8137_s23 = sld [smem:[#allocation23_spill]] }
  0x94   :  { %5912 = vmatpush3.bf16.msra.mxu1 %v6482_v34  ;;  %s8138_s19 = sld [smem:[#allocation24_spill]] }
  0x95   :  { %277 = vadd.xlane.f32.xlu0 %v276_v11  ;;  %283 = vadd.xlane.f32.xlu1 %v282_v12  ;;  %s8139_s26 = sld [smem:[#allocation26_spill]] }
  0x96   :  { %5917 = vmatprep.subr.bf16.mxu1 %v6915_v5  ;;  %s8140_s28 = sld [smem:[#allocation27_spill]] }
  0x97   :  { %s8141_s1 = sld [smem:[#allocation28_spill]] }
  0x98   :  { %s8142_s2 = sld [smem:[#allocation31_spill]] }
  0x99   :  { %s8143_s0 = sld [smem:[#allocation29_spill]] }
  0x9a   :  { %s8144_s6 = sld [smem:[#allocation30_spill]] }
  0x9b   :  { %s8145_s7 = sld [smem:[#allocation32_spill]] }
  0x9c   :  { %s8146_s25 = sld [smem:[#allocation20_spill]] }
  0x9d   :  { %s8147_s10 = sld [smem:[#allocation33_spill]] }
 0x11a   :  { %v275_v13 = vpop.xlane.xlu0 %274  ;;  %v281_v14 = vpop.xlane.xlu1 %280 }
 0x11b   :  { %v286_v15 = vmul.f32 0.03125, %v275_v13  ;;  %v288_v16 = vmul.f32 0.03125, %v281_v14 }
 0x11d   :  { %v290_v17 = vsub.f32 %v7104_v3, %v286_v15  ;;  %v292_v18 = vsub.f32 %v7106_v4, %v288_v16 }
 0x11e   :  { %v278_v19 = vpop.xlane.xlu0 %277  ;;  %v284_v20 = vpop.xlane.xlu1 %283 }
 0x11f   :  { %v287_v21 = vmul.f32 0.03125, %v278_v19  ;;  %v289_v22 = vmul.f32 0.03125, %v284_v20  ;;  %v294_v23 = vmul.f32 %v290_v17, %v290_v17  ;;  %v296_v24 = vmul.f32 %v292_v18, %v292_v18 }
 0x121   :  { %v291_v25 = vsub.f32 %v7110_v7, %v287_v21  ;;  %v293_v26 = vsub.f32 %v7112_v8, %v289_v22  ;;  %v298_v27 = vsel %vm272_vm0, %v294_v23, 0.0  ;;  %v304_v28 = vsel %vm272_vm0, %v296_v24, 0.0 }
 0x122   :  { %299 = vadd.xlane.f32.xlu0 %v298_v27 }
 0x123   :  { %v295_v29 = vmul.f32 %v291_v25, %v291_v25  ;;  %v297_v30 = vmul.f32 %v293_v26, %v293_v26 }
 0x125   :  { %v301_v31 = vsel %vm272_vm0, %v295_v29, 0.0  ;;  %v307_v32 = vsel %vm272_vm0, %v297_v30, 0.0  ;;  %v228_v29 = vlaneseq }
 0x126   :  { %305 = vadd.xlane.f32.xlu0 %v304_v28  ;;  %302 = vadd.xlane.f32.xlu1 %v301_v31 }
 0x127   :  { %v7181_v30 = vshrl.u32 %v228_v29, 7  ;;  %v231_v31 = vand.u32 127, %v228_v29 }
 0x129   :  { %vm7184_vm3 = vcmp.ge.s32.totalorder %v7181_v30, %v231_v31  ;;  %vm233_vm5 = vcmp.ge.s32.totalorder %v7181_v30, 1  ;;  %vm234_vm6 = vcmp.lt.s32.totalorder %v7181_v30, 3 }
 0x12a   :  { %308 = vadd.xlane.f32.xlu1 %v307_v32  ;;  %vm235_vm7 = vmand %vm233_vm5, %vm234_vm6 }
 0x1ab   :  { %v300_v35 = vpop.xlane.xlu0 %299 }
 0x1ac   :  { %v310_v36 = vmul.f32 0.03125, %v300_v35 }
 0x1ae   :  { %v314_v37 = vadd.f32 1e-05, %v310_v36 }
 0x1af   :  { %v303_v38 = vpop.xlane.xlu1 %302  ;;  %v306_v39 = vpop.xlane.xlu0 %305 }
 0x1b0   :  { %6507 = vrsqrt.f32 %v314_v37  ;;  %v311_v40 = vmul.f32 0.03125, %v303_v38  ;;  %v312_v41 = vmul.f32 0.03125, %v306_v39 }
 0x1b2   :  { %v315_v42 = vadd.f32 1e-05, %v311_v40  ;;  %v316_v43 = vadd.f32 1e-05, %v312_v41 }
 0x1b3   :  { %v309_v44 = vpop.xlane.xlu1 %308 }
 0x1b4   :  { %6509 = vrsqrt.f32 %v315_v42  ;;  %v313_v45 = vmul.f32 0.03125, %v309_v44 }
 0x1b5   :  { %6511 = vrsqrt.f32 %v316_v43 }
 0x1b6   :  { %v317_v46 = vadd.f32 1e-05, %v313_v45 }
 0x1b8   :  { %6513 = vrsqrt.f32 %v317_v46 }
 0x1bd   :  { %v6508_v47 = vpop.eup %6507 }
 0x1be   :  { %v322_v48 = vmul.f32 %v6508_v47, %v290_v17 }
 0x1c0   :  { %v332_v53 = vmul.f32 %v5576_v49, %v322_v48 }
 0x1c1   :  { %v6510_v50 = vpop.eup %6509 }
 0x1c2   :  { %v6512_v51 = vpop.eup %6511  ;;  %v323_v52 = vmul.f32 %v6510_v50, %v291_v25  ;;  %v342_v58 = vadd.f32 %v5577_v54, %v332_v53 }
 0x1c3   :  { %v324_v55 = vmul.f32 %v6512_v51, %v292_v18 }
 0x1c4   :  { %v333_v56 = vmul.f32 %v5576_v49, %v323_v52 }
 0x1c5   :  { %v6514_v57 = vpop.eup %6513  ;;  %v334_v61 = vmul.f32 %v5576_v49, %v324_v55 }
 0x1c6   :  { %v343_v59 = vadd.f32 %v5577_v54, %v333_v56  ;;  %v325_v60 = vmul.f32 %v6514_v57, %v293_v26 }
 0x1c7   :  { %v344_v0 = vadd.f32 %v5577_v54, %v334_v61 }
 0x1c8   :  { %v346_v62 = vpack.c.bf16 %v343_v59, %v342_v58  ;;  %v335_v63 = vmul.f32 %v5576_v49, %v325_v60 }
 0x1ca   :  { %5913 = vmatprep.mubr.msk.bf16.mxu1 %vm272_vm0, %v346_v62  ;;  %v345_v1 = vadd.f32 %v5577_v54, %v335_v63 }
 0x1cc   :  { %v347_v2 = vpack.c.bf16 %v345_v1, %v344_v0 }
 0x1ce   :  { %5914 = vmatmul.mubr.msk.bf16.vlgmr.msra.gmra.mxu1 %vm272_vm0, %v347_v2 }
 0x1cf   :  { %5919 = vmatprep.mubr.msk.bf16.mxu1 %vm6916_vm1, %v6915_v5 }
 0x28e   :  { %v5915_v6 = vpop.f32.mrf.mxu1 }
 0x28f   :  { %v415_v16 = vadd.f32 %v5915_v6, %v5578_v9 }
 0x290   :  { %v406_v10 = vpop.f32.mrf.mxu1 }
 0x291   :  { %v407_v11 = vadd.f32 %v5578_v9, %v406_v10  ;;  %v7149_v18 = vpack.c.bf16 %v415_v16, %v415_v16 }
 0x292   :  { %v5916_v12 = vpop.f32.mrf.mxu1 }
 0x293   :  { %v7141_v13 = vpack.c.bf16 %v407_v11, %v407_v11  ;;  %v418_v19 = vadd.f32 %v5916_v12, %v5578_v9 }
 0x294   :  { %v409_v14 = vpop.f32.mrf.mxu1 }
 0x295   :  { %v410_v15 = vadd.f32 %v5578_v9, %v409_v14  ;;  %426 = vrot.lane.b32.xlu0 %v7141_v13, %s6917_s5  ;;  %v7153_v20 = vpack.c.bf16 %v418_v19, %v418_v19 }
 0x297   :  { %v7145_v17 = vpack.c.bf16 %v410_v15, %v410_v15 }
 0x299   :  { %476 = vrot.lane.b32.xlu1 %v7145_v17, %s6917_s5 }
 0x29d   :  { %525 = vrot.lane.b32.xlu1 %v7149_v18, %s6917_s5 }
 0x2a1   :  { %574 = vrot.lane.b32.xlu1 %v7153_v20, %s6917_s5 }
 0x307   :  { %v427_v21 = vpop.permute.xlu0 %426 }
 0x308   :  { %v433_v22 = vsel %vm428_vm2, %v427_v21, 0 }
 0x309   :  { %5918 = vmatpush3.bf16.xpose.msra.mxu1 %v433_v22 }
 0x30a   :  { %5929 = vmatprep.subr.bf16.mxu1 %v6915_v5 }
 0x30b   :  { %v477_v23 = vpop.permute.xlu1 %476 }
 0x30c   :  { %v482_v24 = vsel %vm428_vm2, %v477_v23, 0 }
 0x30d   :  { %5924 = vmatpush3.bf16.xpose.msra.mxu0 %v482_v24 }
 0x30e   :  { %5935 = vmatprep.subr.bf16.mxu0 %v6915_v5 }
 0x30f   :  { %v526_v25 = vpop.permute.xlu1 %525 }
 0x310   :  { %v531_v26 = vsel %vm428_vm2, %v526_v25, 0  ;;  %5920 = vmatmul.mubr.msk.bf16.vlgmr.msra.gmra.mxu1 %vm428_vm2, %v7141_v13 }
 0x311   :  { %5930 = vmatpush3.bf16.xpose.msra.mxu1 %v531_v26  ;;  %5931 = vmatprep.mubr.msk.bf16.mxu1 %vm6916_vm1, %v6915_v5 }
 0x312   :  { %5941 = vmatprep.subr.bf16.mxu1 %v6915_v5 }
 0x313   :  { %v575_v27 = vpop.permute.xlu1 %574 }
 0x314   :  { %v580_v28 = vsel %vm428_vm2, %v575_v27, 0  ;;  %5926 = vmatmul.mubr.msk.bf16.vlgmr.msra.gmra.mxu0 %vm428_vm2, %v7145_v17 }
 0x315   :  { %5936 = vmatpush3.bf16.xpose.msra.mxu0 %v580_v28  ;;  %5937 = vmatprep.mubr.msk.bf16.mxu0 %vm6916_vm1, %v6915_v5 }
 0x316   :  { %5947 = vmatprep.subr.bf16.mxu0 %v6915_v5 }
 0x318   :  { %5932 = vmatmul.mubr.msk.bf16.vlgmr.msra.gmra.mxu1 %vm428_vm2, %v7149_v18 }
 0x319   :  { %5943 = vmatprep.mubr.msk.bf16.mxu1 %vm6916_vm1, %v6915_v5 }
 0x31c   :  { %5938 = vmatmul.mubr.msk.bf16.vlgmr.msra.gmra.mxu0 %vm428_vm2, %v7153_v20 }
 0x31d   :  { %5949 = vmatprep.mubr.msk.bf16.mxu0 %vm6916_vm1, %v6915_v5 }
 0x3d0   :  { %v469_v32 = vpop.f32.mrf.mxu1 }
 0x3d1   :  { %v622_v34 = vmul.f32 0.35355338, %v469_v32 }
 0x3d2   :  { %v5921_v35 = vpop.f32.mrf.mxu1 }
 0x3d3   :  { %v628_v36 = vsel %vm7184_vm3, %v622_v34, -1e+30 }
 0x3d4   :  { %v472_v37 = vpop.f32.mrf.mxu1  ;;  %v518_v38 = vpop.f32.mrf.mxu0  ;;  %v632_v39 = vsel %vm428_vm2, %v628_v36, -inf }
 0x3d5   :  { %v623_v40 = vmul.f32 0.35355338, %v518_v38  ;;  %633 = vmax.xlane.f32.xlu0 %v632_v39 }
 0x3d6   :  { %v5922_v41 = vpop.f32.mrf.mxu1  ;;  %v5927_v42 = vpop.f32.mrf.mxu0 }
 0x3d7   :  { %v629_v43 = vsel %vm7184_vm3, %v623_v40, -1e+30 }
 0x3d8   :  { %v521_v44 = vpop.f32.mrf.mxu0  ;;  %v567_v45 = vpop.f32.mrf.mxu1  ;;  %v635_v46 = vsel %vm428_vm2, %v629_v43, -inf }
 0x3d9   :  { %v624_v47 = vmul.f32 0.35355338, %v567_v45  ;;  %636 = vmax.xlane.f32.xlu1 %v635_v46 }
 0x3da   :  { %v5928_v48 = vpop.f32.mrf.mxu0  ;;  %v5933_v49 = vpop.f32.mrf.mxu1 }
 0x3db   :  { %v630_v50 = vsel %vm7184_vm3, %v624_v47, -1e+30 }
 0x3dc   :  { %v570_v51 = vpop.f32.mrf.mxu1  ;;  %v616_v52 = vpop.f32.mrf.mxu0  ;;  %v638_v53 = vsel %vm428_vm2, %v630_v50, -inf }
 0x3dd   :  { %v625_v54 = vmul.f32 0.35355338, %v616_v52  ;;  %639 = vmax.xlane.f32.xlu0 %v638_v53 }
 0x3de   :  { %v5934_v55 = vpop.f32.mrf.mxu1  ;;  %v5939_v56 = vpop.f32.mrf.mxu0 }
 0x3df   :  { %v631_v57 = vsel %vm7184_vm3, %v625_v54, -1e+30 }
 0x3e0   :  { %v619_v58 = vpop.f32.mrf.mxu0  ;;  %v641_v59 = vsel %vm428_vm2, %v631_v57, -inf }
 0x3e1   :  { %642 = vmax.xlane.f32.xlu0 %v641_v59 }
 0x3e2   :  { %v5940_v60 = vpop.f32.mrf.mxu0 }
 0x3ea   :  { %729 = vrot.lane.b32.xlu1 %v7145_v17, %s6918_s9 }
 0x3ee   :  { %777 = vrot.lane.b32.xlu1 %v7149_v18, %s6918_s9 }
 0x3f2   :  { %825 = vrot.lane.b32.xlu1 %v7153_v20, %s6918_s9 }
 0x45e   :  { %v634_v61 = vpop.xlane.xlu0 %633 }
 0x45f   :  { %v644_v62 = vsub.f32 %v628_v36, %v634_v61 }
 0x461   :  { %v648_v63 = vmul.f32 1.442695, %v644_v62 }
 0x462   :  { %v637_v0 = vpop.xlane.xlu1 %636 }
 0x463   :  { %6515 = vpow2.f32 %v648_v63  ;;  %v645_v1 = vsub.f32 %v629_v43, %v637_v0 }
 0x465   :  { %v650_v2 = vmul.f32 1.442695, %v645_v1 }
 0x466   :  { %v730_v6 = vpop.permute.xlu1 %729  ;;  %v640_v15 = vpop.xlane.xlu0 %639 }
 0x467   :  { %6517 = vpow2.f32 %v650_v2  ;;  %v735_v9 = vsel %vm685_vm4, %v730_v6, 0  ;;  %v646_v16 = vsub.f32 %v630_v50, %v640_v15 }
 0x468   :  { %5948 = vmatpush3.bf16.msra.mxu0 %v735_v9 }
 0x469   :  { %5959 = vmatprep.subr.bf16.mxu0 %v6915_v5  ;;  %v652_v21 = vmul.f32 1.442695, %v646_v16 }
 0x46a   :  { %v643_v19 = vpop.xlane.xlu0 %642  ;;  %v778_v28 = vpop.permute.xlu1 %777 }
 0x46b   :  { %v647_v22 = vsub.f32 %v631_v57, %v643_v19  ;;  %6519 = vpow2.f32 %v652_v21  ;;  %v783_v40 = vsel %vm685_vm4, %v778_v28, 0 }
 0x46d   :  { %v654_v23 = vmul.f32 1.442695, %v647_v22 }
 0x46e   :  { %v826_v29 = vpop.permute.xlu1 %825 }
 0x46f   :  { %6521 = vpow2.f32 %v654_v23  ;;  %v831_v43 = vsel %vm685_vm4, %v826_v29, 0 }
 0x470   :  { %v6516_v10 = vpop.eup %6515 }
 0x471   :  { %v656_v11 = vsel %vm428_vm2, %v6516_v10, 0.0 }
 0x472   :  { %657 = vadd.xlane.f32.xlu0 %v656_v11 }
 0x474   :  { %v6518_v12 = vpop.eup %6517 }
 0x475   :  { %v659_v14 = vsel %vm428_vm2, %v6518_v12, 0.0 }
 0x476   :  { %660 = vadd.xlane.f32.xlu1 %v659_v14 }
 0x478   :  { %v6520_v24 = vpop.eup %6519 }
 0x479   :  { %v662_v25 = vsel %vm428_vm2, %v6520_v24, 0.0 }
 0x47c   :  { %v6522_v26 = vpop.eup %6521 }
 0x47d   :  { %v665_v27 = vsel %vm428_vm2, %v6522_v26, 0.0 }
 0x487   :  { %927 = vrot.lane.b32.xlu1 %v7145_v17, %s6919_s21 }
 0x488   :  { %680 = vrot.lane.b32.xlu0 %v7141_v13, %s6918_s9 }
 0x4a7   :  { %663 = vadd.xlane.f32.xlu0 %v662_v25 }
 0x4ab   :  { %666 = vadd.xlane.f32.xlu1 %v665_v27 }
 0x4bc   :  { %925 = vrot.lane.b32.xlu1 %v7145_v17, %s6920_s29 }
 0x4bd   :  { %877 = vrot.lane.b32.xlu0 %v7141_v13, %s6919_s21 }
 0x4c0   :  { %1027 = vrot.lane.b32.xlu1 %v7153_v20, %s6919_s21 }
 0x4c1   :  { %875 = vrot.lane.b32.xlu0 %v7141_v13, %s6920_s29 }
 0x4c4   :  { %1025 = vrot.lane.b32.xlu1 %v7153_v20, %s6920_s29 }
 0x4c5   :  { %977 = vrot.lane.b32.xlu0 %v7149_v18, %s6919_s21 }
 0x4c9   :  { %975 = vrot.lane.b32.xlu0 %v7149_v18, %s6920_s29 }
 0x4fb   :  { %v658_v31 = vpop.xlane.xlu0 %657 }
 0x4fc   :  { %6523 = vrcp.f32 %v658_v31 }
 0x4ff   :  { %v661_v32 = vpop.xlane.xlu1 %660  ;;  %v681_v34 = vpop.permute.xlu0 %680 }
 0x500   :  { %6525 = vrcp.f32 %v661_v32  ;;  %v687_v35 = vsel %vm685_vm4, %v681_v34, 0 }
 0x501   :  { %5942 = vmatpush3.bf16.msra.mxu1 %v687_v35 }
 0x502   :  { %5953 = vmatprep.subr.bf16.mxu1 %v6915_v5 }
 0x503   :  { %v928_v44 = vpop.permute.xlu1 %927 }
 0x504   :  { %v933_v57 = vsel %vm428_vm2, %v928_v44, 0 }
 0x509   :  { %v6524_v36 = vpop.eup %6523 }
 0x50a   :  { %v672_v37 = vmul.f32 %v6524_v36, %v6516_v10 }
 0x50c   :  { %v676_v38 = vpack.c.bf16 %v672_v37, %v672_v37 }
 0x50d   :  { %v6526_v39 = vpop.eup %6525 }
 0x50e   :  { %5944 = vmatmul.mubr.msk.bf16.vlgmr.msra.gmra.mxu1 %vm428_vm2, %v676_v38  ;;  %v673_v41 = vmul.f32 %v6526_v39, %v6518_v12 }
 0x50f   :  { %5954 = vmatpush3.bf16.msra.mxu1 %v783_v40  ;;  %5955 = vmatprep.mubr.msk.bf16.mxu1 %vm6916_vm1, %v6915_v5 }
 0x510   :  { %v677_v42 = vpack.c.bf16 %v673_v41, %v673_v41  ;;  %5965 = vmatprep.subr.bf16.mxu1 %v6915_v5 }
 0x512   :  { %5950 = vmatmul.mubr.msk.bf16.vlgmr.msra.gmra.mxu0 %vm428_vm2, %v677_v42 }
 0x513   :  { %5960 = vmatpush3.bf16.msra.mxu0 %v831_v43  ;;  %5961 = vmatprep.mubr.msk.bf16.mxu0 %vm6916_vm1, %v6915_v5 }
 0x514   :  { %5971 = vmatprep.subr.bf16.mxu0 %v6915_v5 }
 0x530   :  { %v664_v45 = vpop.xlane.xlu0 %663 }
 0x531   :  { %6527 = vrcp.f32 %v664_v45 }
 0x534   :  { %v667_v46 = vpop.xlane.xlu1 %666  ;;  %v878_v47 = vpop.permute.xlu0 %877 }
 0x535   :  { %6529 = vrcp.f32 %v667_v46  ;;  %v883_v53 = vsel %vm428_vm2, %v878_v47, 0 }
 0x538   :  { %v876_v52 = vpop.permute.xlu0 %875  ;;  %v926_v56 = vpop.permute.xlu1 %925 }
 0x53c   :  { %v978_v58 = vpop.permute.xlu0 %977  ;;  %v1028_v60 = vpop.permute.xlu1 %1027 }
 0x53d   :  { %v983_v59 = vsel %vm428_vm2, %v978_v58, 0  ;;  %v1033_v61 = vsel %vm428_vm2, %v1028_v60, 0 }
 0x53e   :  { %v6528_v48 = vpop.eup %6527 }
 0x53f   :  { %v674_v49 = vmul.f32 %v6528_v48, %v6520_v24 }
 0x540   :  { %v976_v62 = vpop.permute.xlu0 %975  ;;  %v1026_v63 = vpop.permute.xlu1 %1025 }
 0x541   :  { %v678_v50 = vpack.c.bf16 %v674_v49, %v674_v49 }
 0x542   :  { %v6530_v51 = vpop.eup %6529 }
 0x543   :  { %5956 = vmatmul.mubr.msk.bf16.vlgmr.msra.gmra.mxu1 %vm428_vm2, %v678_v50  ;;  %v675_v54 = vmul.f32 %v6530_v51, %v6522_v26 }
 0x544   :  { %5966 = vmatpush3.bf16.xpose.msra.mxu1 %v883_v53  ;;  %5967 = vmatprep.mubr.msk.bf16.mxu1 %vm6916_vm1, %v6915_v5 }
 0x545   :  { %v679_v55 = vpack.c.bf16 %v675_v54, %v675_v54  ;;  %5977 = vmatprep.subr.bf16.mxu1 %v6915_v5 }
 0x547   :  { %5962 = vmatmul.mubr.msk.bf16.vlgmr.msra.gmra.mxu0 %vm428_vm2, %v679_v55 }
 0x548   :  { %5972 = vmatpush3.bf16.xpose.msra.mxu0 %v933_v57  ;;  %5973 = vmatprep.mubr.msk.bf16.mxu0 %vm6916_vm1, %v6915_v5 }
 0x549   :  { %5983 = vmatprep.subr.bf16.mxu0 %v6915_v5 }
 0x54b   :  { %5968 = vmatmul.mubr.msk.bf16.vlgmr.msra.gmra.mxu1 %vm428_vm2, %v876_v52 }
 0x54c   :  { %5978 = vmatpush3.bf16.xpose.msra.mxu1 %v983_v59  ;;  %5979 = vmatprep.mubr.msk.bf16.mxu1 %vm6916_vm1, %v6915_v5 }
 0x54d   :  { %5989 = vmatprep.subr.bf16.mxu1 %v6915_v5 }
 0x54f   :  { %5974 = vmatmul.mubr.msk.bf16.vlgmr.msra.gmra.mxu0 %vm428_vm2, %v926_v56 }
 0x550   :  { %5984 = vmatpush3.bf16.xpose.msra.mxu0 %v1033_v61  ;;  %5985 = vmatprep.mubr.msk.bf16.mxu0 %vm6916_vm1, %v6915_v5 }
 0x551   :  { %5995 = vmatprep.subr.bf16.mxu0 %v6915_v5 }
 0x553   :  { %5980 = vmatmul.mubr.msk.bf16.vlgmr.msra.gmra.mxu1 %vm428_vm2, %v976_v62 }
 0x554   :  { %5991 = vmatprep.mubr.msk.bf16.mxu1 %vm6916_vm1, %v6915_v5 }
 0x557   :  { %5986 = vmatmul.mubr.msk.bf16.vlgmr.msra.gmra.mxu0 %vm428_vm2, %v1026_v63 }
 0x558   :  { %5997 = vmatprep.mubr.msk.bf16.mxu0 %vm6916_vm1, %v6915_v5 }
 0x5ce   :  { %v7268_v0 = vpop.f32.mrf.mxu1 }
 0x5d0   :  { %v5945_v1 = vpop.f32.mrf.mxu1 }
 0x5d2   :  { %v726_v2 = vpop.f32.mrf.mxu1  ;;  %v7270_v6 = vpop.f32.mrf.mxu0 }
 0x5d3   :  { %v873_v9 = vpack.c.bf16 %v7270_v6, %v7268_v0 }
 0x5d4   :  { %v5946_v10 = vpop.f32.mrf.mxu1  ;;  %v5951_v11 = vpop.f32.mrf.mxu0 }
 0x5d6   :  { %v774_v12 = vpop.f32.mrf.mxu0 }
 0x5d8   :  { %v5952_v14 = vpop.f32.mrf.mxu0 }
 0x603   :  { %v7274_v15 = vpop.f32.mrf.mxu1 }
 0x605   :  { %v5957_v16 = vpop.f32.mrf.mxu1 }
 0x607   :  { %v822_v19 = vpop.f32.mrf.mxu1  ;;  %v7276_v21 = vpop.f32.mrf.mxu0 }
 0x608   :  { %v874_v22 = vpack.c.bf16 %v7276_v21, %v7274_v15 }
 0x609   :  { %v5958_v23 = vpop.f32.mrf.mxu1  ;;  %v5963_v24 = vpop.f32.mrf.mxu0 }
 0x60b   :  { %v870_v25 = vpop.f32.mrf.mxu0  ;;  %v919_v26 = vpop.f32.mrf.mxu1 }
 0x60c   :  { %v1075_v27 = vmul.f32 0.35355338, %v919_v26 }
 0x60d   :  { %v5964_v28 = vpop.f32.mrf.mxu0  ;;  %v5969_v29 = vpop.f32.mrf.mxu1 }
 0x60e   :  { %v1079_v31 = vsel %vm7184_vm3, %v1075_v27, -1e+30 }
 0x60f   :  { %v922_v32 = vpop.f32.mrf.mxu1  ;;  %v969_v34 = vpop.f32.mrf.mxu0  ;;  %v1083_v35 = vsel %vm428_vm2, %v1079_v31, -inf }
 0x610   :  { %v1076_v36 = vmul.f32 0.35355338, %v969_v34  ;;  %1084 = vmax.xlane.f32.xlu0 %v1083_v35 }
 0x611   :  { %v5970_v37 = vpop.f32.mrf.mxu1  ;;  %v5975_v38 = vpop.f32.mrf.mxu0 }
 0x612   :  { %v1080_v39 = vsel %vm7184_vm3, %v1076_v36, -1e+30 }
 0x613   :  { %v972_v40 = vpop.f32.mrf.mxu0  ;;  %v1019_v41 = vpop.f32.mrf.mxu1  ;;  %v1086_v42 = vsel %vm428_vm2, %v1080_v39, -inf }
 0x614   :  { %v1077_v43 = vmul.f32 0.35355338, %v1019_v41  ;;  %1087 = vmax.xlane.f32.xlu1 %v1086_v42 }
 0x615   :  { %v5976_v44 = vpop.f32.mrf.mxu0  ;;  %v5981_v45 = vpop.f32.mrf.mxu1 }
 0x616   :  { %v1081_v46 = vsel %vm7184_vm3, %v1077_v43, -1e+30 }
 0x617   :  { %v1022_v47 = vpop.f32.mrf.mxu1  ;;  %v1069_v48 = vpop.f32.mrf.mxu0  ;;  %v1089_v49 = vsel %vm428_vm2, %v1081_v46, -inf }
 0x618   :  { %v1078_v50 = vmul.f32 0.35355338, %v1069_v48  ;;  %1090 = vmax.xlane.f32.xlu0 %v1089_v49 }
 0x619   :  { %v5982_v51 = vpop.f32.mrf.mxu1  ;;  %v5987_v52 = vpop.f32.mrf.mxu0 }
 0x61a   :  { %v1082_v53 = vsel %vm7184_vm3, %v1078_v50, -1e+30  ;;  %v243_v50 = vld [vmem:[%s6977_s8] sm:$0xf] }
 0x61b   :  { %v1072_v54 = vpop.f32.mrf.mxu0  ;;  %v1092_v55 = vsel %vm428_vm2, %v1082_v53, -inf }
 0x61c   :  { %1093 = vmax.xlane.f32.xlu0 %v1092_v55  ;;  %v1390_v55 = vsel %vm685_vm4, %v243_v50, 0 }
 0x61d   :  { %v5988_v56 = vpop.f32.mrf.mxu0 }
 0x699   :  { %v1085_v57 = vpop.xlane.xlu0 %1084 }
 0x69a   :  { %v1095_v58 = vsub.f32 %v1079_v31, %v1085_v57 }
 0x69c   :  { %v1099_v59 = vmul.f32 1.442695, %v1095_v58 }
 0x69d   :  { %v1088_v60 = vpop.xlane.xlu1 %1087 }
 0x69e   :  { %6531 = vpow2.f32 %v1099_v59  ;;  %v1096_v61 = vsub.f32 %v1080_v39, %v1088_v60 }
 0x6a0   :  { %v1101_v62 = vmul.f32 1.442695, %v1096_v61 }
 0x6a1   :  { %v1091_v63 = vpop.xlane.xlu0 %1090 }
 0x6a2   :  { %6533 = vpow2.f32 %v1101_v62  ;;  %v1097_v1 = vsub.f32 %v1081_v46, %v1091_v63 }
 0x6a4   :  { %v1103_v2 = vmul.f32 1.442695, %v1097_v1 }
 0x6a5   :  { %v1094_v23 = vpop.xlane.xlu0 %1093 }
 0x6a6   :  { %6535 = vpow2.f32 %v1103_v2  ;;  %v1098_v24 = vsub.f32 %v1082_v53, %v1094_v23 }
 0x6a8   :  { %v1105_v25 = vmul.f32 1.442695, %v1098_v24 }
 0x6aa   :  { %6537 = vpow2.f32 %v1105_v25 }
 0x6ab   :  { %v6532_v10 = vpop.eup %6531 }
 0x6ac   :  { %v1107_v11 = vsel %vm428_vm2, %v6532_v10, 0.0 }
 0x6ad   :  { %1108 = vadd.xlane.f32.xlu0 %v1107_v11 }
 0x6af   :  { %v6534_v12 = vpop.eup %6533 }
 0x6b0   :  { %v1110_v14 = vsel %vm428_vm2, %v6534_v12, 0.0 }
 0x6b1   :  { %1111 = vadd.xlane.f32.xlu1 %v1110_v14 }
 0x6b3   :  { %v6536_v16 = vpop.eup %6535 }
 0x6b4   :  { %v1113_v19 = vsel %vm428_vm2, %v6536_v16, 0.0 }
 0x6b5   :  { %1114 = vadd.xlane.f32.xlu0 %v1113_v19 }
 0x6b7   :  { %v6538_v26 = vpop.eup %6537 }
 0x6b8   :  { %v1116_v27 = vsel %vm428_vm2, %v6538_v26, 0.0 }
 0x6c2   :  { %1179 = vrot.lane.b32.xlu1 %v7145_v17, %s6921_s14 }
 0x6c6   :  { %1227 = vrot.lane.b32.xlu1 %v7149_v18, %s6921_s14 }
 0x6cb   :  { %1131 = vrot.lane.b32.xlu0 %v7141_v13, %s6921_s14 }
 0x6cf   :  { %1443 = vrot.lane.b32.xlu0 %v7141_v13, %s6922_s24 }
 0x6d3   :  { %1441 = vrot.lane.b32.xlu0 %v7141_v13, %s6923_s4 }
 0x6d7   :  { %1543 = vrot.lane.b32.xlu0 %v7149_v18, %s6922_s24 }
 0x6db   :  { %1541 = vrot.lane.b32.xlu0 %v7149_v18, %s6923_s4 }
 0x6ea   :  { %1117 = vadd.xlane.f32.xlu1 %v1116_v27 }
 0x6fb   :  { %1275 = vrot.lane.b32.xlu1 %v7153_v20, %s6921_s14 }
 0x6ff   :  { %1493 = vrot.lane.b32.xlu1 %v7145_v17, %s6922_s24 }
 0x703   :  { %1491 = vrot.lane.b32.xlu1 %v7145_v17, %s6923_s4 }
 0x707   :  { %1593 = vrot.lane.b32.xlu1 %v7153_v20, %s6922_s24 }
 0x70b   :  { %1591 = vrot.lane.b32.xlu1 %v7153_v20, %s6923_s4 }
 0x736   :  { %v1109_v28 = vpop.xlane.xlu0 %1108 }
 0x737   :  { %6539 = vrcp.f32 %v1109_v28 }
 0x73a   :  { %v1112_v29 = vpop.xlane.xlu1 %1111 }
 0x73b   :  { %6541 = vrcp.f32 %v1112_v29 }
 0x73e   :  { %v1180_v31 = vpop.permute.xlu1 %1179  ;;  %v1115_v32 = vpop.xlane.xlu0 %1114 }
 0x73f   :  { %v1185_v34 = vsel %vm685_vm4, %v1180_v31, 0  ;;  %6543 = vrcp.f32 %v1115_v32 }
 0x740   :  { %5996 = vmatpush3.bf16.msra.mxu0 %v1185_v34 }
 0x741   :  { %6007 = vmatprep.subr.bf16.mxu0 %v6915_v5 }
 0x742   :  { %v1132_v35 = vpop.permute.xlu0 %1131  ;;  %v1228_v39 = vpop.permute.xlu1 %1227 }
 0x743   :  { %v1137_v36 = vsel %vm685_vm4, %v1132_v35, 0  ;;  %v1233_v42 = vsel %vm685_vm4, %v1228_v39, 0 }
 0x744   :  { %v6540_v37 = vpop.eup %6539  ;;  %5990 = vmatpush3.bf16.msra.mxu1 %v1137_v36 }
 0x745   :  { %6001 = vmatprep.subr.bf16.mxu1 %v6915_v5  ;;  %v1123_v38 = vmul.f32 %v6540_v37, %v6532_v10 }
 0x746   :  { %v1444_v19 = vpop.permute.xlu0 %1443 }
 0x747   :  { %v1127_v40 = vpack.c.bf16 %v1123_v38, %v1123_v38  ;;  %v1449_v27 = vsel %vm428_vm2, %v1444_v19, 0 }
 0x748   :  { %v6542_v41 = vpop.eup %6541 }
 0x749   :  { %5992 = vmatmul.mubr.msk.bf16.vlgmr.msra.gmra.mxu1 %vm428_vm2, %v1127_v40  ;;  %v1124_v43 = vmul.f32 %v6542_v41, %v6534_v12 }
 0x74a   :  { %6002 = vmatpush3.bf16.msra.mxu1 %v1233_v42  ;;  %6003 = vmatprep.mubr.msk.bf16.mxu1 %vm6916_vm1, %v6915_v5  ;;  %v1442_v25 = vpop.permute.xlu0 %1441 }
 0x74b   :  { %v1128_v44 = vpack.c.bf16 %v1124_v43, %v1124_v43 }
 0x74c   :  { %v6544_v45 = vpop.eup %6543 }
 0x74d   :  { %5998 = vmatmul.mubr.msk.bf16.vlgmr.msra.gmra.mxu0 %vm428_vm2, %v1128_v44  ;;  %v1125_v46 = vmul.f32 %v6544_v45, %v6536_v16 }
 0x74e   :  { %6009 = vmatprep.mubr.msk.bf16.mxu0 %vm6916_vm1, %v6915_v5  ;;  %v1544_v31 = vpop.permute.xlu0 %1543 }
 0x74f   :  { %v1129_v47 = vpack.c.bf16 %v1125_v46, %v1125_v46  ;;  %v1549_v35 = vsel %vm428_vm2, %v1544_v31, 0 }
 0x751   :  { %6004 = vmatmul.mubr.msk.bf16.vlgmr.msra.gmra.mxu1 %vm428_vm2, %v1129_v47 }
 0x752   :  { %v1542_v40 = vpop.permute.xlu0 %1541 }
 0x773   :  { %v1118_v48 = vpop.xlane.xlu1 %1117 }
 0x774   :  { %6545 = vrcp.f32 %v1118_v48 }
 0x777   :  { %v1276_v49 = vpop.permute.xlu1 %1275 }
 0x778   :  { %v1281_v51 = vsel %vm685_vm4, %v1276_v49, 0 }
 0x779   :  { %6008 = vmatpush3.bf16.msra.mxu0 %v1281_v51 }
 0x77a   :  { %6422 = vmatprep.subr.msk.bf16.mxu0 %vm685_vm4, %v243_v50 }
 0x77b   :  { %v1494_v56 = vpop.permute.xlu1 %1493 }
 0x77c   :  { %v1499_v58 = vsel %vm428_vm2, %v1494_v56, 0 }
 0x77f   :  { %v1492_v57 = vpop.permute.xlu1 %1491 }
 0x781   :  { %v6546_v52 = vpop.eup %6545 }
 0x782   :  { %v1126_v53 = vmul.f32 %v6546_v52, %v6538_v26 }
 0x783   :  { %v1594_v0 = vpop.permute.xlu1 %1593 }
 0x784   :  { %v1130_v54 = vpack.c.bf16 %v1126_v53, %v1126_v53  ;;  %v1599_v6 = vsel %vm428_vm2, %v1594_v0, 0 }
 0x786   :  { %6010 = vmatmul.mubr.msk.bf16.vlgmr.msra.gmra.mxu0 %vm428_vm2, %v1130_v54 }
 0x787   :  { %6021 = vmatprep.mubr.msk.bf16.mxu0 %vm428_vm2, %v873_v9  ;;  %6020 = vmatpush3.bf16.msra.mxu0 %v1390_v55  ;;  %v244_v9 = vld [vmem:[%s6977_s8 + $0x4] sm:$0xf]  ;;  %v1592_v21 = vpop.permute.xlu1 %1591 }
 0x788   :  { %6031 = vmatprep.subr.bf16.mxu0 %v6915_v5  ;;  %6421 = vmatprep.subr.msk.bf16.mxu1 %vm685_vm4, %v244_v9  ;;  %v1332_v15 = vsel %vm685_vm4, %v244_v9, 0 }
 0x789   :  { %6014 = vmatpush3.bf16.msra.mxu1 %v1332_v15 }
 0x78a   :  { %6025 = vmatprep.subr.bf16.mxu1 %v6915_v5 }
 0x78e   :  { %6022 = vmatmul.mubr.msk.bf16.vlgmr.msra.gmra.mxu0 %vm428_vm2, %v874_v22 }
 0x78f   :  { %6032 = vmatpush3.bf16.xpose.msra.mxu0 %v1499_v58  ;;  %6033 = vmatprep.mubr.msk.bf16.mxu0 %vm6916_vm1, %v6915_v5 }
 0x790   :  { %6043 = vmatprep.subr.bf16.mxu0 %v6915_v5 }
 0x796   :  { %6034 = vmatmul.mubr.msk.bf16.vlgmr.msra.gmra.mxu0 %vm428_vm2, %v1492_v57 }
 0x797   :  { %6044 = vmatpush3.bf16.xpose.msra.mxu0 %v1599_v6  ;;  %6045 = vmatprep.mubr.msk.bf16.mxu0 %vm6916_vm1, %v6915_v5 }
 0x798   :  { %6055 = vmatprep.subr.bf16.mxu0 %v6915_v5 }
 0x79e   :  { %6046 = vmatmul.mubr.msk.bf16.vlgmr.msra.gmra.mxu0 %vm428_vm2, %v1592_v21 }
 0x79f   :  { %6057 = vmatprep.mubr.msk.bf16.mxu0 %vm6916_vm1, %v6915_v5 }
 0x809   :  { %v1173_v22 = vpop.f32.mrf.mxu1 }
 0x80b   :  { %v5993_v59 = vpop.f32.mrf.mxu1 }
 0x80d   :  { %v1176_v60 = vpop.f32.mrf.mxu1  ;;  %v1221_v61 = vpop.f32.mrf.mxu0 }
 0x80e   :  { %v1323_v62 = vpack.c.bf16 %v1221_v61, %v1173_v22 }
 0x80f   :  { %v5994_v63 = vpop.f32.mrf.mxu1  ;;  %v5999_v1 = vpop.f32.mrf.mxu0 }
 0x810   :  { %6015 = vmatprep.mubr.msk.bf16.mxu1 %vm428_vm2, %v1323_v62 }
 0x811   :  { %v1224_v2 = vpop.f32.mrf.mxu0  ;;  %v1269_v10 = vpop.f32.mrf.mxu1 }
 0x813   :  { %v6000_v11 = vpop.f32.mrf.mxu0  ;;  %v6005_v12 = vpop.f32.mrf.mxu1 }
 0x815   :  { %v1272_v14 = vpop.f32.mrf.mxu1 }
 0x817   :  { %v6006_v16 = vpop.f32.mrf.mxu1 }
 0x846   :  { %v1317_v23 = vpop.f32.mrf.mxu0 }
 0x847   :  { %v1324_v24 = vpack.c.bf16 %v1317_v23, %v1269_v10 }
 0x848   :  { %v6011_v26 = vpop.f32.mrf.mxu0 }
 0x849   :  { %6016 = vmatmul.mubr.msk.bf16.vlgmr.msra.gmra.mxu1 %vm428_vm2, %v1324_v24 }
 0x84a   :  { %6026 = vmatpush3.bf16.xpose.msra.mxu1 %v1449_v27  ;;  %v1320_v28 = vpop.f32.mrf.mxu0  ;;  %6027 = vmatprep.mubr.msk.bf16.mxu1 %vm6916_vm1, %v6915_v5 }
 0x84b   :  { %6037 = vmatprep.subr.bf16.mxu1 %v6915_v5 }
 0x84c   :  { %v6012_v29 = vpop.f32.mrf.mxu0 }
 0x84e   :  { %v7368_v32 = vpop.f32.mrf.mxu0 }
 0x850   :  { %v7370_v34 = vpop.f32.mrf.mxu0 }
 0x851   :  { %6028 = vmatmul.mubr.msk.bf16.vlgmr.msra.gmra.mxu1 %vm428_vm2, %v1442_v25 }
 0x852   :  { %6038 = vmatpush3.bf16.xpose.msra.mxu1 %v1549_v35  ;;  %v7374_v36 = vpop.f32.mrf.mxu0  ;;  %6039 = vmatprep.mubr.msk.bf16.mxu1 %vm6916_vm1, %v6915_v5 }
 0x853   :  { %6049 = vmatprep.subr.bf16.mxu1 %v6915_v5 }
 0x854   :  { %v7379_v37 = vpop.f32.mrf.mxu0 }
 0x856   :  { %v1535_v38 = vpop.f32.mrf.mxu0 }
 0x857   :  { %v1642_v39 = vmul.f32 0.35355338, %v1535_v38 }
 0x858   :  { %v6035_v41 = vpop.f32.mrf.mxu0 }
 0x859   :  { %6040 = vmatmul.mubr.msk.bf16.vlgmr.msra.gmra.mxu1 %vm428_vm2, %v1542_v40  ;;  %v1646_v42 = vsel %vm7184_vm3, %v1642_v39, -1e+30 }
 0x85a   :  { %v1538_v43 = vpop.f32.mrf.mxu0  ;;  %v1652_v44 = vsel %vm428_vm2, %v1646_v42, -inf  ;;  %6051 = vmatprep.mubr.msk.bf16.mxu1 %vm6916_vm1, %v6915_v5 }
 0x85b   :  { %1653 = vmax.xlane.f32.xlu1 %v1652_v44 }
 0x85c   :  { %v6036_v45 = vpop.f32.mrf.mxu0 }
 0x85e   :  { %v1635_v46 = vpop.f32.mrf.mxu0 }
 0x85f   :  { %v1644_v61 = vmul.f32 0.35355338, %v1635_v46 }
 0x860   :  { %v6047_v47 = vpop.f32.mrf.mxu0 }
 0x861   :  { %v1648_v11 = vsel %vm7184_vm3, %v1644_v61, -1e+30 }
 0x862   :  { %v1638_v48 = vpop.f32.mrf.mxu0  ;;  %v1658_v14 = vsel %vm428_vm2, %v1648_v11, -inf }
 0x864   :  { %v6048_v49 = vpop.f32.mrf.mxu0 }
 0x8e4   :  { %v1654_v50 = vpop.xlane.xlu1 %1653 }
 0x8e5   :  { %v1662_v51 = vsub.f32 %v1646_v42, %v1654_v50 }
 0x8e7   :  { %v1667_v52 = vmul.f32 1.442695, %v1662_v51 }
 0x8e9   :  { %6547 = vpow2.f32 %v1667_v52 }
 0x8f6   :  { %v7387_v53 = vpop.eup %6547 }
 0x8f7   :  { %v1676_v54 = vsel %vm428_vm2, %v7387_v53, 0.0 }
 0x8f8   :  { %1677 = vadd.xlane.f32.xlu1 %v1676_v54 }
 0x909   :  { %v7391_v55 = vpop.f32.mrf.mxu1 }
 0x90b   :  { %v7393_v56 = vpop.f32.mrf.mxu1 }
 0x90d   :  { %v7395_v57 = vpop.f32.mrf.mxu1 }
 0x90f   :  { %v7397_v58 = vpop.f32.mrf.mxu1 }
 0x911   :  { %v1485_v0 = vpop.f32.mrf.mxu1 }
 0x912   :  { %v1641_v6 = vmul.f32 0.35355338, %v1485_v0 }
 0x913   :  { %v6029_v9 = vpop.f32.mrf.mxu1 }
 0x914   :  { %v1645_v15 = vsel %vm7184_vm3, %v1641_v6, -1e+30 }
 0x915   :  { %v1488_v21 = vpop.f32.mrf.mxu1  ;;  %v1649_v22 = vsel %vm428_vm2, %v1645_v15, -inf }
 0x916   :  { %1650 = vmax.xlane.f32.xlu0 %v1649_v22 }
 0x917   :  { %v6030_v59 = vpop.f32.mrf.mxu1 }
 0x919   :  { %v1585_v60 = vpop.f32.mrf.mxu1 }
 0x91a   :  { %v1643_v62 = vmul.f32 0.35355338, %v1585_v60 }
 0x91b   :  { %v6041_v63 = vpop.f32.mrf.mxu1 }
 0x91c   :  { %v1647_v1 = vsel %vm7184_vm3, %v1643_v62, -1e+30 }
 0x91d   :  { %v1588_v2 = vpop.f32.mrf.mxu1  ;;  %v1655_v10 = vsel %vm428_vm2, %v1647_v1, -inf }
 0x91e   :  { %1656 = vmax.xlane.f32.xlu0 %v1655_v10 }
 0x91f   :  { %v6042_v12 = vpop.f32.mrf.mxu1 }
 0x922   :  { %1659 = vmax.xlane.f32.xlu0 %v1658_v14 }
 0x981   :  { %v1678_v42 = vpop.xlane.xlu1 %1677 }
 0x99f   :  { %v1651_v16 = vpop.xlane.xlu0 %1650 }
 0x9a0   :  { %v1661_v19 = vsub.f32 %v1645_v15, %v1651_v16  ;;  %v245_v16 = vld [vmem:[%s6977_s8 + $0x8] sm:$0xf] }
 0x9a2   :  { %v1665_v23 = vmul.f32 1.442695, %v1661_v19  ;;  %v1898_v19 = vsel %vm685_vm4, %v245_v16, 0 }
 0x9a4   :  { %6549 = vpow2.f32 %v1665_v23 }
 0x9a7   :  { %v1657_v24 = vpop.xlane.xlu0 %1656 }
 0x9a8   :  { %v1663_v25 = vsub.f32 %v1647_v1, %v1657_v24 }
 0x9aa   :  { %v1669_v26 = vmul.f32 1.442695, %v1663_v25 }
 0x9ab   :  { %v1660_v27 = vpop.xlane.xlu0 %1659 }
 0x9ac   :  { %6551 = vpow2.f32 %v1669_v26  ;;  %v1664_v28 = vsub.f32 %v1648_v11, %v1660_v27 }
 0x9ae   :  { %v1671_v29 = vmul.f32 1.442695, %v1664_v28 }
 0x9b0   :  { %6553 = vpow2.f32 %v1671_v29 }
 0x9b1   :  { %v6550_v31 = vpop.eup %6549  ;;  %6555 = vrcp.f32 %v1678_v42 }
 0x9b2   :  { %v1673_v35 = vsel %vm428_vm2, %v6550_v31, 0.0 }
 0x9b3   :  { %1674 = vadd.xlane.f32.xlu0 %v1673_v35 }
 0x9b9   :  { %v6552_v38 = vpop.eup %6551 }
 0x9ba   :  { %v1679_v39 = vsel %vm428_vm2, %v6552_v38, 0.0 }
 0x9bb   :  { %1680 = vadd.xlane.f32.xlu0 %v1679_v39 }
 0x9bd   :  { %v6554_v40 = vpop.eup %6553 }
 0x9be   :  { %v1682_v41 = vsel %vm428_vm2, %v6554_v40, 0.0  ;;  %v6556_v45 = vpop.eup %6555 }
 0x9bf   :  { %1683 = vadd.xlane.f32.xlu1 %v1682_v41  ;;  %v1690_v51 = vmul.f32 %v6556_v45, %v7387_v53 }
 0x9c1   :  { %v1694_v6 = vpack.c.bf16 %v1690_v51, %v1690_v51 }
 0x9d0   :  { %1745 = vrot.lane.b32.xlu1 %v7145_v17, %s6924_s16 }
 0x9d1   :  { %1697 = vrot.lane.b32.xlu0 %v7141_v13, %s6924_s16 }
 0x9d4   :  { %1793 = vrot.lane.b32.xlu1 %v7149_v18, %s6924_s16 }
 0x9d5   :  { %1955 = vrot.lane.b32.xlu0 %v7141_v13, %s6925_s18 }
 0x9d8   :  { %1841 = vrot.lane.b32.xlu1 %v7153_v20, %s6924_s16 }
 0x9d9   :  { %1953 = vrot.lane.b32.xlu0 %v7141_v13, %s6926_s22 }
 0x9dc   :  { %2005 = vrot.lane.b32.xlu1 %v7145_v17, %s6925_s18 }
 0x9dd   :  { %2055 = vrot.lane.b32.xlu0 %v7149_v18, %s6925_s18 }
 0x9e0   :  { %2003 = vrot.lane.b32.xlu1 %v7145_v17, %s6926_s22 }
 0x9e1   :  { %2053 = vrot.lane.b32.xlu0 %v7149_v18, %s6926_s22 }
 0x9e4   :  { %2105 = vrot.lane.b32.xlu1 %v7153_v20, %s6925_s18 }
 0x9e8   :  { %2103 = vrot.lane.b32.xlu1 %v7153_v20, %s6926_s22 }
 0xa3c   :  { %v1675_v43 = vpop.xlane.xlu0 %1674 }
 0xa3d   :  { %6557 = vrcp.f32 %v1675_v43 }
 0xa44   :  { %v1681_v44 = vpop.xlane.xlu0 %1680 }
 0xa45   :  { %6559 = vrcp.f32 %v1681_v44 }
 0xa48   :  { %v1684_v46 = vpop.xlane.xlu1 %1683  ;;  %v1698_v47 = vpop.permute.xlu0 %1697 }
 0xa49   :  { %6561 = vrcp.f32 %v1684_v46  ;;  %v1703_v48 = vsel %vm685_vm4, %v1698_v47, 0 }
 0xa4a   :  { %v6558_v49 = vpop.eup %6557  ;;  %6050 = vmatpush3.bf16.msra.mxu1 %v1703_v48 }
 0xa4b   :  { %v1689_v50 = vmul.f32 %v6558_v49, %v6550_v31  ;;  %6061 = vmatprep.subr.bf16.mxu1 %v6915_v5 }
 0xa4c   :  { %v1746_v52 = vpop.permute.xlu1 %1745  ;;  %v1956_v22 = vpop.permute.xlu0 %1955 }
 0xa4d   :  { %v1751_v54 = vsel %vm685_vm4, %v1746_v52, 0  ;;  %v1693_v0 = vpack.c.bf16 %v1689_v50, %v1689_v50  ;;  %v1961_v10 = vsel %vm428_vm2, %v1956_v22, 0 }
 0xa4e   :  { %6056 = vmatpush3.bf16.msra.mxu0 %v1751_v54 }
 0xa4f   :  { %6052 = vmatmul.mubr.msk.bf16.vlgmr.msra.gmra.mxu1 %vm428_vm2, %v1693_v0  ;;  %6067 = vmatprep.subr.bf16.mxu0 %v6915_v5 }
 0xa50   :  { %v1794_v9 = vpop.permute.xlu1 %1793  ;;  %6063 = vmatprep.mubr.msk.bf16.mxu1 %vm6916_vm1, %v6915_v5  ;;  %v1954_v2 = vpop.permute.xlu0 %1953 }
 0xa51   :  { %v1799_v15 = vsel %vm685_vm4, %v1794_v9, 0  ;;  %6058 = vmatmul.mubr.msk.bf16.vlgmr.msra.gmra.mxu0 %vm428_vm2, %v1694_v6 }
 0xa52   :  { %v6560_v53 = vpop.eup %6559  ;;  %6062 = vmatpush3.bf16.msra.mxu1 %v1799_v15  ;;  %6069 = vmatprep.mubr.msk.bf16.mxu0 %vm6916_vm1, %v6915_v5 }
 0xa53   :  { %v1691_v21 = vmul.f32 %v6560_v53, %v6552_v38  ;;  %6423 = vmatprep.subr.msk.bf16.mxu1 %vm685_vm4, %v245_v16 }
 0xa54   :  { %v1842_v59 = vpop.permute.xlu1 %1841  ;;  %v2056_v11 = vpop.permute.xlu0 %2055 }
 0xa55   :  { %v1847_v60 = vsel %vm685_vm4, %v1842_v59, 0  ;;  %v1695_v61 = vpack.c.bf16 %v1691_v21, %v1691_v21  ;;  %v2061_v12 = vsel %vm428_vm2, %v2056_v11, 0 }
 0xa56   :  { %v6562_v62 = vpop.eup %6561  ;;  %6068 = vmatpush3.bf16.msra.mxu0 %v1847_v60 }
 0xa57   :  { %6064 = vmatmul.mubr.msk.bf16.vlgmr.msra.gmra.mxu1 %vm428_vm2, %v1695_v61  ;;  %6079 = vmatprep.subr.bf16.mxu0 %v6915_v5  ;;  %v1692_v63 = vmul.f32 %v6562_v62, %v6554_v40 }
 0xa58   :  { %v2054_v14 = vpop.permute.xlu0 %2053  ;;  %6074 = vmatpush3.bf16.msra.mxu1 %v1898_v19  ;;  %v2006_v35 = vpop.permute.xlu1 %2005 }
 0xa59   :  { %v1696_v1 = vpack.c.bf16 %v1692_v63, %v1692_v63  ;;  %6085 = vmatprep.subr.bf16.mxu1 %v6915_v5  ;;  %v2011_v47 = vsel %vm428_vm2, %v2006_v35, 0 }
 0xa5b   :  { %6070 = vmatmul.mubr.msk.bf16.vlgmr.msra.gmra.mxu0 %vm428_vm2, %v1696_v1 }
 0xa5c   :  { %6080 = vmatpush3.bf16.xpose.msra.mxu0 %v1961_v10  ;;  %6081 = vmatprep.mubr.msk.bf16.mxu0 %vm6916_vm1, %v6915_v5  ;;  %v2004_v43 = vpop.permute.xlu1 %2003  ;;  %v1435_v10 = vadd.f32 %v7368_v32, %v7391_v55 }
 0xa5d   :  { %6091 = vmatprep.subr.bf16.mxu0 %v6915_v5 }
 0xa60   :  { %v2106_v50 = vpop.permute.xlu1 %2105 }
 0xa61   :  { %v2111_v0 = vsel %vm428_vm2, %v2106_v50, 0 }
 0xa63   :  { %6082 = vmatmul.mubr.msk.bf16.vlgmr.msra.gmra.mxu0 %vm428_vm2, %v1954_v2 }
 0xa64   :  { %6092 = vmatpush3.bf16.xpose.msra.mxu0 %v2061_v12  ;;  %6093 = vmatprep.mubr.msk.bf16.mxu0 %vm6916_vm1, %v6915_v5  ;;  %v2104_v59 = vpop.permute.xlu1 %2103 }
 0xa65   :  { %6103 = vmatprep.subr.bf16.mxu0 %v6915_v5 }
 0xa6b   :  { %6094 = vmatmul.mubr.msk.bf16.vlgmr.msra.gmra.mxu0 %vm428_vm2, %v2054_v14  ;;  %v1427_v14 = vadd.f32 %v7370_v34, %v7393_v56 }
 0xa6c   :  { %6105 = vmatprep.mubr.msk.bf16.mxu0 %vm6916_vm1, %v6915_v5 }
 0xb0f   :  { %v1739_v23 = vpop.f32.mrf.mxu1 }
 0xb11   :  { %v6053_v24 = vpop.f32.mrf.mxu1  ;;  %v1787_v25 = vpop.f32.mrf.mxu0 }
 0xb12   :  { %v1889_v26 = vpack.c.bf16 %v1787_v25, %v1739_v23  ;;  %v1438_v24 = vadd.f32 %v7374_v36, %v7395_v57 }
 0xb13   :  { %v1742_v27 = vpop.f32.mrf.mxu1  ;;  %v6059_v28 = vpop.f32.mrf.mxu0 }
 0xb14   :  { %6075 = vmatprep.mubr.msk.bf16.mxu1 %vm428_vm2, %v1889_v26 }
 0xb15   :  { %v6054_v29 = vpop.f32.mrf.mxu1  ;;  %v1790_v31 = vpop.f32.mrf.mxu0 }
 0xb17   :  { %v6060_v38 = vpop.f32.mrf.mxu0  ;;  %v1835_v39 = vpop.f32.mrf.mxu1 }
 0xb19   :  { %v6065_v40 = vpop.f32.mrf.mxu1 }
 0xb1b   :  { %v1838_v41 = vpop.f32.mrf.mxu1  ;;  %v1883_v42 = vpop.f32.mrf.mxu0 }
 0xb1c   :  { %v1890_v44 = vpack.c.bf16 %v1883_v42, %v1835_v39 }
 0xb1d   :  { %v6066_v45 = vpop.f32.mrf.mxu1  ;;  %v6071_v46 = vpop.f32.mrf.mxu0 }
 0xb1e   :  { %6076 = vmatmul.mubr.msk.bf16.vlgmr.msra.gmra.mxu1 %vm428_vm2, %v1890_v44 }
 0xb1f   :  { %6086 = vmatpush3.bf16.xpose.msra.mxu1 %v2011_v47  ;;  %v1886_v48 = vpop.f32.mrf.mxu0  ;;  %6087 = vmatprep.mubr.msk.bf16.mxu1 %vm6916_vm1, %v6915_v5 }
 0xb20   :  { %6097 = vmatprep.subr.bf16.mxu1 %v6915_v5 }
 0xb21   :  { %v6072_v49 = vpop.f32.mrf.mxu0 }
 0xb23   :  { %v1997_v51 = vpop.f32.mrf.mxu0 }
 0xb24   :  { %v2153_v52 = vmul.f32 0.35355338, %v1997_v51 }
 0xb25   :  { %v6083_v54 = vpop.f32.mrf.mxu0 }
 0xb26   :  { %6088 = vmatmul.mubr.msk.bf16.vlgmr.msra.gmra.mxu1 %vm428_vm2, %v2004_v43  ;;  %v2157_v6 = vsel %vm7184_vm3, %v2153_v52, -1e+30 }
 0xb27   :  { %6098 = vmatpush3.bf16.xpose.msra.mxu1 %v2111_v0  ;;  %v2000_v9 = vpop.f32.mrf.mxu0  ;;  %v2161_v15 = vsel %vm428_vm2, %v2157_v6, -inf  ;;  %6099 = vmatprep.mubr.msk.bf16.mxu1 %vm6916_vm1, %v6915_v5 }
 0xb28   :  { %2162 = vmax.xlane.f32.xlu0 %v2161_v15  ;;  %6109 = vmatprep.subr.bf16.mxu1 %v6915_v5 }
 0xb29   :  { %v6084_v53 = vpop.f32.mrf.mxu0 }
 0xb2b   :  { %v2097_v21 = vpop.f32.mrf.mxu0 }
 0xb2c   :  { %v2155_v22 = vmul.f32 0.35355338, %v2097_v21 }
 0xb2d   :  { %v6095_v60 = vpop.f32.mrf.mxu0 }
 0xb2e   :  { %6100 = vmatmul.mubr.msk.bf16.vlgmr.msra.gmra.mxu1 %vm428_vm2, %v2104_v59  ;;  %v2159_v61 = vsel %vm7184_vm3, %v2155_v22, -1e+30 }
 0xb2f   :  { %v2100_v62 = vpop.f32.mrf.mxu0  ;;  %v2167_v63 = vsel %vm428_vm2, %v2159_v61, -inf  ;;  %6111 = vmatprep.mubr.msk.bf16.mxu1 %vm6916_vm1, %v6915_v5 }
 0xb30   :  { %2168 = vmax.xlane.f32.xlu0 %v2167_v63 }
 0xb31   :  { %v6096_v1 = vpop.f32.mrf.mxu0 }
 0xbb1   :  { %v2163_v2 = vpop.xlane.xlu0 %2162 }
 0xbb2   :  { %v2173_v11 = vsub.f32 %v2157_v6, %v2163_v2 }
 0xbb4   :  { %v2177_v26 = vmul.f32 1.442695, %v2173_v11 }
 0xbb6   :  { %6563 = vpow2.f32 %v2177_v26 }
 0xbb9   :  { %v2169_v16 = vpop.xlane.xlu0 %2168 }
 0xbba   :  { %v2175_v27 = vsub.f32 %v2159_v61, %v2169_v16 }
 0xbbc   :  { %v2181_v55 = vmul.f32 1.442695, %v2175_v27 }
 0xbbe   :  { %6565 = vpow2.f32 %v2181_v55 }
 0xbc3   :  { %v6564_v45 = vpop.eup %6563 }
 0xbc4   :  { %v2185_v47 = vsel %vm428_vm2, %v6564_v45, 0.0 }
 0xbcb   :  { %v6566_v48 = vpop.eup %6565 }
 0xbcc   :  { %v2191_v49 = vsel %vm428_vm2, %v6566_v48, 0.0 }
 0xbde   :  { %v6077_v12 = vpop.f32.mrf.mxu1 }
 0xbdf   :  { %v7491_v19 = vadd.f32 %v6077_v12, %v1435_v10 }
 0xbe0   :  { %v1934_v23 = vpop.f32.mrf.mxu1 }
 0xbe1   :  { %v7495_v25 = vadd.f32 %v1934_v23, %v1427_v14 }
 0xbe2   :  { %v6078_v28 = vpop.f32.mrf.mxu1 }
 0xbe3   :  { %v7497_v29 = vadd.f32 %v6078_v28, %v1438_v24 }
 0xbe4   :  { %v7499_v32 = vpop.f32.mrf.mxu1 }
 0xbe6   :  { %v2047_v31 = vpop.f32.mrf.mxu1 }
 0xbe7   :  { %v2154_v34 = vmul.f32 0.35355338, %v2047_v31 }
 0xbe8   :  { %v6089_v56 = vpop.f32.mrf.mxu1 }
 0xbe9   :  { %v2158_v35 = vsel %vm7184_vm3, %v2154_v34, -1e+30 }
 0xbea   :  { %v2050_v38 = vpop.f32.mrf.mxu1  ;;  %v2164_v36 = vsel %vm428_vm2, %v2158_v35, -inf }
 0xbeb   :  { %2165 = vmax.xlane.f32.xlu1 %v2164_v36 }
 0xbec   :  { %v6090_v57 = vpop.f32.mrf.mxu1 }
 0xbee   :  { %v2147_v39 = vpop.f32.mrf.mxu1 }
 0xbef   :  { %v2156_v40 = vmul.f32 0.35355338, %v2147_v39 }
 0xbf0   :  { %v6101_v41 = vpop.f32.mrf.mxu1 }
 0xbf1   :  { %v2160_v42 = vsel %vm7184_vm3, %v2156_v40, -1e+30  ;;  %v246_v41 = vld [vmem:[%s6977_s8 + $0xc] sm:$0xf]  ;;  %s8134_s8 = sld [smem:[#allocation22_spill]] }
 0xbf2   :  { %v2150_v43 = vpop.f32.mrf.mxu1  ;;  %v2170_v44 = vsel %vm428_vm2, %v2160_v42, -inf }
 0xbf3   :  { %2171 = vmax.xlane.f32.xlu0 %v2170_v44 }
 0xbf4   :  { %v6102_v46 = vpop.f32.mrf.mxu1 }
 0xbf7   :  { %2186 = vadd.xlane.f32.xlu0 %v2185_v47 }
 0xbfb   :  { %2192 = vadd.xlane.f32.xlu0 %v2191_v49 }
 0xbfc   :  { %2257 = vrot.lane.b32.xlu1 %v7145_v17, %s6927_s3 }
 0xc00   :  { %2305 = vrot.lane.b32.xlu1 %v7149_v18, %s6927_s3 }
 0xc11   :  { %2209 = vrot.lane.b32.xlu0 %v7141_v13, %s6927_s3 }
 0xc74   :  { %v2166_v50 = vpop.xlane.xlu1 %2165 }
 0xc75   :  { %v2174_v51 = vsub.f32 %v2158_v35, %v2166_v50 }
 0xc77   :  { %v2179_v52 = vmul.f32 1.442695, %v2174_v51 }
 0xc78   :  { %v2258_v54 = vpop.permute.xlu1 %2257 }
 0xc79   :  { %6567 = vpow2.f32 %v2179_v52  ;;  %v2263_v0 = vsel %vm685_vm4, %v2258_v54, 0 }
 0xc7a   :  { %6110 = vmatpush3.bf16.msra.mxu1 %v2263_v0 }
 0xc7b   :  { %6121 = vmatprep.subr.bf16.mxu1 %v6915_v5 }
 0xc7c   :  { %v2172_v6 = vpop.xlane.xlu0 %2171  ;;  %v2306_v63 = vpop.permute.xlu1 %2305 }
 0xc7d   :  { %v2176_v9 = vsub.f32 %v2160_v42, %v2172_v6  ;;  %v2311_v10 = vsel %vm685_vm4, %v2306_v63, 0  ;;  %v2410_v42 = vsel %vm685_vm4, %v246_v41, 0  ;;  %v5623_v6 = vld [vmem:[#allocation7] ss:$0 sm:$0xff] }
 0xc7f   :  { %v2183_v15 = vmul.f32 1.442695, %v2176_v9 }
 0xc80   :  { %v2187_v17 = vpop.xlane.xlu0 %2186 }
 0xc81   :  { %6569 = vpow2.f32 %v2183_v15  ;;  %v1430_v15 = vadd.f32 %v7379_v37, %v7397_v58 }
 0xc82   :  { %6571 = vrcp.f32 %v2187_v17 }
 0xc84   :  { %v2193_v18 = vpop.xlane.xlu0 %2192 }
 0xc85   :  { %6573 = vrcp.f32 %v2193_v18 }
 0xc86   :  { %v6568_v53 = vpop.eup %6567 }
 0xc87   :  { %v2188_v13 = vsel %vm428_vm2, %v6568_v53, 0.0 }
 0xc88   :  { %2189 = vadd.xlane.f32.xlu1 %v2188_v13  ;;  %v2210_v21 = vpop.permute.xlu0 %2209 }
 0xc89   :  { %v2215_v22 = vsel %vm685_vm4, %v2210_v21, 0 }
 0xc8a   :  { %6104 = vmatpush3.bf16.msra.mxu0 %v2215_v22 }
 0xc8b   :  { %6115 = vmatprep.subr.bf16.mxu0 %v6915_v5 }
 0xc8e   :  { %v6570_v59 = vpop.eup %6569 }
 0xc8f   :  { %v6572_v60 = vpop.eup %6571  ;;  %v2194_v61 = vsel %vm428_vm2, %v6570_v59, 0.0 }
 0xc90   :  { %2195 = vadd.xlane.f32.xlu1 %v2194_v61  ;;  %v2201_v62 = vmul.f32 %v6572_v60, %v6564_v45 }
 0xc92   :  { %v2205_v1 = vpack.c.bf16 %v2201_v62, %v2201_v62  ;;  %v6574_v2 = vpop.eup %6573 }
 0xc93   :  { %v2203_v11 = vmul.f32 %v6574_v2, %v6566_v48 }
 0xc94   :  { %6106 = vmatmul.mubr.msk.bf16.vlgmr.msra.gmra.mxu0 %vm428_vm2, %v2205_v1 }
 0xc95   :  { %6116 = vmatpush3.bf16.msra.mxu0 %v2311_v10  ;;  %6117 = vmatprep.mubr.msk.bf16.mxu0 %vm6916_vm1, %v6915_v5  ;;  %v2207_v12 = vpack.c.bf16 %v2203_v11, %v2203_v11 }
 0xc96   :  { %6424 = vmatprep.subr.msk.bf16.mxu0 %vm685_vm4, %v246_v41 }
 0xc9c   :  { %6118 = vmatmul.mubr.msk.bf16.vlgmr.msra.gmra.mxu0 %vm428_vm2, %v2207_v12 }
 0xc9d   :  { %6128 = vmatpush3.bf16.msra.mxu0 %v2410_v42 }
 0xca1   :  { %2353 = vrot.lane.b32.xlu1 %v7153_v20, %s6927_s3 }
 0xd11   :  { %v2190_v14 = vpop.xlane.xlu1 %2189 }
 0xd12   :  { %6575 = vrcp.f32 %v2190_v14 }
 0xd19   :  { %v2196_v16 = vpop.xlane.xlu1 %2195 }
 0xd1a   :  { %6577 = vrcp.f32 %v2196_v16 }
 0xd1d   :  { %v2354_v26 = vpop.permute.xlu1 %2353 }
 0xd1e   :  { %v2359_v28 = vsel %vm685_vm4, %v2354_v26, 0 }
 0xd1f   :  { %v6576_v23 = vpop.eup %6575 }
 0xd20   :  { %v2202_v24 = vmul.f32 %v6576_v23, %v6568_v53  ;;  %v1950_v53 = vadd.f32 %v7499_v32, %v1430_v15  ;;  %v5625_v15 = vld [vmem:[#allocation10] ss:$0 sm:$0xff] }
 0xd22   :  { %v2206_v27 = vpack.c.bf16 %v2202_v24, %v2202_v24 }
 0xd24   :  { %6112 = vmatmul.mubr.msk.bf16.vlgmr.msra.gmra.mxu1 %vm428_vm2, %v2206_v27 }
 0xd25   :  { %6122 = vmatpush3.bf16.msra.mxu1 %v2359_v28  ;;  %6123 = vmatprep.mubr.msk.bf16.mxu1 %vm6916_vm1, %v6915_v5 }
 0xd27   :  { %v6578_v55 = vpop.eup %6577 }
 0xd28   :  { %v2204_v31 = vmul.f32 %v6578_v55, %v6570_v59 }
 0xd2a   :  { %v2208_v20 = vpack.c.bf16 %v2204_v31, %v2204_v31 }
 0xd2c   :  { %6124 = vmatmul.mubr.msk.bf16.vlgmr.msra.gmra.mxu1 %vm428_vm2, %v2208_v20 }
 0xd54   :  { %v2251_v34 = vpop.f32.mrf.mxu0 }
 0xd56   :  { %v6107_v56 = vpop.f32.mrf.mxu0 }
 0xd58   :  { %v2254_v35 = vpop.f32.mrf.mxu0 }
 0xd59   :  { %v6483_v35 = vld [vmem:[%s6997_s30 + $0x8] sm:$0xff]  }
 0xd5a   :  { %v6108_v38 = vpop.f32.mrf.mxu0  ;;  %6133 = vmatprep.subr.bf16.mxu1 %v6483_v35 }
 0xd5b   :  { %v6484_v38 = vld [vmem:[%s6997_s30] sm:$0xff]   ;;  %6134 = vmatpush3.bf16.msra.mxu1 %v6483_v35  ;;  %s8135_s30 = sld [smem:[#allocation21_spill]] }
 0xd5c   :  { %v2347_v36 = vpop.f32.mrf.mxu0  ;;  %6135 = vmatprep.subr.bf16.mxu1 %v6484_v38 }
 0xd5e   :  { %v6119_v57 = vpop.f32.mrf.mxu0 }
 0xd5f   :  { %6136 = vmatpush3.bf16.msra.mxu1 %v6484_v38 }
 0xd60   :  { %v2350_v39 = vpop.f32.mrf.mxu0 }
 0xd62   :  { %v6120_v40 = vpop.f32.mrf.mxu0 }
 0xde4   :  { %v2299_v43 = vpop.f32.mrf.mxu1 }
 0xde5   :  { %v2401_v44 = vpack.c.bf16 %v2299_v43, %v2251_v34 }
 0xde6   :  { %v6113_v45 = vpop.f32.mrf.mxu1 }
 0xde7   :  { %6129 = vmatprep.mubr.msk.bf16.mxu0 %vm428_vm2, %v2401_v44 }
 0xde8   :  { %v2302_v46 = vpop.f32.mrf.mxu1 }
 0xdea   :  { %v6114_v47 = vpop.f32.mrf.mxu1 }
 0xdec   :  { %v2395_v48 = vpop.f32.mrf.mxu1 }
 0xded   :  { %v2402_v49 = vpack.c.bf16 %v2395_v48, %v2347_v36 }
 0xdee   :  { %v6125_v50 = vpop.f32.mrf.mxu1 }
 0xdef   :  { %6130 = vmatmul.mubr.msk.bf16.vlgmr.msra.gmra.mxu0 %vm428_vm2, %v2402_v49 }
 0xdf0   :  { %v2398_v51 = vpop.f32.mrf.mxu1 }
 0xdf1   :  { %v5624_v51 = vld [vmem:[#allocation8] ss:$0 sm:$0xff] }
 0xdf2   :  { %v6126_v52 = vpop.f32.mrf.mxu1 }
 0xeaf   :  { %v6131_v54 = vpop.f32.mrf.mxu0 }
 0xeb0   :  { %v2463_v0 = vadd.f32 %v6131_v54, %v7491_v19 }
 0xeb1   :  { %v2446_v9 = vpop.f32.mrf.mxu0 }
 0xeb2   :  { %v2461_v17 = vadd.f32 %v2446_v9, %v7495_v25  ;;  %v2473_v13 = vadd.f32 %v5623_v6, %v2463_v0 }
 0xeb3   :  { %v6132_v18 = vpop.f32.mrf.mxu0 }
 0xeb4   :  { %v2471_v21 = vadd.f32 %v5623_v6, %v2461_v17  ;;  %v2464_v22 = vadd.f32 %v6132_v18, %v7497_v29  ;;  %v7548_v19 = vadd.f32 %v2473_v13, %v7106_v4 }
 0xeb5   :  { %v2449_v59 = vpop.f32.mrf.mxu0 }
 0xeb6   :  { %v7545_v60 = vadd.f32 %v2471_v21, %v7104_v3  ;;  %v2462_v61 = vadd.f32 %v2449_v59, %v1950_v53  ;;  %v2474_v62 = vadd.f32 %v5623_v6, %v2464_v22  ;;  %v2485_v3 = vsel %vm272_vm0, %v7548_v19, 0.0 }
 0xeb8   :  { %v2472_v63 = vadd.f32 %v5623_v6, %v2462_v61  ;;  %v2479_v37 = vsel %vm272_vm0, %v7545_v60, 0.0  ;;  %v7556_v25 = vadd.f32 %v2474_v62, %v7112_v8 }
 0xeb9   :  { %2480 = vadd.xlane.f32.xlu0 %v2479_v37 }
 0xeba   :  { %v7553_v58 = vadd.f32 %v2472_v63, %v7110_v7  ;;  %v2488_v4 = vsel %vm272_vm0, %v7556_v25, 0.0 }
 0xebc   :  { %v2482_v29 = vsel %vm272_vm0, %v7553_v58, 0.0 }
 0xebd   :  { %2486 = vadd.xlane.f32.xlu0 %v2485_v3  ;;  %2483 = vadd.xlane.f32.xlu1 %v2482_v29  ;;  %v6485_v3 = vld [vmem:[%s7007_s12 + $0x38] sm:$0xff]   ;;  %v6486_v29 = vld [vmem:[%s7007_s12 + $0x30] sm:$0xff]  }
 0xebe   :  { %6141 = vmatprep.subr.bf16.mxu0 %v6485_v3 }
 0xebf   :  { %6142 = vmatpush3.bf16.msra.mxu0 %v6485_v3 }
 0xec0   :  { %6143 = vmatprep.subr.bf16.mxu0 %v6486_v29 }
 0xec1   :  { %2489 = vadd.xlane.f32.xlu0 %v2488_v4  ;;  %v6487_v4 = vld [vmem:[%s7007_s12 + $0x28] sm:$0xff]  }
 0xec3   :  { %6144 = vmatpush3.bf16.msra.mxu0 %v6486_v29 }
 0xec4   :  { %6145 = vmatprep.subr.bf16.mxu0 %v6487_v4 }
 0xec7   :  { %6146 = vmatpush3.bf16.msra.mxu0 %v6487_v4 }
 0xf42   :  { %v2481_v32 = vpop.xlane.xlu0 %2480 }
 0xf43   :  { %v2491_v1 = vmul.f32 0.03125, %v2481_v32  ;;  %v6488_v32 = vld [vmem:[%s7007_s12 + $0x20] sm:$0xff]  }
 0xf44   :  { %6147 = vmatprep.subr.bf16.mxu0 %v6488_v32 }
 0xf45   :  { %v2495_v7 = vsub.f32 %v7545_v60, %v2491_v1  ;;  %6148 = vmatpush3.bf16.msra.mxu0 %v6488_v32  ;;  %v6489_v1 = vld [vmem:[%s7007_s12 + $0x18] sm:$0xff]  }
 0xf46   :  { %v2487_v2 = vpop.xlane.xlu0 %2486  ;;  %v2484_v10 = vpop.xlane.xlu1 %2483  ;;  %6149 = vmatprep.subr.bf16.mxu0 %v6489_v1 }
 0xf47   :  { %v2493_v8 = vmul.f32 0.03125, %v2487_v2  ;;  %v2492_v11 = vmul.f32 0.03125, %v2484_v10  ;;  %v2499_v12 = vmul.f32 %v2495_v7, %v2495_v7  ;;  %v6491_v2 = vld [vmem:[%s7007_s12 + $0x8] sm:$0xff]   ;;  %v6492_v10 = vld [vmem:[%s7007_s12] sm:$0xff]  }
 0xf49   :  { %v2497_v14 = vsub.f32 %v7548_v19, %v2493_v8  ;;  %v2496_v16 = vsub.f32 %v7553_v58, %v2492_v11  ;;  %v2503_v23 = vsel %vm272_vm0, %v2499_v12, 0.0  ;;  %6150 = vmatpush3.bf16.msra.mxu0 %v6489_v1  ;;  %v5626_v8 = vld [vmem:[#allocation11] ss:$0 sm:$0xff] }
 0xf4a   :  { %2504 = vadd.xlane.f32.xlu0 %v2503_v23  ;;  %v2490_v24 = vpop.xlane.xlu0 %2489 }
 0xf4b   :  { %v2494_v26 = vmul.f32 0.03125, %v2490_v24  ;;  %v2501_v27 = vmul.f32 %v2497_v14, %v2497_v14  ;;  %v2500_v28 = vmul.f32 %v2496_v16, %v2496_v16 }
 0xf4d   :  { %v2498_v55 = vsub.f32 %v7556_v25, %v2494_v26  ;;  %v2509_v31 = vsel %vm272_vm0, %v2501_v27, 0.0  ;;  %v2506_v20 = vsel %vm272_vm0, %v2500_v28, 0.0 }
 0xf4e   :  { %2510 = vadd.xlane.f32.xlu0 %v2509_v31  ;;  %2507 = vadd.xlane.f32.xlu1 %v2506_v20 }
 0xf4f   :  { %v2502_v34 = vmul.f32 %v2498_v55, %v2498_v55 }
 0xf51   :  { %v2512_v56 = vsel %vm272_vm0, %v2502_v34, 0.0 }
 0xf52   :  { %2513 = vadd.xlane.f32.xlu1 %v2512_v56 }
 0xfd3   :  { %v2505_v36 = vpop.xlane.xlu0 %2504 }
 0xfd4   :  { %v2515_v57 = vmul.f32 0.03125, %v2505_v36 }
 0xfd6   :  { %v2519_v39 = vadd.f32 1e-05, %v2515_v57 }
 0xfd7   :  { %v2511_v40 = vpop.xlane.xlu0 %2510  ;;  %v2508_v41 = vpop.xlane.xlu1 %2507 }
 0xfd8   :  { %6579 = vrsqrt.f32 %v2519_v39  ;;  %v2517_v42 = vmul.f32 0.03125, %v2511_v40  ;;  %v2516_v43 = vmul.f32 0.03125, %v2508_v41 }
 0xfda   :  { %v2521_v44 = vadd.f32 1e-05, %v2517_v42  ;;  %v2520_v45 = vadd.f32 1e-05, %v2516_v43 }
 0xfdb   :  { %v2514_v46 = vpop.xlane.xlu1 %2513 }
 0xfdc   :  { %6581 = vrsqrt.f32 %v2521_v44  ;;  %v2518_v47 = vmul.f32 0.03125, %v2514_v46 }
 0xfdd   :  { %6583 = vrsqrt.f32 %v2520_v45 }
 0xfde   :  { %v2522_v48 = vadd.f32 1e-05, %v2518_v47 }
 0xfe0   :  { %6585 = vrsqrt.f32 %v2522_v48 }
 0xfe5   :  { %v6580_v49 = vpop.eup %6579 }
 0xfe6   :  { %v2527_v50 = vmul.f32 %v6580_v49, %v2495_v7  ;;  %v6490_v7 = vld [vmem:[%s7007_s12 + $0x10] sm:$0xff]   ;;  %s8136_s12 = sld [smem:[#allocation25_spill]] }
 0xfe7   :  { %6151 = vmatprep.subr.bf16.mxu0 %v6490_v7 }
 0xfe8   :  { %v2537_v9 = vmul.f32 %v5624_v51, %v2527_v50  ;;  %6152 = vmatpush3.bf16.msra.mxu0 %v6490_v7 }
 0xfe9   :  { %v6582_v52 = vpop.eup %6581  ;;  %6153 = vmatprep.subr.bf16.mxu0 %v6491_v2 }
 0xfea   :  { %v6584_v54 = vpop.eup %6583  ;;  %v2529_v0 = vmul.f32 %v6582_v52, %v2497_v14  ;;  %v2547_v21 = vadd.f32 %v5625_v15, %v2537_v9 }
 0xfeb   :  { %v2528_v6 = vmul.f32 %v6584_v54, %v2496_v16 }
 0xfec   :  { %v2539_v13 = vmul.f32 %v5624_v51, %v2529_v0  ;;  %6154 = vmatpush3.bf16.msra.mxu0 %v6491_v2 }
 0xfed   :  { %v6586_v17 = vpop.eup %6585  ;;  %v2538_v18 = vmul.f32 %v5624_v51, %v2528_v6  ;;  %6155 = vmatprep.subr.bf16.mxu0 %v6492_v10  ;;  %v5635_v6 = vld [vmem:[%s8134_s8] ss:$0 sm:$0xff] }
 0xfee   :  { %v2530_v53 = vmul.f32 %v6586_v17, %v2498_v55  ;;  %v2549_v62 = vadd.f32 %v5625_v15, %v2539_v13 }
 0xfef   :  { %v2548_v22 = vadd.f32 %v5625_v15, %v2538_v18 }
 0xff0   :  { %v2540_v59 = vmul.f32 %v5624_v51, %v2530_v53  ;;  %6156 = vmatpush3.bf16.msra.mxu0 %v6492_v10 }
 0xff1   :  { %v2551_v61 = vpack.c.bf16 %v2548_v22, %v2547_v21  ;;  %6187 = vmatprep.subr.bf16.mxu0 %v6915_v5 }
 0xff2   :  { %v2550_v63 = vadd.f32 %v5625_v15, %v2540_v59 }
 0xff3   :  { %6137 = vmatprep.mubr.msk.bf16.mxu1 %vm272_vm0, %v2551_v61  ;;  %v2803_v61 = vld [vmem:[%s8135_s30] sm:$0xff] }
 0xff4   :  { %v2552_v37 = vpack.c.bf16 %v2550_v63, %v2549_v62 }
 0xff6   :  { %6138 = vmatmul.mubr.msk.bf16.vlgmr.msra.gmra.mxu1 %vm272_vm0, %v2552_v37 }
0x10b6   :  { %v6139_v11 = vpop.f32.mrf.mxu1 }
0x10b7   :  { %v2620_v12 = vadd.f32 %v6139_v11, %v5626_v8 }
0x10b8   :  { %v2611_v14 = vpop.f32.mrf.mxu1 }
0x10b9   :  { %v5633_v16 = vmul.f32 -1.702, %v2620_v12  ;;  %v2612_v23 = vadd.f32 %v5626_v8, %v2611_v14 }
0x10ba   :  { %v6140_v24 = vpop.f32.mrf.mxu1 }
0x10bb   :  { %v2638_v26 = vmul.f32 1.442695, %v5633_v16  ;;  %v5631_v27 = vmul.f32 -1.702, %v2612_v23  ;;  %v2623_v28 = vadd.f32 %v6140_v24, %v5626_v8 }
0x10bc   :  { %v2614_v55 = vpop.f32.mrf.mxu1 }
0x10bd   :  { %v2634_v31 = vmul.f32 1.442695, %v5631_v27  ;;  %v5634_v20 = vmul.f32 -1.702, %v2623_v28  ;;  %v2615_v34 = vadd.f32 %v5626_v8, %v2614_v55  ;;  %6587 = vpow2.f32 %v2638_v26 }
0x10bf   :  { %6589 = vpow2.f32 %v2634_v31  ;;  %v2640_v56 = vmul.f32 1.442695, %v5634_v20  ;;  %v5632_v35 = vmul.f32 -1.702, %v2615_v34 }
0x10c1   :  { %6591 = vpow2.f32 %v2640_v56  ;;  %v2636_v38 = vmul.f32 1.442695, %v5632_v35 }
0x10c3   :  { %6593 = vpow2.f32 %v2636_v38  ;;  %v6493_v38 = vld [vmem:[%s8136_s12 + $0x8] sm:$0xff]  }
0x10c4   :  { %6161 = vmatprep.subr.bf16.mxu1 %v6493_v38 }
0x10c5   :  { %6162 = vmatpush3.bf16.msra.mxu1 %v6493_v38 }
0x10ca   :  { %v6588_v36 = vpop.eup %6587 }
0x10cb   :  { %v2644_v41 = vadd.f32 1.0, %v6588_v36  ;;  %v6494_v36 = vld [vmem:[%s8136_s12] sm:$0xff]  }
0x10cc   :  { %v6590_v57 = vpop.eup %6589  ;;  %6163 = vmatprep.subr.bf16.mxu1 %v6494_v36 }
0x10cd   :  { %v2642_v39 = vadd.f32 1.0, %v6590_v57  ;;  %6164 = vmatpush3.bf16.msra.mxu1 %v6494_v36 }
0x10ce   :  { %v6592_v40 = vpop.eup %6591  ;;  %6169 = vmatprep.subr.bf16.mxu1 %v6915_v5 }
0x10cf   :  { %v2645_v42 = vadd.f32 1.0, %v6592_v40  ;;  %6595 = vrcp.f32 %v2642_v39 }
0x10d0   :  { %v6594_v43 = vpop.eup %6593 }
0x10d1   :  { %6597 = vrcp.f32 %v2645_v42  ;;  %v2643_v44 = vadd.f32 1.0, %v6594_v43 }
0x10d2   :  { %6599 = vrcp.f32 %v2644_v41 }
0x10d3   :  { %6601 = vrcp.f32 %v2643_v44 }
0x10dc   :  { %v6596_v45 = vpop.eup %6595 }
0x10dd   :  { %v2654_v50 = vmul.f32 %v6596_v45, %v2612_v23 }
0x10de   :  { %v6598_v46 = vpop.eup %6597 }
0x10df   :  { %v6600_v47 = vpop.eup %6599  ;;  %v2657_v49 = vmul.f32 %v6598_v46, %v2623_v28 }
0x10e0   :  { %v6602_v48 = vpop.eup %6601  ;;  %v2656_v52 = vmul.f32 %v6600_v47, %v2620_v12 }
0x10e1   :  { %v2655_v51 = vmul.f32 %v6602_v48, %v2615_v34 }
0x10e2   :  { %v2659_v0 = vpack.c.bf16 %v2657_v49, %v2656_v52  ;;  %v5644_v52 = vld [vmem:[%s8137_s23] ss:$0 sm:$0xff] }
0x10e3   :  { %v2658_v54 = vpack.c.bf16 %v2655_v51, %v2654_v50 }
0x10e5   :  { %6157 = vmatprep.mubr.bf16.mxu0 %v2658_v54 }
0x10e6   :  { %6158 = vmatmul.mubr.bf16.vlgmr.msra.gmra.mxu0 %v2659_v0 }
0x10e7   :  { %6189 = vmatprep.mubr.msk.bf16.mxu0 %vm6916_vm1, %v6915_v5 }
0x11a6   :  { %v6159_v9 = vpop.f32.mrf.mxu0 }
0x11a7   :  { %v2757_v15 = vadd.f32 %v6159_v9, %v5635_v6 }
0x11a8   :  { %v2748_v17 = vpop.f32.mrf.mxu0 }
0x11a9   :  { %v2749_v18 = vadd.f32 %v5635_v6, %v2748_v17  ;;  %v2765_v13 = vadd.f32 %v2757_v15, %v7548_v19  ;;  %v5645_v17 = vld [vmem:[%s8138_s19] ss:$0 sm:$0xff] }
0x11aa   :  { %v6160_v53 = vpop.f32.mrf.mxu0 }
0x11ab   :  { %v2763_v21 = vadd.f32 %v2749_v18, %v7545_v60  ;;  %v2760_v22 = vadd.f32 %v6160_v53, %v5635_v6  ;;  %v7599_v4 = vsel %vm235_vm7, %v2803_v61, %v2765_v13 }
0x11ac   :  { %v2751_v59 = vpop.f32.mrf.mxu0  ;;  %v2816_v32 = vsel %vm272_vm0, %v7599_v4, 0.0 }
0x11ad   :  { %v2752_v62 = vadd.f32 %v5635_v6, %v2751_v59  ;;  %v7593_v63 = vsel %vm235_vm7, %v2803_v61, %v2763_v21  ;;  %v2766_v3 = vadd.f32 %v2760_v22, %v7556_v25 }
0x11ae   :  { %v2810_v37 = vsel %vm272_vm0, %v7593_v63, 0.0 }
0x11af   :  { %v2764_v29 = vadd.f32 %v2752_v62, %v7553_v58  ;;  %2811 = vadd.xlane.f32.xlu0 %v2810_v37  ;;  %v7607_v1 = vsel %vm235_vm7, %v2803_v61, %v2766_v3 }
0x11b0   :  { %v2819_v25 = vsel %vm272_vm0, %v7607_v1, 0.0 }
0x11b1   :  { %v7601_v19 = vsel %vm235_vm7, %v2803_v61, %v2764_v29 }
0x11b2   :  { %v2813_v60 = vsel %vm272_vm0, %v7601_v19, 0.0 }
0x11b3   :  { %2814 = vadd.xlane.f32.xlu1 %v2813_v60  ;;  %2817 = vadd.xlane.f32.xlu0 %v2816_v32  ;;  %v5646_v32 = vld [vmem:[%s8139_s26] ss:$0 sm:$0xff] }
0x11b7   :  { %2820 = vadd.xlane.f32.xlu1 %v2819_v25 }
0x1238   :  { %v2812_v58 = vpop.xlane.xlu0 %2811 }
0x1239   :  { %v2822_v7 = vmul.f32 0.03125, %v2812_v58 }
0x123b   :  { %v2826_v2 = vsub.f32 %v7593_v63, %v2822_v7 }
0x123c   :  { %v2815_v10 = vpop.xlane.xlu1 %2814  ;;  %v2818_v8 = vpop.xlane.xlu0 %2817 }
0x123d   :  { %v2823_v11 = vmul.f32 0.03125, %v2815_v10  ;;  %v2824_v12 = vmul.f32 0.03125, %v2818_v8  ;;  %v2830_v14 = vmul.f32 %v2826_v2, %v2826_v2 }
0x123f   :  { %v2827_v16 = vsub.f32 %v7601_v19, %v2823_v11  ;;  %v2828_v23 = vsub.f32 %v7599_v4, %v2824_v12  ;;  %v2834_v24 = vsel %vm272_vm0, %v2830_v14, 0.0 }
0x1240   :  { %v2821_v26 = vpop.xlane.xlu1 %2820  ;;  %2835 = vadd.xlane.f32.xlu0 %v2834_v24 }
0x1241   :  { %v2825_v27 = vmul.f32 0.03125, %v2821_v26  ;;  %v2831_v28 = vmul.f32 %v2827_v16, %v2827_v16  ;;  %v2832_v55 = vmul.f32 %v2828_v23, %v2828_v23 }
0x1243   :  { %v2829_v31 = vsub.f32 %v7607_v1, %v2825_v27  ;;  %v2837_v20 = vsel %vm272_vm0, %v2831_v28, 0.0  ;;  %v2840_v34 = vsel %vm272_vm0, %v2832_v55, 0.0 }
0x1244   :  { %2838 = vadd.xlane.f32.xlu1 %v2837_v20  ;;  %2841 = vadd.xlane.f32.xlu0 %v2840_v34 }
0x1245   :  { %v2833_v56 = vmul.f32 %v2829_v31, %v2829_v31 }
0x1247   :  { %v2843_v35 = vsel %vm272_vm0, %v2833_v56, 0.0 }
0x1248   :  { %2844 = vadd.xlane.f32.xlu1 %v2843_v35 }
0x12c9   :  { %v2836_v57 = vpop.xlane.xlu0 %2835 }
0x12ca   :  { %v2846_v39 = vmul.f32 0.03125, %v2836_v57 }
0x12cc   :  { %v2850_v40 = vadd.f32 1e-05, %v2846_v39 }
0x12cd   :  { %v2839_v41 = vpop.xlane.xlu1 %2838  ;;  %v2842_v42 = vpop.xlane.xlu0 %2841 }
0x12ce   :  { %6603 = vrsqrt.f32 %v2850_v40  ;;  %v2847_v43 = vmul.f32 0.03125, %v2839_v41  ;;  %v2848_v44 = vmul.f32 0.03125, %v2842_v42 }
0x12d0   :  { %v2851_v45 = vadd.f32 1e-05, %v2847_v43  ;;  %v2852_v46 = vadd.f32 1e-05, %v2848_v44 }
0x12d1   :  { %v2845_v47 = vpop.xlane.xlu1 %2844 }
0x12d2   :  { %6605 = vrsqrt.f32 %v2851_v45  ;;  %v2849_v48 = vmul.f32 0.03125, %v2845_v47 }
0x12d3   :  { %6607 = vrsqrt.f32 %v2852_v46 }
0x12d4   :  { %v2853_v49 = vadd.f32 1e-05, %v2849_v48 }
0x12d6   :  { %6609 = vrsqrt.f32 %v2853_v49 }
0x12db   :  { %v6604_v50 = vpop.eup %6603 }
0x12dc   :  { %v2858_v51 = vmul.f32 %v6604_v50, %v2826_v2 }
0x12de   :  { %v2868_v9 = vmul.f32 %v5644_v52, %v2858_v51 }
0x12df   :  { %v6606_v54 = vpop.eup %6605 }
0x12e0   :  { %v6608_v0 = vpop.eup %6607  ;;  %v2859_v6 = vmul.f32 %v6606_v54, %v2827_v16  ;;  %v2878_v21 = vadd.f32 %v5645_v17, %v2868_v9 }
0x12e1   :  { %v2860_v15 = vmul.f32 %v6608_v0, %v2828_v23 }
0x12e2   :  { %v2869_v18 = vmul.f32 %v5644_v52, %v2859_v6 }
0x12e3   :  { %v6610_v53 = vpop.eup %6609  ;;  %v2870_v59 = vmul.f32 %v5644_v52, %v2860_v15 }
0x12e4   :  { %v2861_v13 = vmul.f32 %v6610_v53, %v2829_v31  ;;  %v2879_v22 = vadd.f32 %v5645_v17, %v2869_v18 }
0x12e5   :  { %v2880_v37 = vadd.f32 %v5645_v17, %v2870_v59 }
0x12e6   :  { %v2882_v61 = vpack.c.bf16 %v2879_v22, %v2878_v21  ;;  %v2871_v62 = vmul.f32 %v5644_v52, %v2861_v13 }
0x12e8   :  { %6165 = vmatprep.mubr.msk.bf16.mxu1 %vm272_vm0, %v2882_v61  ;;  %v2881_v3 = vadd.f32 %v5645_v17, %v2871_v62 }
0x12ea   :  { %v2883_v29 = vpack.c.bf16 %v2881_v3, %v2880_v37 }
0x12ec   :  { %6166 = vmatmul.mubr.msk.bf16.vlgmr.msra.gmra.mxu1 %vm272_vm0, %v2883_v29 }
0x12ed   :  { %6171 = vmatprep.mubr.msk.bf16.mxu1 %vm6916_vm1, %v6915_v5 }
0x13ac   :  { %v6167_v60 = vpop.f32.mrf.mxu1 }
0x13ad   :  { %v2951_v11 = vadd.f32 %v6167_v60, %v5646_v32 }
0x13ae   :  { %v2942_v25 = vpop.f32.mrf.mxu1 }
0x13af   :  { %v2943_v58 = vadd.f32 %v5646_v32, %v2942_v25  ;;  %v7637_v14 = vpack.c.bf16 %v2951_v11, %v2951_v11 }
0x13b0   :  { %v6168_v7 = vpop.f32.mrf.mxu1 }
0x13b1   :  { %v7629_v2 = vpack.c.bf16 %v2943_v58, %v2943_v58  ;;  %v2954_v16 = vadd.f32 %v6168_v7, %v5646_v32 }
0x13b2   :  { %v2945_v10 = vpop.f32.mrf.mxu1 }
0x13b3   :  { %v2946_v8 = vadd.f32 %v5646_v32, %v2945_v10  ;;  %2962 = vrot.lane.b32.xlu0 %v7629_v2, %s6917_s5  ;;  %v7641_v23 = vpack.c.bf16 %v2954_v16, %v2954_v16 }
0x13b5   :  { %v7633_v12 = vpack.c.bf16 %v2946_v8, %v2946_v8 }
0x13b7   :  { %3011 = vrot.lane.b32.xlu1 %v7633_v12, %s6917_s5 }
0x13bb   :  { %3060 = vrot.lane.b32.xlu1 %v7637_v14, %s6917_s5 }
0x13bf   :  { %3109 = vrot.lane.b32.xlu1 %v7641_v23, %s6917_s5 }
0x1425   :  { %v2963_v24 = vpop.permute.xlu0 %2962 }
0x1426   :  { %v2968_v26 = vsel %vm428_vm2, %v2963_v24, 0 }
0x1427   :  { %6170 = vmatpush3.bf16.xpose.msra.mxu1 %v2968_v26 }
0x1428   :  { %6175 = vmatprep.subr.bf16.mxu1 %v6915_v5 }
0x1429   :  { %v3012_v27 = vpop.permute.xlu1 %3011 }
0x142a   :  { %v3017_v55 = vsel %vm428_vm2, %v3012_v27, 0 }
0x142d   :  { %v3061_v28 = vpop.permute.xlu1 %3060 }
0x142e   :  { %6172 = vmatmul.mubr.msk.bf16.vlgmr.msra.gmra.mxu1 %vm428_vm2, %v7629_v2  ;;  %v3066_v34 = vsel %vm428_vm2, %v3061_v28, 0 }
0x142f   :  { %6176 = vmatpush3.bf16.xpose.msra.mxu1 %v3017_v55  ;;  %6177 = vmatprep.mubr.msk.bf16.mxu1 %vm6916_vm1, %v6915_v5 }
0x1430   :  { %6181 = vmatprep.subr.bf16.mxu1 %v6915_v5 }
0x1431   :  { %v3110_v31 = vpop.permute.xlu1 %3109 }
0x1432   :  { %v3115_v20 = vsel %vm428_vm2, %v3110_v31, 0 }
0x1433   :  { %6188 = vmatpush3.bf16.xpose.msra.mxu0 %v3115_v20 }
0x1434   :  { %6199 = vmatprep.subr.bf16.mxu0 %v6915_v5 }
0x1436   :  { %6178 = vmatmul.mubr.msk.bf16.vlgmr.msra.gmra.mxu1 %vm428_vm2, %v7633_v12 }
0x1437   :  { %6182 = vmatpush3.bf16.xpose.msra.mxu1 %v3066_v34  ;;  %6183 = vmatprep.mubr.msk.bf16.mxu1 %vm6916_vm1, %v6915_v5 }
0x1438   :  { %6193 = vmatprep.subr.bf16.mxu1 %v6915_v5 }
0x143a   :  { %6190 = vmatmul.mubr.msk.bf16.vlgmr.msra.gmra.mxu0 %vm428_vm2, %v7641_v23 }
0x143b   :  { %6201 = vmatprep.mubr.msk.bf16.mxu0 %vm6916_vm1, %v6915_v5 }
0x143e   :  { %6184 = vmatmul.mubr.msk.bf16.vlgmr.msra.gmra.mxu1 %vm428_vm2, %v7637_v14 }
0x143f   :  { %6195 = vmatprep.mubr.msk.bf16.mxu1 %vm6916_vm1, %v6915_v5 }
0x14ee   :  { %v3004_v56 = vpop.f32.mrf.mxu1 }
0x14ef   :  { %v3157_v35 = vmul.f32 0.35355338, %v3004_v56 }
0x14f0   :  { %v6173_v38 = vpop.f32.mrf.mxu1 }
0x14f1   :  { %v3161_v36 = vsel %vm7184_vm3, %v3157_v35, -1e+30 }
0x14f2   :  { %v3007_v57 = vpop.f32.mrf.mxu1  ;;  %v3165_v39 = vsel %vm428_vm2, %v3161_v36, -inf }
0x14f3   :  { %3166 = vmax.xlane.f32.xlu0 %v3165_v39 }
0x14f4   :  { %v6174_v40 = vpop.f32.mrf.mxu1 }
0x14f6   :  { %v3053_v41 = vpop.f32.mrf.mxu1 }
0x14f7   :  { %v3158_v42 = vmul.f32 0.35355338, %v3053_v41 }
0x14f8   :  { %v6179_v43 = vpop.f32.mrf.mxu1 }
0x14f9   :  { %v3162_v44 = vsel %vm7184_vm3, %v3158_v42, -1e+30 }
0x14fa   :  { %v3056_v45 = vpop.f32.mrf.mxu1  ;;  %v3151_v46 = vpop.f32.mrf.mxu0  ;;  %v3168_v47 = vsel %vm428_vm2, %v3162_v44, -inf }
0x14fb   :  { %3169 = vmax.xlane.f32.xlu1 %v3168_v47  ;;  %v3160_v52 = vmul.f32 0.35355338, %v3151_v46 }
0x14fc   :  { %v6180_v48 = vpop.f32.mrf.mxu1  ;;  %v6191_v49 = vpop.f32.mrf.mxu0 }
0x14fd   :  { %v3164_v18 = vsel %vm7184_vm3, %v3160_v52, -1e+30 }
0x14fe   :  { %v3102_v50 = vpop.f32.mrf.mxu1  ;;  %v3154_v51 = vpop.f32.mrf.mxu0  ;;  %v3174_v13 = vsel %vm428_vm2, %v3164_v18, -inf }
0x14ff   :  { %v3159_v54 = vmul.f32 0.35355338, %v3102_v50 }
0x1500   :  { %v6185_v0 = vpop.f32.mrf.mxu1  ;;  %v6192_v6 = vpop.f32.mrf.mxu0 }
0x1501   :  { %v3163_v9 = vsel %vm7184_vm3, %v3159_v54, -1e+30 }
0x1502   :  { %v3105_v15 = vpop.f32.mrf.mxu1  ;;  %v3171_v17 = vsel %vm428_vm2, %v3163_v9, -inf }
0x1503   :  { %3172 = vmax.xlane.f32.xlu0 %v3171_v17 }
0x1504   :  { %v6186_v53 = vpop.f32.mrf.mxu1 }
0x1507   :  { %3175 = vmax.xlane.f32.xlu0 %v3174_v13 }
0x150c   :  { %3261 = vrot.lane.b32.xlu1 %v7633_v12, %s6918_s9 }
0x1510   :  { %3309 = vrot.lane.b32.xlu1 %v7637_v14, %s6918_s9 }
0x157c   :  { %v3167_v21 = vpop.xlane.xlu0 %3166 }
0x157d   :  { %v3177_v22 = vsub.f32 %v3161_v36, %v3167_v21 }
0x157f   :  { %v3181_v59 = vmul.f32 1.442695, %v3177_v22 }
0x1581   :  { %6611 = vpow2.f32 %v3181_v59 }
0x1584   :  { %v3170_v61 = vpop.xlane.xlu1 %3169 }
0x1585   :  { %v3178_v60 = vsub.f32 %v3162_v44, %v3170_v61 }
0x1587   :  { %v3183_v7 = vmul.f32 1.442695, %v3178_v60 }
0x1588   :  { %v3262_v62 = vpop.permute.xlu1 %3261 }
0x1589   :  { %v3267_v37 = vsel %vm685_vm4, %v3262_v62, 0 }
0x158a   :  { %6200 = vmatpush3.bf16.msra.mxu0 %v3267_v37 }
0x158b   :  { %6211 = vmatprep.subr.bf16.mxu0 %v6915_v5 }
0x158c   :  { %v3173_v3 = vpop.xlane.xlu0 %3172  ;;  %v3310_v38 = vpop.permute.xlu1 %3309 }
0x158d   :  { %v3179_v26 = vsub.f32 %v3163_v9, %v3173_v3  ;;  %v3315_v57 = vsel %vm685_vm4, %v3310_v38, 0 }
0x158e   :  { %v6612_v29 = vpop.eup %6611 }
0x158f   :  { %v3189_v32 = vsel %vm428_vm2, %v6612_v29, 0.0  ;;  %v3185_v27 = vmul.f32 1.442695, %v3179_v26 }
0x1590   :  { %3190 = vadd.xlane.f32.xlu0 %v3189_v32  ;;  %v3176_v25 = vpop.xlane.xlu0 %3175 }
0x1591   :  { %v3180_v58 = vsub.f32 %v3164_v18, %v3176_v25 }
0x1593   :  { %v3187_v10 = vmul.f32 1.442695, %v3180_v58 }
0x1595   :  { %6613 = vpow2.f32 %v3187_v10 }
0x1596   :  { %6615 = vpow2.f32 %v3183_v7 }
0x1597   :  { %6617 = vpow2.f32 %v3185_v27 }
0x15a2   :  { %v6614_v8 = vpop.eup %6613 }
0x15a3   :  { %v3198_v11 = vsel %vm428_vm2, %v6614_v8, 0.0  ;;  %v6616_v16 = vpop.eup %6615 }
0x15a4   :  { %3199 = vadd.xlane.f32.xlu1 %v3198_v11  ;;  %v3192_v24 = vsel %vm428_vm2, %v6616_v16, 0.0  ;;  %v6618_v28 = vpop.eup %6617 }
0x15a5   :  { %v3195_v55 = vsel %vm428_vm2, %v6618_v28, 0.0 }
0x15a6   :  { %3213 = vrot.lane.b32.xlu0 %v7629_v2, %s6918_s9 }
0x15a8   :  { %3193 = vadd.xlane.f32.xlu1 %v3192_v24 }
0x15b9   :  { %3357 = vrot.lane.b32.xlu1 %v7641_v23, %s6918_s9 }
0x15bd   :  { %3459 = vrot.lane.b32.xlu1 %v7633_v12, %s6919_s21 }
0x15c1   :  { %3457 = vrot.lane.b32.xlu1 %v7633_v12, %s6920_s29 }
0x15c5   :  { %3196 = vadd.xlane.f32.xlu0 %v3195_v55  ;;  %3559 = vrot.lane.b32.xlu1 %v7641_v23, %s6919_s21 }
0x15c9   :  { %3557 = vrot.lane.b32.xlu1 %v7641_v23, %s6920_s29 }
0x15db   :  { %3409 = vrot.lane.b32.xlu0 %v7629_v2, %s6919_s21 }
0x15df   :  { %3407 = vrot.lane.b32.xlu0 %v7629_v2, %s6920_s29 }
0x15e3   :  { %3509 = vrot.lane.b32.xlu0 %v7637_v14, %s6919_s21 }
0x15e7   :  { %3507 = vrot.lane.b32.xlu0 %v7637_v14, %s6920_s29 }
0x1619   :  { %v3191_v31 = vpop.xlane.xlu0 %3190 }
0x161a   :  { %6619 = vrcp.f32 %v3191_v31 }
0x161d   :  { %v3214_v20 = vpop.permute.xlu0 %3213 }
0x161e   :  { %v3219_v34 = vsel %vm685_vm4, %v3214_v20, 0 }
0x161f   :  { %6194 = vmatpush3.bf16.msra.mxu1 %v3219_v34 }
0x1620   :  { %6205 = vmatprep.subr.bf16.mxu1 %v6915_v5 }
0x1627   :  { %v6620_v56 = vpop.eup %6619 }
0x1628   :  { %v3205_v35 = vmul.f32 %v6620_v56, %v6612_v29 }
0x162a   :  { %v3209_v36 = vpack.c.bf16 %v3205_v35, %v3205_v35 }
0x162c   :  { %6196 = vmatmul.mubr.msk.bf16.vlgmr.msra.gmra.mxu1 %vm428_vm2, %v3209_v36 }
0x162d   :  { %6206 = vmatpush3.bf16.msra.mxu1 %v3315_v57  ;;  %v3200_v39 = vpop.xlane.xlu1 %3199  ;;  %6207 = vmatprep.mubr.msk.bf16.mxu1 %vm6916_vm1, %v6915_v5 }
0x162e   :  { %6217 = vmatprep.subr.bf16.mxu1 %v6915_v5 }
0x1631   :  { %v3194_v40 = vpop.xlane.xlu1 %3193 }
0x1632   :  { %6621 = vrcp.f32 %v3194_v40 }
0x1633   :  { %6623 = vrcp.f32 %v3200_v39 }
0x1635   :  { %v3358_v42 = vpop.permute.xlu1 %3357 }
0x1636   :  { %v3363_v46 = vsel %vm685_vm4, %v3358_v42, 0 }
0x1639   :  { %v3460_v47 = vpop.permute.xlu1 %3459 }
0x163a   :  { %v3465_v51 = vsel %vm428_vm2, %v3460_v47, 0 }
0x163d   :  { %v3458_v50 = vpop.permute.xlu1 %3457 }
0x163f   :  { %v6622_v41 = vpop.eup %6621 }
0x1640   :  { %v3206_v43 = vmul.f32 %v6622_v41, %v6616_v16  ;;  %v6624_v45 = vpop.eup %6623 }
0x1641   :  { %v3208_v48 = vmul.f32 %v6624_v45, %v6614_v8  ;;  %v3560_v54 = vpop.permute.xlu1 %3559 }
0x1642   :  { %v3210_v44 = vpack.c.bf16 %v3206_v43, %v3206_v43  ;;  %v3565_v0 = vsel %vm428_vm2, %v3560_v54, 0 }
0x1643   :  { %v3212_v49 = vpack.c.bf16 %v3208_v48, %v3208_v48 }
0x1644   :  { %6202 = vmatmul.mubr.msk.bf16.vlgmr.msra.gmra.mxu0 %vm428_vm2, %v3210_v44 }
0x1645   :  { %6212 = vmatpush3.bf16.msra.mxu0 %v3363_v46  ;;  %6213 = vmatprep.mubr.msk.bf16.mxu0 %vm6916_vm1, %v6915_v5  ;;  %v3558_v9 = vpop.permute.xlu1 %3557 }
0x1646   :  { %6223 = vmatprep.subr.bf16.mxu0 %v6915_v5 }
0x164c   :  { %6214 = vmatmul.mubr.msk.bf16.vlgmr.msra.gmra.mxu0 %vm428_vm2, %v3212_v49 }
0x164d   :  { %6224 = vmatpush3.bf16.xpose.msra.mxu0 %v3465_v51  ;;  %6225 = vmatprep.mubr.msk.bf16.mxu0 %vm6916_vm1, %v6915_v5 }
0x164e   :  { %v3197_v52 = vpop.xlane.xlu0 %3196  ;;  %6235 = vmatprep.subr.bf16.mxu0 %v6915_v5 }
0x164f   :  { %6625 = vrcp.f32 %v3197_v52 }
0x1652   :  { %v3410_v6 = vpop.permute.xlu0 %3409 }
0x1653   :  { %v3415_v13 = vsel %vm428_vm2, %v3410_v6, 0 }
0x1654   :  { %6226 = vmatmul.mubr.msk.bf16.vlgmr.msra.gmra.mxu0 %vm428_vm2, %v3458_v50 }
0x1655   :  { %6236 = vmatpush3.bf16.xpose.msra.mxu0 %v3565_v0  ;;  %6237 = vmatprep.mubr.msk.bf16.mxu0 %vm6916_vm1, %v6915_v5 }
0x1656   :  { %6247 = vmatprep.subr.bf16.mxu0 %v6915_v5  ;;  %v3408_v53 = vpop.permute.xlu0 %3407 }
0x165a   :  { %v3510_v21 = vpop.permute.xlu0 %3509 }
0x165b   :  { %v3515_v22 = vsel %vm428_vm2, %v3510_v21, 0 }
0x165c   :  { %v6626_v15 = vpop.eup %6625  ;;  %6238 = vmatmul.mubr.msk.bf16.vlgmr.msra.gmra.mxu0 %vm428_vm2, %v3558_v9 }
0x165d   :  { %v3207_v17 = vmul.f32 %v6626_v15, %v6618_v28  ;;  %6249 = vmatprep.mubr.msk.bf16.mxu0 %vm6916_vm1, %v6915_v5 }
0x165e   :  { %v3508_v59 = vpop.permute.xlu0 %3507 }
0x165f   :  { %v3211_v18 = vpack.c.bf16 %v3207_v17, %v3207_v17 }
0x1661   :  { %6208 = vmatmul.mubr.msk.bf16.vlgmr.msra.gmra.mxu1 %vm428_vm2, %v3211_v18 }
0x1662   :  { %6218 = vmatpush3.bf16.xpose.msra.mxu1 %v3415_v13  ;;  %6219 = vmatprep.mubr.msk.bf16.mxu1 %vm6916_vm1, %v6915_v5 }
0x1663   :  { %6229 = vmatprep.subr.bf16.mxu1 %v6915_v5 }
0x1669   :  { %6220 = vmatmul.mubr.msk.bf16.vlgmr.msra.gmra.mxu1 %vm428_vm2, %v3408_v53 }
0x166a   :  { %6230 = vmatpush3.bf16.xpose.msra.mxu1 %v3515_v22  ;;  %6231 = vmatprep.mubr.msk.bf16.mxu1 %vm6916_vm1, %v6915_v5 }
0x166b   :  { %6241 = vmatprep.subr.bf16.mxu1 %v6915_v5 }
0x1671   :  { %6232 = vmatmul.mubr.msk.bf16.vlgmr.msra.gmra.mxu1 %vm428_vm2, %v3508_v59 }
0x1672   :  { %6243 = vmatprep.mubr.msk.bf16.mxu1 %vm6916_vm1, %v6915_v5 }
0x16ec   :  { %v7749_v61 = vpop.f32.mrf.mxu1 }
0x16ee   :  { %v6197_v62 = vpop.f32.mrf.mxu1 }
0x16f0   :  { %v3258_v37 = vpop.f32.mrf.mxu1 }
0x16f2   :  { %v6198_v3 = vpop.f32.mrf.mxu1 }
0x1704   :  { %v7751_v29 = vpop.f32.mrf.mxu0 }
0x1705   :  { %v3405_v60 = vpack.c.bf16 %v7751_v29, %v7749_v61 }
0x1706   :  { %v6203_v32 = vpop.f32.mrf.mxu0 }
0x1708   :  { %v3306_v25 = vpop.f32.mrf.mxu0 }
0x170a   :  { %v6204_v58 = vpop.f32.mrf.mxu0 }
0x170c   :  { %v7755_v7 = vpop.f32.mrf.mxu0 }
0x170e   :  { %v6215_v10 = vpop.f32.mrf.mxu0 }
0x1710   :  { %v3402_v8 = vpop.f32.mrf.mxu0 }
0x1712   :  { %v6216_v11 = vpop.f32.mrf.mxu0 }
0x1714   :  { %v3501_v16 = vpop.f32.mrf.mxu0 }
0x1715   :  { %v3608_v24 = vmul.f32 0.35355338, %v3501_v16 }
0x1716   :  { %v6227_v26 = vpop.f32.mrf.mxu0 }
0x1717   :  { %v3612_v27 = vsel %vm7184_vm3, %v3608_v24, -1e+30 }
0x1718   :  { %v3504_v28 = vpop.f32.mrf.mxu0  ;;  %v3618_v55 = vsel %vm428_vm2, %v3612_v27, -inf }
0x1719   :  { %3619 = vmax.xlane.f32.xlu1 %v3618_v55 }
0x171a   :  { %v6228_v31 = vpop.f32.mrf.mxu0 }
0x171c   :  { %v3601_v20 = vpop.f32.mrf.mxu0 }
0x171d   :  { %v3610_v49 = vmul.f32 0.35355338, %v3601_v20 }
0x171e   :  { %v6239_v34 = vpop.f32.mrf.mxu0 }
0x171f   :  { %v3614_v6 = vsel %vm7184_vm3, %v3610_v49, -1e+30 }
0x1720   :  { %v3604_v56 = vpop.f32.mrf.mxu0  ;;  %v3624_v15 = vsel %vm428_vm2, %v3614_v6, -inf }
0x1721   :  { %v7760_v35 = vpop.f32.mrf.mxu1 }
0x1722   :  { %v3406_v38 = vpack.c.bf16 %v7755_v7, %v7760_v35  ;;  %v6240_v36 = vpop.f32.mrf.mxu0  ;;  %v2775_v7 = vld [vmem:[%s8140_s28 + $0x4] sm:$0xf] }
0x1723   :  { %v6209_v57 = vpop.f32.mrf.mxu1  ;;  %v3864_v35 = vsel %vm685_vm4, %v2775_v7, 0 }
0x1725   :  { %v3354_v39 = vpop.f32.mrf.mxu1 }
0x1727   :  { %v6210_v40 = vpop.f32.mrf.mxu1 }
0x1729   :  { %v3451_v41 = vpop.f32.mrf.mxu1 }
0x172a   :  { %v3607_v42 = vmul.f32 0.35355338, %v3451_v41 }
0x172b   :  { %v6221_v43 = vpop.f32.mrf.mxu1 }
0x172c   :  { %v3611_v44 = vsel %vm7184_vm3, %v3607_v42, -1e+30 }
0x172d   :  { %v3454_v45 = vpop.f32.mrf.mxu1  ;;  %v3615_v46 = vsel %vm428_vm2, %v3611_v44, -inf }
0x172e   :  { %3616 = vmax.xlane.f32.xlu0 %v3615_v46 }
0x172f   :  { %v6222_v47 = vpop.f32.mrf.mxu1 }
0x1731   :  { %v3551_v48 = vpop.f32.mrf.mxu1 }
0x1732   :  { %v3609_v50 = vmul.f32 0.35355338, %v3551_v48 }
0x1733   :  { %v6233_v51 = vpop.f32.mrf.mxu1 }
0x1734   :  { %v3613_v52 = vsel %vm7184_vm3, %v3609_v50, -1e+30  ;;  %v2774_v51 = vld [vmem:[%s8140_s28] sm:$0xf] }
0x1735   :  { %v3554_v54 = vpop.f32.mrf.mxu1  ;;  %v3621_v0 = vsel %vm428_vm2, %v3613_v52, -inf }
0x1736   :  { %3622 = vmax.xlane.f32.xlu0 %v3621_v0 }
0x1737   :  { %v6234_v9 = vpop.f32.mrf.mxu1 }
0x1738   :  { %v3922_v9 = vsel %vm685_vm4, %v2774_v51, 0 }
0x173a   :  { %3625 = vmax.xlane.f32.xlu0 %v3624_v15 }
0x17a2   :  { %v3620_v17 = vpop.xlane.xlu1 %3619 }
0x17a3   :  { %v3628_v18 = vsub.f32 %v3612_v27, %v3620_v17 }
0x17a5   :  { %v3633_v53 = vmul.f32 1.442695, %v3628_v18 }
0x17a7   :  { %6627 = vpow2.f32 %v3633_v53 }
0x17b4   :  { %v6628_v13 = vpop.eup %6627 }
0x17b5   :  { %v3642_v21 = vsel %vm428_vm2, %v6628_v13, 0.0 }
0x17b6   :  { %3643 = vadd.xlane.f32.xlu1 %v3642_v21 }
0x17b7   :  { %v3617_v22 = vpop.xlane.xlu0 %3616 }
0x17b8   :  { %v3627_v59 = vsub.f32 %v3611_v44, %v3617_v22 }
0x17ba   :  { %v3631_v62 = vmul.f32 1.442695, %v3627_v59 }
0x17bc   :  { %6629 = vpow2.f32 %v3631_v62 }
0x17bf   :  { %v3623_v37 = vpop.xlane.xlu0 %3622 }
0x17c0   :  { %v3629_v3 = vsub.f32 %v3613_v52, %v3623_v37 }
0x17c2   :  { %v3635_v32 = vmul.f32 1.442695, %v3629_v3 }
0x17c3   :  { %v3626_v11 = vpop.xlane.xlu0 %3625 }
0x17c4   :  { %6631 = vpow2.f32 %v3635_v32  ;;  %v3630_v16 = vsub.f32 %v3614_v6, %v3626_v11 }
0x17c6   :  { %v3637_v24 = vmul.f32 1.442695, %v3630_v16 }
0x17c7   :  { %3711 = vrot.lane.b32.xlu1 %v7633_v12, %s6921_s14 }
0x17c8   :  { %6633 = vpow2.f32 %v3637_v24 }
0x17c9   :  { %v6630_v25 = vpop.eup %6629 }
0x17ca   :  { %v3639_v58 = vsel %vm428_vm2, %v6630_v25, 0.0 }
0x17cb   :  { %3759 = vrot.lane.b32.xlu1 %v7637_v14, %s6921_s14  ;;  %3640 = vadd.xlane.f32.xlu0 %v3639_v58 }
0x17d1   :  { %v6632_v10 = vpop.eup %6631 }
0x17d2   :  { %v3645_v8 = vsel %vm428_vm2, %v6632_v10, 0.0 }
0x17d3   :  { %3646 = vadd.xlane.f32.xlu0 %v3645_v8 }
0x17d5   :  { %v6634_v26 = vpop.eup %6633 }
0x17d6   :  { %v3648_v27 = vsel %vm428_vm2, %v6634_v26, 0.0 }
0x17e9   :  { %3663 = vrot.lane.b32.xlu0 %v7629_v2, %s6921_s14 }
0x17ed   :  { %3975 = vrot.lane.b32.xlu0 %v7629_v2, %s6922_s24 }
0x17ef   :  { %3649 = vadd.xlane.f32.xlu1 %v3648_v27 }
0x17f1   :  { %3973 = vrot.lane.b32.xlu0 %v7629_v2, %s6923_s4 }
0x17f5   :  { %4075 = vrot.lane.b32.xlu0 %v7637_v14, %s6922_s24 }
0x17f9   :  { %4073 = vrot.lane.b32.xlu0 %v7637_v14, %s6923_s4 }
0x1800   :  { %3807 = vrot.lane.b32.xlu1 %v7641_v23, %s6921_s14 }
0x1804   :  { %4025 = vrot.lane.b32.xlu1 %v7633_v12, %s6922_s24 }
0x1808   :  { %4023 = vrot.lane.b32.xlu1 %v7633_v12, %s6923_s4 }
0x180c   :  { %4125 = vrot.lane.b32.xlu1 %v7641_v23, %s6922_s24 }
0x1810   :  { %4123 = vrot.lane.b32.xlu1 %v7641_v23, %s6923_s4 }
0x183f   :  { %v3644_v28 = vpop.xlane.xlu1 %3643 }
0x1840   :  { %6635 = vrcp.f32 %v3644_v28 }
0x1843   :  { %v3712_v55 = vpop.permute.xlu1 %3711 }
0x1844   :  { %v3717_v31 = vsel %vm685_vm4, %v3712_v55, 0 }
0x1845   :  { %6248 = vmatpush3.bf16.msra.mxu0 %v3717_v31 }
0x1846   :  { %6259 = vmatprep.subr.bf16.mxu0 %v6915_v5 }
0x1847   :  { %v3760_v43 = vpop.permute.xlu1 %3759 }
0x1848   :  { %v3765_v45 = vsel %vm685_vm4, %v3760_v43, 0 }
0x184d   :  { %v6636_v20 = vpop.eup %6635 }
0x184e   :  { %v3656_v34 = vmul.f32 %v6636_v20, %v6628_v13 }
0x1850   :  { %v3660_v56 = vpack.c.bf16 %v3656_v34, %v3656_v34 }
0x1852   :  { %6250 = vmatmul.mubr.msk.bf16.vlgmr.msra.gmra.mxu0 %vm428_vm2, %v3660_v56 }
0x1853   :  { %6261 = vmatprep.mubr.msk.bf16.mxu0 %vm6916_vm1, %v6915_v5 }
0x1854   :  { %v3641_v36 = vpop.xlane.xlu0 %3640 }
0x1855   :  { %6637 = vrcp.f32 %v3641_v36 }
0x185c   :  { %v3647_v57 = vpop.xlane.xlu0 %3646 }
0x185d   :  { %6639 = vrcp.f32 %v3647_v57 }
0x1860   :  { %v3664_v39 = vpop.permute.xlu0 %3663 }
0x1861   :  { %v3669_v40 = vsel %vm685_vm4, %v3664_v39, 0 }
0x1862   :  { %v6638_v41 = vpop.eup %6637  ;;  %6242 = vmatpush3.bf16.msra.mxu1 %v3669_v40 }
0x1863   :  { %v3655_v42 = vmul.f32 %v6638_v41, %v6630_v25  ;;  %6253 = vmatprep.subr.bf16.mxu1 %v6915_v5 }
0x1864   :  { %v3976_v8 = vpop.permute.xlu0 %3975 }
0x1865   :  { %v3659_v44 = vpack.c.bf16 %v3655_v42, %v3655_v42  ;;  %v3981_v27 = vsel %vm428_vm2, %v3976_v8, 0 }
0x1867   :  { %6244 = vmatmul.mubr.msk.bf16.vlgmr.msra.gmra.mxu1 %vm428_vm2, %v3659_v44 }
0x1868   :  { %6254 = vmatpush3.bf16.msra.mxu1 %v3765_v45  ;;  %6255 = vmatprep.mubr.msk.bf16.mxu1 %vm6916_vm1, %v6915_v5  ;;  %v3974_v24 = vpop.permute.xlu0 %3973 }
0x1869   :  { %6425 = vmatprep.subr.msk.bf16.mxu1 %vm685_vm4, %v2775_v7 }
0x186a   :  { %v6640_v46 = vpop.eup %6639 }
0x186b   :  { %v3657_v47 = vmul.f32 %v6640_v46, %v6632_v10 }
0x186c   :  { %v4076_v31 = vpop.permute.xlu0 %4075 }
0x186d   :  { %v3661_v48 = vpack.c.bf16 %v3657_v47, %v3657_v47  ;;  %v4081_v56 = vsel %vm428_vm2, %v4076_v31, 0 }
0x186f   :  { %6256 = vmatmul.mubr.msk.bf16.vlgmr.msra.gmra.mxu1 %vm428_vm2, %v3661_v48 }
0x1870   :  { %6266 = vmatpush3.bf16.msra.mxu1 %v3864_v35  ;;  %v4074_v41 = vpop.permute.xlu0 %4073 }
0x1871   :  { %6277 = vmatprep.subr.bf16.mxu1 %v6915_v5 }
0x1878   :  { %v3650_v49 = vpop.xlane.xlu1 %3649 }
0x1879   :  { %6641 = vrcp.f32 %v3650_v49 }
0x187c   :  { %v3808_v50 = vpop.permute.xlu1 %3807 }
0x187d   :  { %v3813_v52 = vsel %vm685_vm4, %v3808_v50, 0 }
0x187e   :  { %6260 = vmatpush3.bf16.msra.mxu0 %v3813_v52 }
0x187f   :  { %6426 = vmatprep.subr.msk.bf16.mxu0 %vm685_vm4, %v2774_v51 }
0x1880   :  { %v4026_v15 = vpop.permute.xlu1 %4025 }
0x1881   :  { %v4031_v18 = vsel %vm428_vm2, %v4026_v15, 0 }
0x1884   :  { %v4024_v17 = vpop.permute.xlu1 %4023 }
0x1886   :  { %v6642_v54 = vpop.eup %6641 }
0x1887   :  { %v3658_v0 = vmul.f32 %v6642_v54, %v6634_v26 }
0x1888   :  { %v4126_v61 = vpop.permute.xlu1 %4125 }
0x1889   :  { %v3662_v6 = vpack.c.bf16 %v3658_v0, %v3658_v0  ;;  %v4131_v29 = vsel %vm428_vm2, %v4126_v61, 0 }
0x188b   :  { %6262 = vmatmul.mubr.msk.bf16.vlgmr.msra.gmra.mxu0 %vm428_vm2, %v3662_v6 }
0x188c   :  { %6273 = vmatprep.mubr.msk.bf16.mxu0 %vm428_vm2, %v3405_v60  ;;  %6272 = vmatpush3.bf16.msra.mxu0 %v3922_v9  ;;  %v4124_v60 = vpop.permute.xlu1 %4123 }
0x188d   :  { %6283 = vmatprep.subr.bf16.mxu0 %v6915_v5 }
0x1893   :  { %6274 = vmatmul.mubr.msk.bf16.vlgmr.msra.gmra.mxu0 %vm428_vm2, %v3406_v38 }
0x1894   :  { %6284 = vmatpush3.bf16.xpose.msra.mxu0 %v4031_v18  ;;  %6285 = vmatprep.mubr.msk.bf16.mxu0 %vm6916_vm1, %v6915_v5 }
0x1895   :  { %6295 = vmatprep.subr.bf16.mxu0 %v6915_v5 }
0x189b   :  { %6286 = vmatmul.mubr.msk.bf16.vlgmr.msra.gmra.mxu0 %vm428_vm2, %v4024_v17 }
0x189c   :  { %6296 = vmatpush3.bf16.xpose.msra.mxu0 %v4131_v29  ;;  %6297 = vmatprep.mubr.msk.bf16.mxu0 %vm6916_vm1, %v6915_v5 }
0x189d   :  { %6307 = vmatprep.subr.bf16.mxu0 %v6915_v5 }
0x18a3   :  { %6298 = vmatmul.mubr.msk.bf16.vlgmr.msra.gmra.mxu0 %vm428_vm2, %v4124_v60 }
0x18a4   :  { %6309 = vmatprep.mubr.msk.bf16.mxu0 %vm6916_vm1, %v6915_v5 }
0x1912   :  { %v3753_v38 = vpop.f32.mrf.mxu0 }
0x1914   :  { %v6251_v53 = vpop.f32.mrf.mxu0 }
0x1916   :  { %v3756_v13 = vpop.f32.mrf.mxu0 }
0x1918   :  { %v6252_v21 = vpop.f32.mrf.mxu0 }
0x1927   :  { %v3705_v22 = vpop.f32.mrf.mxu1 }
0x1928   :  { %v3855_v59 = vpack.c.bf16 %v3753_v38, %v3705_v22 }
0x1929   :  { %v6245_v62 = vpop.f32.mrf.mxu1 }
0x192a   :  { %6267 = vmatprep.mubr.msk.bf16.mxu1 %vm428_vm2, %v3855_v59 }
0x192b   :  { %v3708_v37 = vpop.f32.mrf.mxu1 }
0x192d   :  { %v6246_v3 = vpop.f32.mrf.mxu1 }
0x192f   :  { %v3801_v32 = vpop.f32.mrf.mxu1 }
0x1931   :  { %v6257_v25 = vpop.f32.mrf.mxu1 }
0x1933   :  { %v3804_v58 = vpop.f32.mrf.mxu1 }
0x1935   :  { %v6258_v10 = vpop.f32.mrf.mxu1 }
0x194b   :  { %v3849_v11 = vpop.f32.mrf.mxu0 }
0x194c   :  { %v3856_v16 = vpack.c.bf16 %v3849_v11, %v3801_v32 }
0x194d   :  { %v6263_v26 = vpop.f32.mrf.mxu0 }
0x194e   :  { %6268 = vmatmul.mubr.msk.bf16.vlgmr.msra.gmra.mxu1 %vm428_vm2, %v3856_v16 }
0x194f   :  { %6278 = vmatpush3.bf16.xpose.msra.mxu1 %v3981_v27  ;;  %v3852_v28 = vpop.f32.mrf.mxu0  ;;  %6279 = vmatprep.mubr.msk.bf16.mxu1 %vm6916_vm1, %v6915_v5 }
0x1950   :  { %6289 = vmatprep.subr.bf16.mxu1 %v6915_v5 }
0x1951   :  { %v6264_v55 = vpop.f32.mrf.mxu0 }
0x1953   :  { %v7849_v20 = vpop.f32.mrf.mxu0 }
0x1955   :  { %v7851_v34 = vpop.f32.mrf.mxu0 }
0x1956   :  { %6280 = vmatmul.mubr.msk.bf16.vlgmr.msra.gmra.mxu1 %vm428_vm2, %v3974_v24 }
0x1957   :  { %6290 = vmatpush3.bf16.xpose.msra.mxu1 %v4081_v56  ;;  %v7855_v36 = vpop.f32.mrf.mxu0  ;;  %6291 = vmatprep.mubr.msk.bf16.mxu1 %vm6916_vm1, %v6915_v5 }
0x1958   :  { %6301 = vmatprep.subr.bf16.mxu1 %v6915_v5 }
0x1959   :  { %v7860_v57 = vpop.f32.mrf.mxu0 }
0x195b   :  { %v4067_v39 = vpop.f32.mrf.mxu0 }
0x195c   :  { %v4174_v40 = vmul.f32 0.35355338, %v4067_v39 }
0x195d   :  { %v6287_v42 = vpop.f32.mrf.mxu0 }
0x195e   :  { %v4178_v43 = vsel %vm7184_vm3, %v4174_v40, -1e+30  ;;  %6292 = vmatmul.mubr.msk.bf16.vlgmr.msra.gmra.mxu1 %vm428_vm2, %v4074_v41 }
0x195f   :  { %v4070_v44 = vpop.f32.mrf.mxu0  ;;  %v4184_v45 = vsel %vm428_vm2, %v4178_v43, -inf  ;;  %6303 = vmatprep.mubr.msk.bf16.mxu1 %vm6916_vm1, %v6915_v5 }
0x1960   :  { %4185 = vmax.xlane.f32.xlu1 %v4184_v45 }
0x1961   :  { %v6288_v46 = vpop.f32.mrf.mxu0 }
0x1963   :  { %v4167_v47 = vpop.f32.mrf.mxu0 }
0x1964   :  { %v4176_v21 = vmul.f32 0.35355338, %v4167_v47 }
0x1965   :  { %v6299_v48 = vpop.f32.mrf.mxu0 }
0x1966   :  { %v4180_v32 = vsel %vm7184_vm3, %v4176_v21, -1e+30 }
0x1967   :  { %v4170_v49 = vpop.f32.mrf.mxu0  ;;  %v4190_v58 = vsel %vm428_vm2, %v4180_v32, -inf }
0x1969   :  { %v6300_v50 = vpop.f32.mrf.mxu0 }
0x19e9   :  { %v4186_v51 = vpop.xlane.xlu1 %4185 }
0x19ea   :  { %v4194_v52 = vsub.f32 %v4178_v43, %v4186_v51 }
0x19ec   :  { %v4199_v54 = vmul.f32 1.442695, %v4194_v52 }
0x19ee   :  { %6643 = vpow2.f32 %v4199_v54 }
0x19fb   :  { %v7868_v0 = vpop.eup %6643 }
0x19fc   :  { %v4208_v6 = vsel %vm428_vm2, %v7868_v0, 0.0 }
0x19fd   :  { %4209 = vadd.xlane.f32.xlu1 %v4208_v6 }
0x1a0e   :  { %v7872_v9 = vpop.f32.mrf.mxu1 }
0x1a10   :  { %v7874_v15 = vpop.f32.mrf.mxu1 }
0x1a12   :  { %v7876_v17 = vpop.f32.mrf.mxu1 }
0x1a14   :  { %v7878_v18 = vpop.f32.mrf.mxu1 }
0x1a16   :  { %v4017_v61 = vpop.f32.mrf.mxu1 }
0x1a17   :  { %v4173_v29 = vmul.f32 0.35355338, %v4017_v61 }
0x1a18   :  { %v6281_v60 = vpop.f32.mrf.mxu1 }
0x1a19   :  { %v4177_v7 = vsel %vm7184_vm3, %v4173_v29, -1e+30 }
0x1a1a   :  { %v4020_v35 = vpop.f32.mrf.mxu1  ;;  %v4181_v38 = vsel %vm428_vm2, %v4177_v7, -inf }
0x1a1b   :  { %4182 = vmax.xlane.f32.xlu0 %v4181_v38 }
0x1a1c   :  { %v6282_v53 = vpop.f32.mrf.mxu1 }
0x1a1e   :  { %v4117_v13 = vpop.f32.mrf.mxu1 }
0x1a1f   :  { %v4175_v22 = vmul.f32 0.35355338, %v4117_v13 }
0x1a20   :  { %v6293_v59 = vpop.f32.mrf.mxu1 }
0x1a21   :  { %v4179_v62 = vsel %vm7184_vm3, %v4175_v22, -1e+30 }
0x1a22   :  { %v4120_v37 = vpop.f32.mrf.mxu1  ;;  %v4187_v3 = vsel %vm428_vm2, %v4179_v62, -inf }
0x1a23   :  { %4188 = vmax.xlane.f32.xlu0 %v4187_v3 }
0x1a24   :  { %v6294_v25 = vpop.f32.mrf.mxu1 }
0x1a27   :  { %4191 = vmax.xlane.f32.xlu0 %v4190_v58 }
0x1a86   :  { %v4210_v43 = vpop.xlane.xlu1 %4209 }
0x1aa4   :  { %v4183_v10 = vpop.xlane.xlu0 %4182 }
0x1aa5   :  { %v4193_v8 = vsub.f32 %v4177_v7, %v4183_v10  ;;  %v2776_v10 = vld [vmem:[%s8140_s28 + $0x8] sm:$0xf] }
0x1aa7   :  { %v4197_v11 = vmul.f32 1.442695, %v4193_v8  ;;  %v4430_v8 = vsel %vm685_vm4, %v2776_v10, 0 }
0x1aa9   :  { %6645 = vpow2.f32 %v4197_v11 }
0x1aac   :  { %v4189_v16 = vpop.xlane.xlu0 %4188 }
0x1aad   :  { %v4195_v24 = vsub.f32 %v4179_v62, %v4189_v16 }
0x1aaf   :  { %v4201_v26 = vmul.f32 1.442695, %v4195_v24 }
0x1ab0   :  { %v4192_v27 = vpop.xlane.xlu0 %4191 }
0x1ab1   :  { %6647 = vpow2.f32 %v4201_v26  ;;  %v4196_v28 = vsub.f32 %v4180_v32, %v4192_v27 }
0x1ab3   :  { %v4203_v55 = vmul.f32 1.442695, %v4196_v28 }
0x1ab5   :  { %6649 = vpow2.f32 %v4203_v55 }
0x1ab6   :  { %v6646_v31 = vpop.eup %6645  ;;  %6651 = vrcp.f32 %v4210_v43 }
0x1ab7   :  { %v4205_v56 = vsel %vm428_vm2, %v6646_v31, 0.0 }
0x1ab8   :  { %4206 = vadd.xlane.f32.xlu0 %v4205_v56 }
0x1abe   :  { %v6648_v39 = vpop.eup %6647 }
0x1abf   :  { %v4211_v40 = vsel %vm428_vm2, %v6648_v39, 0.0 }
0x1ac0   :  { %4212 = vadd.xlane.f32.xlu0 %v4211_v40 }
0x1ac2   :  { %v6650_v41 = vpop.eup %6649 }
0x1ac3   :  { %v4214_v42 = vsel %vm428_vm2, %v6650_v41, 0.0  ;;  %v6652_v46 = vpop.eup %6651 }
0x1ac4   :  { %4215 = vadd.xlane.f32.xlu1 %v4214_v42  ;;  %v4222_v51 = vmul.f32 %v6652_v46, %v7868_v0 }
0x1ac6   :  { %v4226_v29 = vpack.c.bf16 %v4222_v51, %v4222_v51 }
0x1ad5   :  { %4277 = vrot.lane.b32.xlu1 %v7633_v12, %s6924_s16 }
0x1ad6   :  { %4229 = vrot.lane.b32.xlu0 %v7629_v2, %s6924_s16 }
0x1ad9   :  { %4325 = vrot.lane.b32.xlu1 %v7637_v14, %s6924_s16 }
0x1ada   :  { %4487 = vrot.lane.b32.xlu0 %v7629_v2, %s6925_s18 }
0x1add   :  { %4373 = vrot.lane.b32.xlu1 %v7641_v23, %s6924_s16 }
0x1ade   :  { %4485 = vrot.lane.b32.xlu0 %v7629_v2, %s6926_s22 }
0x1ae1   :  { %4537 = vrot.lane.b32.xlu1 %v7633_v12, %s6925_s18 }
0x1ae2   :  { %4587 = vrot.lane.b32.xlu0 %v7637_v14, %s6925_s18 }
0x1ae5   :  { %4535 = vrot.lane.b32.xlu1 %v7633_v12, %s6926_s22 }
0x1ae6   :  { %4585 = vrot.lane.b32.xlu0 %v7637_v14, %s6926_s22 }
0x1ae9   :  { %4637 = vrot.lane.b32.xlu1 %v7641_v23, %s6925_s18 }
0x1aed   :  { %4635 = vrot.lane.b32.xlu1 %v7641_v23, %s6926_s22 }
0x1b41   :  { %v4207_v44 = vpop.xlane.xlu0 %4206 }
0x1b42   :  { %6653 = vrcp.f32 %v4207_v44 }
0x1b49   :  { %v4213_v45 = vpop.xlane.xlu0 %4212 }
0x1b4a   :  { %6655 = vrcp.f32 %v4213_v45 }
0x1b4d   :  { %v4216_v47 = vpop.xlane.xlu1 %4215  ;;  %v4230_v48 = vpop.permute.xlu0 %4229 }
0x1b4e   :  { %6657 = vrcp.f32 %v4216_v47  ;;  %v4235_v49 = vsel %vm685_vm4, %v4230_v48, 0 }
0x1b4f   :  { %v6654_v50 = vpop.eup %6653  ;;  %6302 = vmatpush3.bf16.msra.mxu1 %v4235_v49 }
0x1b50   :  { %v4221_v52 = vmul.f32 %v6654_v50, %v6646_v31  ;;  %6313 = vmatprep.subr.bf16.mxu1 %v6915_v5 }
0x1b51   :  { %v4278_v54 = vpop.permute.xlu1 %4277  ;;  %v4488_v38 = vpop.permute.xlu0 %4487 }
0x1b52   :  { %v4225_v6 = vpack.c.bf16 %v4221_v52, %v4221_v52  ;;  %v4283_v61 = vsel %vm685_vm4, %v4278_v54, 0  ;;  %v4493_v3 = vsel %vm428_vm2, %v4488_v38, 0 }
0x1b53   :  { %6308 = vmatpush3.bf16.msra.mxu0 %v4283_v61 }
0x1b54   :  { %6304 = vmatmul.mubr.msk.bf16.vlgmr.msra.gmra.mxu1 %vm428_vm2, %v4225_v6  ;;  %6319 = vmatprep.subr.bf16.mxu0 %v6915_v5 }
0x1b55   :  { %v4326_v60 = vpop.permute.xlu1 %4325  ;;  %6315 = vmatprep.mubr.msk.bf16.mxu1 %vm6916_vm1, %v6915_v5  ;;  %v4486_v37 = vpop.permute.xlu0 %4485 }
0x1b56   :  { %v4331_v7 = vsel %vm685_vm4, %v4326_v60, 0  ;;  %6310 = vmatmul.mubr.msk.bf16.vlgmr.msra.gmra.mxu0 %vm428_vm2, %v4226_v29 }
0x1b57   :  { %v6656_v0 = vpop.eup %6655  ;;  %6314 = vmatpush3.bf16.msra.mxu1 %v4331_v7  ;;  %6321 = vmatprep.mubr.msk.bf16.mxu0 %vm6916_vm1, %v6915_v5 }
0x1b58   :  { %v4223_v35 = vmul.f32 %v6656_v0, %v6648_v39  ;;  %6427 = vmatprep.subr.msk.bf16.mxu1 %vm685_vm4, %v2776_v10 }
0x1b59   :  { %v4374_v53 = vpop.permute.xlu1 %4373  ;;  %v4588_v32 = vpop.permute.xlu0 %4587 }
0x1b5a   :  { %v4227_v13 = vpack.c.bf16 %v4223_v35, %v4223_v35  ;;  %v4379_v21 = vsel %vm685_vm4, %v4374_v53, 0  ;;  %v4593_v25 = vsel %vm428_vm2, %v4588_v32, 0 }
0x1b5b   :  { %v6658_v22 = vpop.eup %6657  ;;  %6320 = vmatpush3.bf16.msra.mxu0 %v4379_v21 }
0x1b5c   :  { %v4224_v59 = vmul.f32 %v6658_v22, %v6650_v41  ;;  %6316 = vmatmul.mubr.msk.bf16.vlgmr.msra.gmra.mxu1 %vm428_vm2, %v4227_v13  ;;  %6331 = vmatprep.subr.bf16.mxu0 %v6915_v5 }
0x1b5d   :  { %v4586_v58 = vpop.permute.xlu0 %4585  ;;  %6326 = vmatpush3.bf16.msra.mxu1 %v4430_v8  ;;  %v4538_v56 = vpop.permute.xlu1 %4537 }
0x1b5e   :  { %v4228_v62 = vpack.c.bf16 %v4224_v59, %v4224_v59  ;;  %6337 = vmatprep.subr.bf16.mxu1 %v6915_v5  ;;  %v4543_v48 = vsel %vm428_vm2, %v4538_v56, 0 }
0x1b60   :  { %6322 = vmatmul.mubr.msk.bf16.vlgmr.msra.gmra.mxu0 %vm428_vm2, %v4228_v62 }
0x1b61   :  { %6332 = vmatpush3.bf16.xpose.msra.mxu0 %v4493_v3  ;;  %6333 = vmatprep.mubr.msk.bf16.mxu0 %vm6916_vm1, %v6915_v5  ;;  %v4536_v44 = vpop.permute.xlu1 %4535  ;;  %v3967_v3 = vadd.f32 %v7849_v20, %v7872_v9  ;;  %v3962_v20 = vadd.f32 %v7860_v57, %v7878_v18 }
0x1b62   :  { %6343 = vmatprep.subr.bf16.mxu0 %v6915_v5 }
0x1b65   :  { %v4638_v51 = vpop.permute.xlu1 %4637 }
0x1b66   :  { %v4643_v61 = vsel %vm428_vm2, %v4638_v51, 0 }
0x1b68   :  { %6334 = vmatmul.mubr.msk.bf16.vlgmr.msra.gmra.mxu0 %vm428_vm2, %v4486_v37 }
0x1b69   :  { %6344 = vmatpush3.bf16.xpose.msra.mxu0 %v4593_v25  ;;  %6345 = vmatprep.mubr.msk.bf16.mxu0 %vm6916_vm1, %v6915_v5  ;;  %v4636_v53 = vpop.permute.xlu1 %4635 }
0x1b6a   :  { %6355 = vmatprep.subr.bf16.mxu0 %v6915_v5 }
0x1b70   :  { %6346 = vmatmul.mubr.msk.bf16.vlgmr.msra.gmra.mxu0 %vm428_vm2, %v4586_v58  ;;  %v3959_v58 = vadd.f32 %v7851_v34, %v7874_v15 }
0x1b71   :  { %6357 = vmatprep.mubr.msk.bf16.mxu0 %vm6916_vm1, %v6915_v5 }
0x1c14   :  { %v4271_v11 = vpop.f32.mrf.mxu1 }
0x1c16   :  { %v6305_v16 = vpop.f32.mrf.mxu1  ;;  %v4319_v24 = vpop.f32.mrf.mxu0 }
0x1c17   :  { %v4421_v26 = vpack.c.bf16 %v4319_v24, %v4271_v11  ;;  %v3970_v16 = vadd.f32 %v7855_v36, %v7876_v17 }
0x1c18   :  { %v4274_v27 = vpop.f32.mrf.mxu1  ;;  %v6311_v28 = vpop.f32.mrf.mxu0 }
0x1c19   :  { %6327 = vmatprep.mubr.msk.bf16.mxu1 %vm428_vm2, %v4421_v26 }
0x1c1a   :  { %v6306_v55 = vpop.f32.mrf.mxu1  ;;  %v4322_v31 = vpop.f32.mrf.mxu0 }
0x1c1c   :  { %v6312_v39 = vpop.f32.mrf.mxu0  ;;  %v4367_v40 = vpop.f32.mrf.mxu1 }
0x1c1e   :  { %v6317_v41 = vpop.f32.mrf.mxu1 }
0x1c20   :  { %v4370_v42 = vpop.f32.mrf.mxu1  ;;  %v4415_v43 = vpop.f32.mrf.mxu0 }
0x1c21   :  { %v4422_v45 = vpack.c.bf16 %v4415_v43, %v4367_v40 }
0x1c22   :  { %v6318_v46 = vpop.f32.mrf.mxu1  ;;  %v6323_v47 = vpop.f32.mrf.mxu0 }
0x1c23   :  { %6328 = vmatmul.mubr.msk.bf16.vlgmr.msra.gmra.mxu1 %vm428_vm2, %v4422_v45 }
0x1c24   :  { %6338 = vmatpush3.bf16.xpose.msra.mxu1 %v4543_v48  ;;  %v4418_v49 = vpop.f32.mrf.mxu0  ;;  %6339 = vmatprep.mubr.msk.bf16.mxu1 %vm6916_vm1, %v6915_v5 }
0x1c25   :  { %6349 = vmatprep.subr.bf16.mxu1 %v6915_v5 }
0x1c26   :  { %v6324_v50 = vpop.f32.mrf.mxu0 }
0x1c28   :  { %v4529_v52 = vpop.f32.mrf.mxu0 }
0x1c29   :  { %v4685_v54 = vmul.f32 0.35355338, %v4529_v52 }
0x1c2a   :  { %v6335_v6 = vpop.f32.mrf.mxu0 }
0x1c2b   :  { %v4689_v29 = vsel %vm7184_vm3, %v4685_v54, -1e+30  ;;  %6340 = vmatmul.mubr.msk.bf16.vlgmr.msra.gmra.mxu1 %vm428_vm2, %v4536_v44 }
0x1c2c   :  { %6350 = vmatpush3.bf16.xpose.msra.mxu1 %v4643_v61  ;;  %v4532_v60 = vpop.f32.mrf.mxu0  ;;  %v4693_v7 = vsel %vm428_vm2, %v4689_v29, -inf  ;;  %6351 = vmatprep.mubr.msk.bf16.mxu1 %vm6916_vm1, %v6915_v5 }
0x1c2d   :  { %4694 = vmax.xlane.f32.xlu0 %v4693_v7  ;;  %6361 = vmatprep.subr.bf16.mxu1 %v6915_v5 }
0x1c2e   :  { %v6336_v0 = vpop.f32.mrf.mxu0 }
0x1c30   :  { %v4629_v35 = vpop.f32.mrf.mxu0 }
0x1c31   :  { %v4687_v38 = vmul.f32 0.35355338, %v4629_v35 }
0x1c32   :  { %v6347_v13 = vpop.f32.mrf.mxu0 }
0x1c33   :  { %v4691_v21 = vsel %vm7184_vm3, %v4687_v38, -1e+30  ;;  %6352 = vmatmul.mubr.msk.bf16.vlgmr.msra.gmra.mxu1 %vm428_vm2, %v4636_v53 }
0x1c34   :  { %v4632_v22 = vpop.f32.mrf.mxu0  ;;  %v4699_v59 = vsel %vm428_vm2, %v4691_v21, -inf  ;;  %6363 = vmatprep.mubr.msk.bf16.mxu1 %vm6916_vm1, %v6915_v5 }
0x1c35   :  { %4700 = vmax.xlane.f32.xlu0 %v4699_v59 }
0x1c36   :  { %v6348_v62 = vpop.f32.mrf.mxu0 }
0x1cb6   :  { %v4695_v37 = vpop.xlane.xlu0 %4694 }
0x1cb7   :  { %v4705_v32 = vsub.f32 %v4689_v29, %v4695_v37 }
0x1cb9   :  { %v4709_v26 = vmul.f32 1.442695, %v4705_v32 }
0x1cbb   :  { %6659 = vpow2.f32 %v4709_v26 }
0x1cbe   :  { %v4701_v10 = vpop.xlane.xlu0 %4700 }
0x1cbf   :  { %v4707_v27 = vsub.f32 %v4691_v21, %v4701_v10 }
0x1cc1   :  { %v4713_v34 = vmul.f32 1.442695, %v4707_v27 }
0x1cc3   :  { %6661 = vpow2.f32 %v4713_v34 }
0x1cc8   :  { %v6660_v46 = vpop.eup %6659 }
0x1cc9   :  { %v4717_v48 = vsel %vm428_vm2, %v6660_v46, 0.0 }
0x1cd0   :  { %v6662_v49 = vpop.eup %6661 }
0x1cd1   :  { %v4723_v50 = vsel %vm428_vm2, %v6662_v49, 0.0 }
0x1ce3   :  { %v6329_v25 = vpop.f32.mrf.mxu1 }
0x1ce4   :  { %v7972_v8 = vadd.f32 %v6329_v25, %v3967_v3 }
0x1ce5   :  { %v4466_v11 = vpop.f32.mrf.mxu1 }
0x1ce6   :  { %v7976_v24 = vadd.f32 %v4466_v11, %v3959_v58 }
0x1ce7   :  { %v6330_v28 = vpop.f32.mrf.mxu1 }
0x1ce8   :  { %v7980_v9 = vadd.f32 %v6330_v28, %v3970_v16 }
0x1ce9   :  { %v4469_v55 = vpop.f32.mrf.mxu1 }
0x1cea   :  { %v7982_v31 = vadd.f32 %v4469_v55, %v3962_v20 }
0x1ceb   :  { %v4579_v15 = vpop.f32.mrf.mxu1 }
0x1cec   :  { %v4686_v56 = vmul.f32 0.35355338, %v4579_v15 }
0x1ced   :  { %v6341_v39 = vpop.f32.mrf.mxu1 }
0x1cee   :  { %v4690_v36 = vsel %vm7184_vm3, %v4686_v56, -1e+30 }
0x1cef   :  { %v4582_v17 = vpop.f32.mrf.mxu1  ;;  %v4696_v40 = vsel %vm428_vm2, %v4690_v36, -inf }
0x1cf0   :  { %4697 = vmax.xlane.f32.xlu1 %v4696_v40 }
0x1cf1   :  { %v6342_v41 = vpop.f32.mrf.mxu1 }
0x1cf2   :  { %v2777_v41 = vld [vmem:[%s8140_s28 + $0xc] sm:$0xf] }
0x1cf3   :  { %v4679_v57 = vpop.f32.mrf.mxu1 }
0x1cf4   :  { %v4688_v18 = vmul.f32 0.35355338, %v4679_v57  ;;  %v4942_v57 = vsel %vm685_vm4, %v2777_v41, 0 }
0x1cf5   :  { %v6353_v42 = vpop.f32.mrf.mxu1 }
0x1cf6   :  { %v4692_v43 = vsel %vm7184_vm3, %v4688_v18, -1e+30 }
0x1cf7   :  { %v4682_v44 = vpop.f32.mrf.mxu1  ;;  %v4702_v45 = vsel %vm428_vm2, %v4692_v43, -inf }
0x1cf8   :  { %4703 = vmax.xlane.f32.xlu0 %v4702_v45 }
0x1cf9   :  { %v6354_v47 = vpop.f32.mrf.mxu1 }
0x1cfc   :  { %4718 = vadd.xlane.f32.xlu0 %v4717_v48 }
0x1d00   :  { %4724 = vadd.xlane.f32.xlu0 %v4723_v50 }
0x1d01   :  { %4789 = vrot.lane.b32.xlu1 %v7633_v12, %s6927_s3 }
0x1d05   :  { %4837 = vrot.lane.b32.xlu1 %v7637_v14, %s6927_s3 }
0x1d16   :  { %4741 = vrot.lane.b32.xlu0 %v7629_v2, %s6927_s3 }
0x1d79   :  { %v4698_v33 = vpop.xlane.xlu1 %4697 }
0x1d7a   :  { %v4706_v51 = vsub.f32 %v4690_v36, %v4698_v33 }
0x1d7c   :  { %v4711_v52 = vmul.f32 1.442695, %v4706_v51 }
0x1d7d   :  { %v4790_v54 = vpop.permute.xlu1 %4789 }
0x1d7e   :  { %6663 = vpow2.f32 %v4711_v52  ;;  %v4795_v6 = vsel %vm685_vm4, %v4790_v54, 0  ;;  %v5691_v52 = vld [vmem:[%s8141_s1] ss:$0 sm:$0xff] }
0x1d7f   :  { %6362 = vmatpush3.bf16.msra.mxu1 %v4795_v6 }
0x1d80   :  { %6373 = vmatprep.subr.bf16.mxu1 %v6915_v5 }
0x1d81   :  { %v4704_v61 = vpop.xlane.xlu0 %4703  ;;  %v4838_v22 = vpop.permute.xlu1 %4837 }
0x1d82   :  { %v4708_v29 = vsub.f32 %v4692_v43, %v4704_v61  ;;  %v4843_v37 = vsel %vm685_vm4, %v4838_v22, 0 }
0x1d84   :  { %v4715_v60 = vmul.f32 1.442695, %v4708_v29 }
0x1d85   :  { %v4719_v12 = vpop.xlane.xlu0 %4718 }
0x1d86   :  { %6665 = vpow2.f32 %v4715_v60 }
0x1d87   :  { %6667 = vrcp.f32 %v4719_v12 }
0x1d89   :  { %v4725_v14 = vpop.xlane.xlu0 %4724 }
0x1d8a   :  { %6669 = vrcp.f32 %v4725_v14 }
0x1d8b   :  { %v6664_v7 = vpop.eup %6663 }
0x1d8c   :  { %v4720_v2 = vsel %vm428_vm2, %v6664_v7, 0.0 }
0x1d8d   :  { %4721 = vadd.xlane.f32.xlu1 %v4720_v2  ;;  %v4742_v0 = vpop.permute.xlu0 %4741 }
0x1d8e   :  { %v4747_v35 = vsel %vm685_vm4, %v4742_v0, 0 }
0x1d8f   :  { %6356 = vmatpush3.bf16.msra.mxu0 %v4747_v35 }
0x1d90   :  { %6367 = vmatprep.subr.bf16.mxu0 %v6915_v5 }
0x1d93   :  { %v6666_v38 = vpop.eup %6665 }
0x1d94   :  { %v6668_v53 = vpop.eup %6667  ;;  %v4726_v13 = vsel %vm428_vm2, %v6666_v38, 0.0 }
0x1d95   :  { %v4733_v21 = vmul.f32 %v6668_v53, %v6660_v46  ;;  %4727 = vadd.xlane.f32.xlu1 %v4726_v13 }
0x1d97   :  { %v4737_v59 = vpack.c.bf16 %v4733_v21, %v4733_v21  ;;  %v6670_v62 = vpop.eup %6669 }
0x1d98   :  { %v4735_v3 = vmul.f32 %v6670_v62, %v6662_v49 }
0x1d99   :  { %6358 = vmatmul.mubr.msk.bf16.vlgmr.msra.gmra.mxu0 %vm428_vm2, %v4737_v59 }
0x1d9a   :  { %6368 = vmatpush3.bf16.msra.mxu0 %v4843_v37  ;;  %6369 = vmatprep.mubr.msk.bf16.mxu0 %vm6916_vm1, %v6915_v5  ;;  %v4739_v32 = vpack.c.bf16 %v4735_v3, %v4735_v3 }
0x1d9b   :  { %6428 = vmatprep.subr.msk.bf16.mxu0 %vm685_vm4, %v2777_v41 }
0x1da1   :  { %6370 = vmatmul.mubr.msk.bf16.vlgmr.msra.gmra.mxu0 %vm428_vm2, %v4739_v32 }
0x1da2   :  { %6380 = vmatpush3.bf16.msra.mxu0 %v4942_v57 }
0x1da6   :  { %4885 = vrot.lane.b32.xlu1 %v7641_v23, %s6927_s3 }
0x1e16   :  { %v4722_v25 = vpop.xlane.xlu1 %4721 }
0x1e17   :  { %6671 = vrcp.f32 %v4722_v25 }
0x1e1e   :  { %v4728_v58 = vpop.xlane.xlu1 %4727 }
0x1e1f   :  { %6673 = vrcp.f32 %v4728_v58 }
0x1e22   :  { %v4886_v16 = vpop.permute.xlu1 %4885 }
0x1e23   :  { %v4891_v27 = vsel %vm685_vm4, %v4886_v16, 0 }
0x1e24   :  { %v6672_v10 = vpop.eup %6671 }
0x1e25   :  { %v4734_v11 = vmul.f32 %v6672_v10, %v6664_v7 }
0x1e27   :  { %v4738_v26 = vpack.c.bf16 %v4734_v11, %v4734_v11 }
0x1e29   :  { %6364 = vmatmul.mubr.msk.bf16.vlgmr.msra.gmra.mxu1 %vm428_vm2, %v4738_v26 }
0x1e2a   :  { %6374 = vmatpush3.bf16.msra.mxu1 %v4891_v27  ;;  %6375 = vmatprep.mubr.msk.bf16.mxu1 %vm6916_vm1, %v6915_v5 }
0x1e2c   :  { %v6674_v28 = vpop.eup %6673 }
0x1e2d   :  { %v4736_v20 = vmul.f32 %v6674_v28, %v6666_v38 }
0x1e2f   :  { %v4740_v23 = vpack.c.bf16 %v4736_v20, %v4736_v20 }
0x1e31   :  { %6376 = vmatmul.mubr.msk.bf16.vlgmr.msra.gmra.mxu1 %vm428_vm2, %v4740_v23  ;;  %v6495_v23 = vld [vmem:[%s8142_s2 + $0x8] sm:$0xff]  }
0x1e32   :  { %6385 = vmatprep.subr.bf16.mxu1 %v6495_v23 }
0x1e33   :  { %6386 = vmatpush3.bf16.msra.mxu1 %v6495_v23 }
0x1e59   :  { %v4783_v55 = vpop.f32.mrf.mxu0 }
0x1e5b   :  { %v6359_v34 = vpop.f32.mrf.mxu0 }
0x1e5d   :  { %v4786_v15 = vpop.f32.mrf.mxu0 }
0x1e5f   :  { %v6360_v56 = vpop.f32.mrf.mxu0 }
0x1e61   :  { %v4879_v39 = vpop.f32.mrf.mxu0 }
0x1e63   :  { %v6371_v36 = vpop.f32.mrf.mxu0 }
0x1e65   :  { %v4882_v17 = vpop.f32.mrf.mxu0 }
0x1e67   :  { %v6372_v40 = vpop.f32.mrf.mxu0 }
0x1ee9   :  { %v4831_v18 = vpop.f32.mrf.mxu1 }
0x1eea   :  { %v4933_v42 = vpack.c.bf16 %v4831_v18, %v4783_v55  ;;  %v6496_v55 = vld [vmem:[%s8142_s2] sm:$0xff]  }
0x1eeb   :  { %v6365_v43 = vpop.f32.mrf.mxu1  ;;  %6387 = vmatprep.subr.bf16.mxu1 %v6496_v55 }
0x1eec   :  { %6381 = vmatprep.mubr.msk.bf16.mxu0 %vm428_vm2, %v4933_v42  ;;  %6388 = vmatpush3.bf16.msra.mxu1 %v6496_v55 }
0x1eed   :  { %v4834_v44 = vpop.f32.mrf.mxu1  ;;  %6413 = vmatprep.subr.bf16.mxu1 %v6915_v5 }
0x1eef   :  { %v6366_v45 = vpop.f32.mrf.mxu1 }
0x1ef1   :  { %v4927_v46 = vpop.f32.mrf.mxu1 }
0x1ef2   :  { %v4934_v47 = vpack.c.bf16 %v4927_v46, %v4879_v39  ;;  %v5692_v46 = vld [vmem:[%s8143_s0] ss:$0 sm:$0xff] }
0x1ef3   :  { %v6377_v48 = vpop.f32.mrf.mxu1 }
0x1ef4   :  { %6382 = vmatmul.mubr.msk.bf16.vlgmr.msra.gmra.mxu0 %vm428_vm2, %v4934_v47 }
0x1ef5   :  { %v4930_v49 = vpop.f32.mrf.mxu1 }
0x1ef7   :  { %v6378_v50 = vpop.f32.mrf.mxu1 }
0x1fb4   :  { %v6383_v33 = vpop.f32.mrf.mxu0 }
0x1fb5   :  { %v4995_v51 = vadd.f32 %v6383_v33, %v7972_v8 }
0x1fb6   :  { %v4978_v54 = vpop.f32.mrf.mxu0 }
0x1fb7   :  { %v4993_v6 = vadd.f32 %v4978_v54, %v7976_v24  ;;  %v5005_v29 = vadd.f32 %v5691_v52, %v4995_v51  ;;  %v5693_v51 = vld [vmem:[%s8144_s6] ss:$0 sm:$0xff] }
0x1fb8   :  { %v6384_v61 = vpop.f32.mrf.mxu0 }
0x1fb9   :  { %v5003_v60 = vadd.f32 %v5691_v52, %v4993_v6  ;;  %v4996_v12 = vadd.f32 %v6384_v61, %v7980_v9  ;;  %v8030_v0 = vadd.f32 %v5005_v29, %v7599_v4 }
0x1fba   :  { %v4981_v14 = vpop.f32.mrf.mxu0 }
0x1fbb   :  { %v8026_v7 = vadd.f32 %v5003_v60, %v7593_v63  ;;  %v4994_v2 = vadd.f32 %v4981_v14, %v7982_v31  ;;  %v5006_v35 = vadd.f32 %v5691_v52, %v4996_v12  ;;  %v5017_v63 = vsel %vm272_vm0, %v8030_v0, 0.0 }
0x1fbd   :  { %v5004_v8 = vadd.f32 %v5691_v52, %v4994_v2  ;;  %v5011_v38 = vsel %vm272_vm0, %v8026_v7, 0.0  ;;  %v8038_v9 = vadd.f32 %v5006_v35, %v7607_v1 }
0x1fbe   :  { %5012 = vadd.xlane.f32.xlu0 %v5011_v38  ;;  %v6497_v38 = vld [vmem:[%s8145_s7 + $0x38] sm:$0xff]  }
0x1fbf   :  { %v8035_v24 = vadd.f32 %v5004_v8, %v7601_v19  ;;  %v5020_v4 = vsel %vm272_vm0, %v8038_v9, 0.0  ;;  %6393 = vmatprep.subr.bf16.mxu0 %v6497_v38 }
0x1fc0   :  { %6394 = vmatpush3.bf16.msra.mxu0 %v6497_v38 }
0x1fc1   :  { %v5014_v31 = vsel %vm272_vm0, %v8035_v24, 0.0 }
0x1fc2   :  { %5018 = vadd.xlane.f32.xlu0 %v5017_v63  ;;  %5015 = vadd.xlane.f32.xlu1 %v5014_v31  ;;  %v6498_v63 = vld [vmem:[%s8145_s7 + $0x30] sm:$0xff]   ;;  %v6499_v31 = vld [vmem:[%s8145_s7 + $0x28] sm:$0xff]  }
0x1fc3   :  { %6395 = vmatprep.subr.bf16.mxu0 %v6498_v63 }
0x1fc4   :  { %6396 = vmatpush3.bf16.msra.mxu0 %v6498_v63 }
0x1fc5   :  { %6397 = vmatprep.subr.bf16.mxu0 %v6499_v31 }
0x1fc6   :  { %5021 = vadd.xlane.f32.xlu0 %v5020_v4  ;;  %v6500_v4 = vld [vmem:[%s8145_s7 + $0x20] sm:$0xff]  }
0x1fc8   :  { %6398 = vmatpush3.bf16.msra.mxu0 %v6499_v31 }
0x1fc9   :  { %6399 = vmatprep.subr.bf16.mxu0 %v6500_v4 }
0x1fcc   :  { %6400 = vmatpush3.bf16.msra.mxu0 %v6500_v4 }
0x2047   :  { %v5013_v53 = vpop.xlane.xlu0 %5012 }
0x2048   :  { %v5023_v13 = vmul.f32 0.03125, %v5013_v53  ;;  %v6501_v53 = vld [vmem:[%s8145_s7 + $0x18] sm:$0xff]  }
0x2049   :  { %6401 = vmatprep.subr.bf16.mxu0 %v6501_v53 }
0x204a   :  { %v5027_v19 = vsub.f32 %v8026_v7, %v5023_v13  ;;  %6402 = vmatpush3.bf16.msra.mxu0 %v6501_v53  ;;  %v6502_v13 = vld [vmem:[%s8145_s7 + $0x10] sm:$0xff]  }
0x204b   :  { %v5019_v21 = vpop.xlane.xlu0 %5018  ;;  %v5016_v22 = vpop.xlane.xlu1 %5015  ;;  %6403 = vmatprep.subr.bf16.mxu0 %v6502_v13 }
0x204c   :  { %v5025_v1 = vmul.f32 0.03125, %v5019_v21  ;;  %v5024_v59 = vmul.f32 0.03125, %v5016_v22  ;;  %v5031_v62 = vmul.f32 %v5027_v19, %v5027_v19  ;;  %v6504_v21 = vld [vmem:[%s8145_s7] sm:$0xff]  }
0x204d   :  { %v8072_v22 = vld [vmem:[%s8146_s25] sm:$0xf] }
0x204e   :  { %v5029_v37 = vsub.f32 %v8030_v0, %v5025_v1  ;;  %v5028_v3 = vsub.f32 %v8035_v24, %v5024_v59  ;;  %v5035_v32 = vsel %vm272_vm0, %v5031_v62, 0.0  ;;  %6404 = vmatpush3.bf16.msra.mxu0 %v6502_v13  ;;  %v8075_v1 = vsel %vm5372_vm8, %v8072_v22, 2147483648 }
0x204f   :  { %5036 = vadd.xlane.f32.xlu0 %v5035_v32  ;;  %v5022_v25 = vpop.xlane.xlu0 %5021  ;;  %v5375_v59 = vshra.s32 %v8075_v1, 16 }
0x2050   :  { %v5026_v58 = vmul.f32 0.03125, %v5022_v25  ;;  %v5033_v10 = vmul.f32 %v5029_v37, %v5029_v37  ;;  %v5032_v11 = vmul.f32 %v5028_v3, %v5028_v3 }
0x2051   :  { %v8078_v62 = vcvt.s32.f32 %v5375_v59 }
0x2052   :  { %v5030_v16 = vsub.f32 %v8038_v9, %v5026_v58  ;;  %v5041_v26 = vsel %vm272_vm0, %v5033_v10, 0.0  ;;  %v5038_v27 = vsel %vm272_vm0, %v5032_v11, 0.0 }
0x2053   :  { %5042 = vadd.xlane.f32.xlu0 %v5041_v26  ;;  %5039 = vadd.xlane.f32.xlu1 %v5038_v27 }
0x2054   :  { %v5034_v28 = vmul.f32 %v5030_v16, %v5030_v16 }
0x2056   :  { %v5044_v20 = vsel %vm272_vm0, %v5034_v28, 0.0 }
0x2057   :  { %5045 = vadd.xlane.f32.xlu1 %v5044_v20  ;;  %5378 = vmax.xlane.f32.xlu0 %v8078_v62 }
0x20d8   :  { %v5037_v34 = vpop.xlane.xlu0 %5036 }
0x20d9   :  { %v5047_v15 = vmul.f32 0.03125, %v5037_v34 }
0x20db   :  { %v5051_v56 = vadd.f32 1e-05, %v5047_v15 }
0x20dc   :  { %v5043_v39 = vpop.xlane.xlu0 %5042  ;;  %v5040_v36 = vpop.xlane.xlu1 %5039 }
0x20dd   :  { %6675 = vrsqrt.f32 %v5051_v56  ;;  %v5049_v17 = vmul.f32 0.03125, %v5043_v39  ;;  %v5048_v40 = vmul.f32 0.03125, %v5040_v36 }
0x20df   :  { %v5053_v41 = vadd.f32 1e-05, %v5049_v17  ;;  %v5052_v57 = vadd.f32 1e-05, %v5048_v40 }
0x20e0   :  { %v5046_v18 = vpop.xlane.xlu1 %5045  ;;  %v5379_v31 = vpop.xlane.xlu0 %5378 }
0x20e1   :  { %6677 = vrsqrt.f32 %v5053_v41  ;;  %v5050_v42 = vmul.f32 0.03125, %v5046_v18  ;;  %vm5380_vm9 = vcmp.eq.f32.partialorder %v8078_v62, %v5379_v31 }
0x20e2   :  { %6679 = vrsqrt.f32 %v5052_v57 }
0x20e3   :  { %v5054_v43 = vadd.f32 1e-05, %v5050_v42 }
0x20e5   :  { %6681 = vrsqrt.f32 %v5054_v43 }
0x20ea   :  { %v6676_v44 = vpop.eup %6675 }
0x20eb   :  { %v5059_v45 = vmul.f32 %v6676_v44, %v5027_v19  ;;  %v6503_v19 = vld [vmem:[%s8145_s7 + $0x8] sm:$0xff]  }
0x20ec   :  { %6405 = vmatprep.subr.bf16.mxu0 %v6503_v19 }
0x20ed   :  { %v5069_v33 = vmul.f32 %v5692_v46, %v5059_v45  ;;  %6406 = vmatpush3.bf16.msra.mxu0 %v6503_v19 }
0x20ee   :  { %v6678_v47 = vpop.eup %6677  ;;  %6407 = vmatprep.subr.bf16.mxu0 %v6504_v21 }
0x20ef   :  { %v6680_v48 = vpop.eup %6679  ;;  %v5061_v49 = vmul.f32 %v6678_v47, %v5029_v37  ;;  %v5079_v29 = vadd.f32 %v5693_v51, %v5069_v33  ;;  %v5694_v37 = vld [vmem:[#allocation13] ss:$0 sm:$0xff] }
0x20f0   :  { %v5060_v50 = vmul.f32 %v6680_v48, %v5028_v3 }
0x20f1   :  { %v5071_v61 = vmul.f32 %v5692_v46, %v5061_v49  ;;  %6408 = vmatpush3.bf16.msra.mxu0 %v6504_v21 }
0x20f2   :  { %v6682_v52 = vpop.eup %6681  ;;  %v5070_v54 = vmul.f32 %v5692_v46, %v5060_v50 }
0x20f3   :  { %v5062_v6 = vmul.f32 %v6682_v52, %v5030_v16  ;;  %v5081_v2 = vadd.f32 %v5693_v51, %v5071_v61 }
0x20f4   :  { %v5080_v60 = vadd.f32 %v5693_v51, %v5070_v54  ;;  %v5703_v54 = vld [vmem:[%s8147_s10] ss:$0 sm:$0xff] }
0x20f5   :  { %v5072_v12 = vmul.f32 %v5692_v46, %v5062_v6 }
0x20f6   :  { %v5083_v14 = vpack.c.bf16 %v5080_v60, %v5079_v29 }
0x20f7   :  { %v5082_v35 = vadd.f32 %v5693_v51, %v5072_v12 }
0x20f8   :  { %6389 = vmatprep.mubr.msk.bf16.mxu1 %vm272_vm0, %v5083_v14  ;;  %v5374_v14 = vand.u32 65535, %v8075_v1 }
0x20f9   :  { %v5084_v8 = vpack.c.bf16 %v5082_v35, %v5081_v2 }
0x20fa   :  { %v5376_v53 = vcvt.s32.f32 %v5374_v14 }
0x20fb   :  { %6390 = vmatmul.mubr.msk.bf16.vlgmr.msra.gmra.mxu1 %vm272_vm0, %v5084_v8 }
0x20fc   :  { %6417 = vmatprep.mubr.msk.bf16.mxu1 %vm6916_vm1, %v6915_v5 }
0x21bb   :  { %v6391_v3 = vpop.f32.mrf.mxu1 }
0x21bc   :  { %v5152_v32 = vadd.f32 %v6391_v3, %v5694_v37  ;;  %v5385_v3 = vcvt.f32.s32 %v5379_v31 }
0x21bd   :  { %v5143_v25 = vpop.f32.mrf.mxu1 }
0x21be   :  { %v5701_v58 = vmul.f32 -1.702, %v5152_v32  ;;  %v5144_v10 = vadd.f32 %v5694_v37, %v5143_v25 }
0x21bf   :  { %v6392_v11 = vpop.f32.mrf.mxu1 }
0x21c0   :  { %v5170_v16 = vmul.f32 1.442695, %v5701_v58  ;;  %v5699_v26 = vmul.f32 -1.702, %v5144_v10  ;;  %v5155_v27 = vadd.f32 %v6392_v11, %v5694_v37 }
0x21c1   :  { %v5146_v28 = vpop.f32.mrf.mxu1 }
0x21c2   :  { %v5166_v20 = vmul.f32 1.442695, %v5699_v26  ;;  %v5702_v23 = vmul.f32 -1.702, %v5155_v27  ;;  %v5147_v55 = vadd.f32 %v5694_v37, %v5146_v28  ;;  %6683 = vpow2.f32 %v5170_v16 }
0x21c3   :  { %v5400_v28 = vsub.s32 1, %v7181_v30 }
0x21c4   :  { %6685 = vpow2.f32 %v5166_v20  ;;  %v5172_v34 = vmul.f32 1.442695, %v5702_v23  ;;  %v5700_v15 = vmul.f32 -1.702, %v5147_v55 }
0x21c6   :  { %6687 = vpow2.f32 %v5172_v34  ;;  %v5168_v56 = vmul.f32 1.442695, %v5700_v15 }
0x21c8   :  { %6689 = vpow2.f32 %v5168_v56 }
0x21cf   :  { %v6684_v39 = vpop.eup %6683 }
0x21d0   :  { %v5176_v41 = vadd.f32 1.0, %v6684_v39 }
0x21d1   :  { %v6686_v36 = vpop.eup %6685 }
0x21d2   :  { %v5174_v17 = vadd.f32 1.0, %v6686_v36 }
0x21d3   :  { %v6688_v40 = vpop.eup %6687 }
0x21d4   :  { %v5177_v57 = vadd.f32 1.0, %v6688_v40  ;;  %6691 = vrcp.f32 %v5174_v17 }
0x21d5   :  { %v6690_v18 = vpop.eup %6689 }
0x21d6   :  { %6693 = vrcp.f32 %v5177_v57  ;;  %v5175_v42 = vadd.f32 1.0, %v6690_v18 }
0x21d7   :  { %6695 = vrcp.f32 %v5176_v41 }
0x21d8   :  { %6697 = vrcp.f32 %v5175_v42  ;;  %v5407_v42 = vsub.s32 2, %v7181_v30 }
0x21e1   :  { %v6692_v43 = vpop.eup %6691 }
0x21e2   :  { %v5186_v48 = vmul.f32 %v6692_v43, %v5144_v10  ;;  %v5386_v10 = vshll.u32 %v5385_v3, 16 }
0x21e3   :  { %v6694_v44 = vpop.eup %6693 }
0x21e4   :  { %v6696_v45 = vpop.eup %6695  ;;  %v5189_v47 = vmul.f32 %v6694_v44, %v5155_v27  ;;  %v5414_v44 = vsub.s32 3, %v7181_v30 }
0x21e5   :  { %v6698_v46 = vpop.eup %6697  ;;  %v5188_v50 = vmul.f32 %v6696_v45, %v5152_v32 }
0x21e6   :  { %v5187_v49 = vmul.f32 %v6698_v46, %v5147_v55  ;;  %v5393_v55 = vsub.s32 0, %v7181_v30  ;;  %v6505_v46 = vld [vmem:[%s7087_s13 + $0x8] sm:$0xff]  }
0x21e7   :  { %v5191_v51 = vpack.c.bf16 %v5189_v47, %v5188_v50  ;;  %6414 = vmatpush3.bf16.msra.mxu1 %v6505_v46  ;;  %v6506_v47 = vld [vmem:[%s7087_s13] sm:$0xff]   ;;  %s6928_s13 = smov [#allocation14]  }
0x21e8   :  { %v5190_v33 = vpack.c.bf16 %v5187_v49, %v5186_v48  ;;  %6415 = vmatprep.subr.bf16.mxu1 %v6915_v5 }
0x21ea   :  { %6409 = vmatprep.mubr.bf16.mxu0 %v5190_v33 }
0x21eb   :  { %6410 = vmatmul.mubr.bf16.vlgmr.msra.gmra.mxu0 %v5191_v51  ;;  %6416 = vmatpush3.bf16.msra.mxu1 %v6506_v47 }
0x22ab   :  { %v6411_v52 = vpop.f32.mrf.mxu0 }
0x22ac   :  { %v5289_v61 = vadd.f32 %v6411_v52, %v5703_v54 }
0x22ad   :  { %v5280_v6 = vpop.f32.mrf.mxu0 }
0x22ae   :  { %v5281_v29 = vadd.f32 %v5703_v54, %v5280_v6  ;;  %v5297_v35 = vadd.f32 %v5289_v61, %v8030_v0  ;;  %v5381_v0 = vsel %vm5380_vm9, %v5376_v53, -inf }
0x22af   :  { %v6412_v60 = vpop.f32.mrf.mxu0 }
0x22b0   :  { %v5295_v12 = vadd.f32 %v5281_v29, %v8026_v7  ;;  %v5292_v8 = vadd.f32 %v6412_v60, %v5703_v54  ;;  %v5305_v19 = vsel %vm272_vm0, %v5297_v35, 0.0  ;;  %v5712_v29 = vld [vmem:[%s7077_s27] ss:$0 sm:$0xff] }
0x22b1   :  { %v5283_v2 = vpop.f32.mrf.mxu0 }
0x22b2   :  { %v5284_v38 = vadd.f32 %v5703_v54, %v5283_v2  ;;  %v5299_v63 = vsel %vm272_vm0, %v5295_v12, 0.0  ;;  %v5298_v13 = vadd.f32 %v5292_v8, %v8038_v9 }
0x22b3   :  { %5300 = vadd.xlane.f32.xlu1 %v5299_v63 }
0x22b4   :  { %v5296_v4 = vadd.f32 %v5284_v38, %v8035_v24  ;;  %v5308_v21 = vsel %vm272_vm0, %v5298_v13, 0.0 }
0x22b6   :  { %v5302_v7 = vsel %vm272_vm0, %v5296_v4, 0.0 }
0x22b7   :  { %5303 = vadd.xlane.f32.xlu0 %v5302_v7  ;;  %5306 = vadd.xlane.f32.xlu1 %v5305_v19 }
0x22bb   :  { %5309 = vadd.xlane.f32.xlu0 %v5308_v21  ;;  %5382 = vmax.xlane.f32.xlu1 %v5381_v0 }
0x233c   :  { %v5301_v1 = vpop.xlane.xlu1 %5300 }
0x233d   :  { %v5311_v59 = vmul.f32 0.03125, %v5301_v1 }
0x233f   :  { %v5315_v37 = vsub.f32 %v5295_v12, %v5311_v59 }
0x2340   :  { %v5307_v24 = vpop.xlane.xlu1 %5306  ;;  %v5304_v34 = vpop.xlane.xlu0 %5303 }
0x2341   :  { %v5313_v32 = vmul.f32 0.03125, %v5307_v24  ;;  %v5319_v62 = vmul.f32 %v5315_v37, %v5315_v37  ;;  %v5312_v36 = vmul.f32 0.03125, %v5304_v34 }
0x2343   :  { %v5317_v25 = vsub.f32 %v5297_v35, %v5313_v32  ;;  %v5323_v9 = vsel %vm272_vm0, %v5319_v62, 0.0  ;;  %v5316_v40 = vsub.f32 %v5296_v4, %v5312_v36  ;;  %v5713_v35 = vld [vmem:[%s7082_s20] ss:$0 sm:$0xff]  ;;  %s5533_s20 = sshll.u32 %s6928_s13, 4  ;;  %s5534_s20 = int_to_ptr.vmem [resolvable:$true] %s5533_s20 }
0x2344   :  { %5324 = vadd.xlane.f32.xlu0 %v5323_v9  ;;  %v5383_v58 = vpop.xlane.xlu1 %5382  ;;  %v5310_v56 = vpop.xlane.xlu0 %5309  ;;  %s6847_s27 = scalar_lea.vmem %s5534_s20, 64  ;;  %p6852_p8 = scmp.lt.s32.totalorder %s5534_s20, %s5534_s20 }
0x2345   :  { %v5384_v11 = vcvt.f32.s32 %v5383_v58  ;;  %v5321_v16 = vmul.f32 %v5317_v25, %v5317_v25  ;;  %v5314_v39 = vmul.f32 0.03125, %v5310_v56  ;;  %p6848_p7 = scmp.ne.s32.totalorder %s5534_s20, %s6847_s27  ;;  %p6853_p9 = scmp.lt.s32.totalorder %s6847_s27, %s6847_s27 }
0x2347   :  { %v5387_v26 = vadd.s32 %v5386_v10, %v5384_v11  ;;  %v5329_v27 = vsel %vm272_vm0, %v5321_v16, 0.0  ;;  %v5318_v17 = vsub.f32 %v5298_v13, %v5314_v39  ;;  %p6854_p10 = por %p6853_p9, %p6852_p8 }
0x2348   :  { %5330 = vadd.xlane.f32.xlu0 %v5329_v27 }
0x2349   :  { %vm5388_vm10 = vcmp.eq.s32.totalorder %v8072_v22, %v5387_v26  ;;  %v5322_v41 = vmul.f32 %v5318_v17, %v5318_v17  ;;  %v5320_v22 = vmul.f32 %v5316_v40, %v5316_v40  ;;  %p6855_p11 = pnand %p6854_p10, %p6848_p7 }
0x234a   :  { %v5714_v20 = vsel %vm5388_vm10, 1.0, %v6915_v5 }
0x234b   :  { %v5401_v23 = vrot.slane %v5714_v20, %v5400_v28  ;;  %v5394_v15 = vrot.slane %v5714_v20, %v5393_v55  ;;  %v5332_v57 = vsel %vm272_vm0, %v5322_v41, 0.0  ;;  %v5326_v18 = vsel %vm272_vm0, %v5320_v22, 0.0 }
0x234c   :  { %v5408_v43 = vrot.slane %v5714_v20, %v5407_v42  ;;  %v5415_v45 = vrot.slane %v5714_v20, %v5414_v44 }
0x234d   :  { %5403 = vbcast.lane.b32.xlu1 %v5401_v23, 256 }
0x235e   :  { %5396 = vbcast.lane.b32.xlu0 %v5394_v15, 256 }
0x2371   :  { %5333 = vadd.xlane.f32.xlu1 %v5332_v57 }
0x2375   :  { %5327 = vadd.xlane.f32.xlu1 %v5326_v18 }
0x2386   :  { %5410 = vbcast.lane.b32.xlu1 %v5408_v43, 256 }
0x238a   :  { %5417 = vbcast.lane.b32.xlu1 %v5415_v45, 256 }
0x23bf   :  { %v5404_v54 = vpop.permute.xlu1 %5403 }
0x23cd   :  { %v5325_v48 = vpop.xlane.xlu0 %5324 }
0x23ce   :  { %v5335_v49 = vmul.f32 0.03125, %v5325_v48 }
0x23d0   :  { %v5339_v51 = vadd.f32 1e-05, %v5335_v49 }
0x23d1   :  { %v5331_v50 = vpop.xlane.xlu0 %5330 }
0x23d2   :  { %v5337_v33 = vmul.f32 0.03125, %v5331_v50  ;;  %6699 = vrsqrt.f32 %v5339_v51 }
0x23d4   :  { %v5341_v52 = vadd.f32 1e-05, %v5337_v33 }
0x23d5   :  { %v5397_v13 = vpop.permute.xlu0 %5396 }
0x23d6   :  { %6701 = vrsqrt.f32 %v5341_v52 }
0x23df   :  { %v6700_v30 = vpop.eup %6699 }
0x23e0   :  { %v5347_v61 = vmul.f32 %v6700_v30, %v5315_v37 }
0x23e2   :  { %v5357_v5 = vmul.f32 %v5712_v29, %v5347_v61 }
0x23e3   :  { %v6702_v6 = vpop.eup %6701 }
0x23e4   :  { %v5349_v14 = vmul.f32 %v6702_v6, %v5317_v25  ;;  %v5367_v31 = vadd.f32 %v5713_v35, %v5357_v5 }
0x23e6   :  { %v5359_v63 = vmul.f32 %v5712_v29, %v5349_v14  ;;  %v5419_v19 = vmul.f32 %v5397_v13, %v5367_v31 }
0x23e8   :  { %v5369_v7 = vadd.f32 %v5713_v35, %v5359_v63  ;;  %v5423_v21 = vsel %vm272_vm0, %v5419_v19, 0.0 }
0x23e9   :  { %v5424_v37 = vrot.slane %v5423_v21, 4 }
0x23eb   :  { %v5425_v25 = vadd.f32 %v5424_v37, %v5423_v21 }
0x23ed   :  { %v5426_v27 = vrot.slane %v5425_v25, 2 }
0x23ef   :  { %v5427_v15 = vadd.f32 %v5426_v27, %v5425_v25 }
0x23fa   :  { %v5334_v60 = vpop.xlane.xlu1 %5333 }
0x23fb   :  { %v5338_v12 = vmul.f32 0.03125, %v5334_v60 }
0x23fd   :  { %v5342_v2 = vadd.f32 1e-05, %v5338_v12 }
0x23fe   :  { %v5328_v8 = vpop.xlane.xlu1 %5327 }
0x23ff   :  { %6703 = vrsqrt.f32 %v5342_v2  ;;  %v5336_v38 = vmul.f32 0.03125, %v5328_v8 }
0x2401   :  { %v5340_v4 = vadd.f32 1e-05, %v5336_v38 }
0x2402   :  { %v5411_v53 = vpop.permute.xlu1 %5410 }
0x2403   :  { %6705 = vrsqrt.f32 %v5340_v4  ;;  %v5421_v0 = vmul.f32 %v5411_v53, %v5369_v7 }
0x2405   :  { %v5437_v1 = vsel %vm272_vm0, %v5421_v0, 0.0 }
0x2406   :  { %v5438_v24 = vrot.slane %v5437_v1, 4  ;;  %v5418_v11 = vpop.permute.xlu1 %5417 }
0x2408   :  { %v5439_v58 = vadd.f32 %v5438_v24, %v5437_v1 }
0x240a   :  { %v5440_v20 = vrot.slane %v5439_v58, 2 }
0x240c   :  { %v6704_v59 = vpop.eup %6703  ;;  %v5441_v36 = vadd.f32 %v5440_v20, %v5439_v58 }
0x240d   :  { %v5350_v3 = vmul.f32 %v6704_v59, %v5318_v17 }
0x240e   :  { %v5442_v18 = vrot.slane %v5441_v36, 1 }
0x240f   :  { %v5360_v32 = vmul.f32 %v5712_v29, %v5350_v3 }
0x2410   :  { %v6706_v62 = vpop.eup %6705  ;;  %v5443_v46 = vadd.f32 %v5442_v18, %v5441_v36 }
0x2411   :  { %v5348_v9 = vmul.f32 %v6706_v62, %v5316_v40  ;;  %v5370_v10 = vadd.f32 %v5713_v35, %v5360_v32  ;;  %v5428_v40 = vrot.slane %v5427_v15, 1 }
0x2412   :  { %v5453_v33 = vpack.c.bf16 %v5443_v46, %v5443_v46 }
0x2413   :  { %v5358_v16 = vmul.f32 %v5712_v29, %v5348_v9  ;;  %v5422_v26 = vmul.f32 %v5418_v11, %v5370_v10  ;;  %v5429_v44 = vadd.f32 %v5428_v40, %v5427_v15 }
0x2414   :  { %v5461_v6 = vunpack.c.l.b16 %v5453_v33 }
0x2415   :  { %v5368_v28 = vadd.f32 %v5713_v35, %v5358_v16  ;;  %v5444_v23 = vsel %vm272_vm0, %v5422_v26, 0.0  ;;  %v5451_v49 = vpack.c.bf16 %v5429_v44, %v5429_v44 }
0x2416   :  { %v5445_v55 = vrot.slane %v5444_v23, 4 }
0x2417   :  { %v5420_v34 = vmul.f32 %v5404_v54, %v5368_v28  ;;  %v5459_v30 = vunpack.c.l.b16 %v5451_v49 }
0x2418   :  { %v5446_v56 = vadd.f32 %v5445_v55, %v5444_v23 }
0x2419   :  { %v5430_v39 = vsel %vm272_vm0, %v5420_v34, 0.0 }
0x241a   :  { %v5431_v17 = vrot.slane %v5430_v39, 4  ;;  %v5447_v41 = vrot.slane %v5446_v56, 2 }
0x241c   :  { %v5432_v57 = vadd.f32 %v5431_v17, %v5430_v39  ;;  %v5448_v22 = vadd.f32 %v5447_v41, %v5446_v56 }
0x241e   :  { %v5433_v42 = vrot.slane %v5432_v57, 2  ;;  %v5449_v43 = vrot.slane %v5448_v22, 1 }
0x2420   :  { %v5434_v45 = vadd.f32 %v5433_v42, %v5432_v57  ;;  %v5450_v48 = vadd.f32 %v5449_v43, %v5448_v22 }
0x2422   :  { %v5435_v47 = vrot.slane %v5434_v45, 1  ;;  %v5454_v52 = vpack.c.bf16 %v5450_v48, %v5450_v48 }
0x2424   :  { %v5436_v50 = vadd.f32 %v5435_v47, %v5434_v45  ;;  %v5462_v29 = vunpack.c.l.b16 %v5454_v52 }
0x2426   :  { %v5452_v51 = vpack.c.bf16 %v5436_v50, %v5436_v50 }
0x2428   :  { %v5460_v54 = vunpack.c.l.b16 %v5452_v51 }
0x242a   :  { %v5464_v61 = vsel %vm5463_vm11, %v5460_v54, %v5459_v30 }
0x242b   :  { %v5466_v60 = vsel %vm5465_vm12, %v5461_v6, %v5464_v61 }
0x242c   :  { %v5468_v12 = vsel %vm5467_vm13, %v5462_v29, %v5466_v60 }
0x242d   :  { %v5469_v14 = vpack.c.b16 %v5468_v12, %v5468_v12 }
0x242f   :  { %6418 = vmatmul.mubr.msk.bf16.vlgmr.msra.gmra.mxu1 %vm272_vm0, %v5469_v14 }
0x24ef   :  { %v5519_v5 = vpop.f32.mrf.mxu1 }
0x24f0   :  { %5526 = vst.msk [vmem:[#allocation14] sm:$0xf] %vm5525_vm14, %v5519_v5 }
0x24f1   :  { %v6419_v2 = vpop.f32.mrf.mxu1 }
0x24f2   :  { %6858 = shalt.err (!%p6855_p11)
}
0x24f3   :  { %5536 = dma.vmem_to_hbm [thread:$0]  %s5534_s20, 64, %s7092_s17, [#allocation4]   ;;  %v5522_v35 = vpop.f32.mrf.mxu1 }
0x24f5   :  { %v6420_v8 = vpop.f32.mrf.mxu1 }
0x24f6   :  { %6875 = dma.done.wait [#allocation4], 64  }
0x24f7   :  { %6876 = vsyncadd [#allocation4], 4294967232 }
0x24f8   :  { %5540 = vsyncpa [#allocation3], 1 }
0x24f9   :  { %5541 = vsyncpa [#allocation6], 1 }
0x24fa   :  { %5542 = vsyncpa [#allocation9], 1 }
0x24fb   :  { %5543 = vsyncpa [#allocation12], 1 }
0x24fc   :  { %5544 = vsyncpa [#allocation4], 1 }

</bundles_post_ra>
